<compile_context>
chip_gen: v7x
topology: tpu7x:2x2x1
jax: 0.10.0
libtpu: 0.0.40
codegen_flags: <defaults>
</compile_context>

<pallas_src>
import functools

import numpy as np
import jax
import jax.numpy as jnp
from jax.experimental import pallas as pl
from jax.experimental.pallas import tpu as pltpu

NEG_SLOPE = 0.01   # PyTorch nn.LeakyReLU default negative_slope
BN_EPS = 1e-5      # PyTorch nn.BatchNorm2d default eps


def _roll_lanes(a, off, size):
    """b[:, p] = a[:, (p + off) % size] for a static python-int offset.

    (Equivalent to jnp.roll(a, -off, axis=1); written as an explicit two-slice
    lane concat so the semantics are unambiguous.)
    """
    s = off % size
    if s == 0:
        return a
    return jnp.concatenate([a[:, s:], a[:, :s]], axis=1)


def _fused_resnet_kernel(x_ref, w_ref, scale_ref, shift_ref, mask_ref,
                         o_ref, p_ref, *, C_h, C_out, W, HW, n_blocks):
    """Whole ResNet forward for one batch element; activations resident in VMEM.

    Layout: activations (C_h, HW) f32 (channels in sublanes, spatial in lanes);
    im2col slab p_ref (9*C_h, HW) bf16; conv = one (C_h, 9*C_h) @ (9*C_h, HW).
    """
    n_layers = n_blocks + 2
    act = x_ref[0].astype(jnp.float32)                      # (C_h, HW), lane-dense

    for layer in range(n_layers):
        # ---- build the im2col slab (9*C_h, HW) in VMEM, bf16 MXU operands ----
        a_bf = act.astype(jnp.bfloat16)
        for t in range(9):
            dy, dx = t // 3, t % 3
            off = (dy - 1) * W + (dx - 1)                   # static lane offset of tap
            if off == 0:
                slab = a_bf                                 # centre tap: no shift/mask
            else:
                # circular lane shift + zero the positions whose source pixel
                # falls outside the image ('same' padding).
                slab = _roll_lanes(a_bf, off, HW) * mask_ref[t]
            p_ref[t * C_h:(t + 1) * C_h, :] = slab          # aligned sublane store

        # ---- one K = 9*C_h contraction on the MXU, f32 accumulate ----
        z = jnp.dot(w_ref[layer], p_ref[...],
                    preferred_element_type=jnp.float32)     # (C_h, HW) f32
        # Conv bias / BatchNorm folded into one per-channel affine (f32).
        z = z * scale_ref[layer] + shift_ref[layer]
        if 1 <= layer <= n_blocks:                          # residual blocks only
            z = jnp.where(z >= 0.0, z, NEG_SLOPE * z)       # LeakyReLU
            z = z + act                                     # residual add (f32)
        act = z

    # Lane-dense (256-wide) output store; only C_out sublanes are meaningful.
    o_ref[0] = act[:C_out, :].astype(o_ref.dtype)


# ------------------------------ wrapper ------------------------------

def _tap_masks(H, W):
    """(9, 1, H*W) 0/1 masks: tap t=dy*3+dx valid iff (pi+dy-1, pj+dx-1) is in-image."""
    pi, pj = np.meshgrid(np.arange(H), np.arange(W), indexing="ij")
    masks = []
    for dy in range(3):
        for dx in range(3):
            ok = ((pi + dy - 1 >= 0) & (pi + dy - 1 < H) &
                  (pj + dx - 1 >= 0) & (pj + dx - 1 < W))
            masks.append(ok.reshape(-1))
    return np.stack(masks).astype(np.float32).reshape(9, 1, H * W)


def _im2col_weight(w_hwio, c_in_pad, c_out_pad):
    """(3,3,Cin,Cout) HWIO -> (c_out_pad, 9*c_in_pad); column = (dy*3+dx)*c_in_pad + k."""
    kh, kw, cin, cout = w_hwio.shape
    w = jnp.pad(w_hwio.astype(jnp.float32),
                ((0, 0), (0, 0), (0, c_in_pad - cin), (0, c_out_pad - cout)))
    return jnp.transpose(w, (3, 0, 1, 2)).reshape(c_out_pad, kh * kw * c_in_pad)


def resnet_forward_pallas(x_nchw, params):
    N, C_in, H, W = x_nchw.shape
    HW = H * W
    C_h = params["w_in"].shape[-1]
    C_out = params["w_out"].shape[-1]
    blocks = params["blocks"]
    L = len(blocks)
    n_layers = L + 2

    # NCHW input flattened spatially, channels zero-padded C_in -> C_h (no transposes).
    x = x_nchw.reshape(N, C_in, HW).astype(jnp.float32)
    x = jnp.pad(x, ((0, 0), (0, C_h - C_in), (0, 0)))                 # (N, C_h, HW)

    # All conv weights in im2col layout, stacked per layer, bf16 MXU operands.
    w_all = jnp.stack(
        [_im2col_weight(params["w_in"], C_h, C_h)]
        + [_im2col_weight(blk["w"], C_h, C_h) for blk in blocks]
        + [_im2col_weight(params["w_out"], C_h, C_h)]
    ).astype(jnp.bfloat16)                                            # (n_layers, C_h, 9*C_h)

    # Per-layer post-conv affine.  conv_in / conv_out: scale=1, shift=bias.
    # Residual blocks: conv bias folded into BN: (z + b)*s + t == z*s + (b*s + t).
    def pad_c(v):
        return jnp.pad(v.astype(jnp.float32), (0, C_h - v.shape[0]))

    ones = jnp.ones((C_h,), jnp.float32)
    scale_all = jnp.stack([ones] + [blk["scale"] for blk in blocks] + [ones])
    shift_all = jnp.stack([pad_c(params["b_in"])]
                          + [blk["b"] * blk["scale"] + blk["shift"] for blk in blocks]
                          + [pad_c(params["b_out"])])
    scale_all = scale_all.reshape(n_layers, C_h, 1).astype(jnp.float32)
    shift_all = shift_all.reshape(n_layers, C_h, 1).astype(jnp.float32)

    masks = jnp.asarray(_tap_masks(H, W), dtype=jnp.bfloat16)         # (9, 1, HW)

    kernel = functools.partial(_fused_resnet_kernel, C_h=C_h, C_out=C_out,
                               W=W, HW=HW, n_blocks=L)
    y = pl.pallas_call(
        kernel,
        out_shape=jax.ShapeDtypeStruct((N, C_out, HW), x_nchw.dtype),
        grid_spec=pltpu.PrefetchScalarGridSpec(
            num_scalar_prefetch=0,
            grid=(N,),                                                # batch-parallel
            in_specs=[
                pl.BlockSpec((1, C_h, HW), lambda n: (n, 0, 0)),              # x
                pl.BlockSpec((n_layers, C_h, 9 * C_h), lambda n: (0, 0, 0)),  # im2col weights
                pl.BlockSpec((n_layers, C_h, 1), lambda n: (0, 0, 0)),        # affine scale
                pl.BlockSpec((n_layers, C_h, 1), lambda n: (0, 0, 0)),        # affine shift
                pl.BlockSpec((9, 1, HW), lambda n: (0, 0, 0)),                # tap masks
            ],
            out_specs=pl.BlockSpec((1, C_out, HW), lambda n: (n, 0, 0)),
            scratch_shapes=[pltpu.VMEM((9 * C_h, HW), jnp.bfloat16)],         # im2col slab
        ),
        compiler_params=pltpu.CompilerParams(dimension_semantics=("parallel",)),
    )(x, w_all, scale_all, shift_all, masks)
    return y.reshape(N, C_out, H, W)                                  # already NCHW


# ------------------------------ parameter setup ------------------------------

def init_params(key, in_channels=3, out_channels=3, hidden_channels=32, hidden_layers=3):
    keys = jax.random.split(key, 2 + 4 * hidden_layers)
    ki = iter(range(len(keys)))
    # 0.05 init keeps the per-conv gain < 1 so bf16-operand rounding error does not
    # amplify through the residual stack (kernel uses bf16 MXU operands, f32 accum),
    # keeping the f32-reference comparison meaningful at atol=5e-2.
    w_scale = 0.05

    def conv_init(k, cin, cout):
        w = w_scale * jax.random.normal(keys[k], (3, 3, cin, cout), jnp.float32)
        b = w_scale * jax.random.normal(jax.random.fold_in(keys[k], 1), (cout,), jnp.float32)
        return w, b

    w_in, b_in = conv_init(next(ki), in_channels, hidden_channels)
    blocks = []
    for _ in range(hidden_layers):
        w, b = conv_init(next(ki), hidden_channels, hidden_channels)
        gamma = 1.0 + 0.1 * jax.random.normal(keys[next(ki)], (hidden_channels,), jnp.float32)
        beta = 0.1 * jax.random.normal(keys[next(ki)], (hidden_channels,), jnp.float32)
        # TODO(synk): BatchNorm2d is implemented in inference mode (running_mean=0,
        # running_var=1 folded into a per-channel affine); PyTorch training-mode
        # batch statistics are not reproduced.
        running_mean = jnp.zeros((hidden_channels,), jnp.float32)
        running_var = jnp.ones((hidden_channels,), jnp.float32)
        scale = gamma / jnp.sqrt(running_var + BN_EPS)
        shift = beta - running_mean * scale
        _ = keys[next(ki)]  # keep key consumption deterministic / stable
        blocks.append(dict(w=w, b=b, scale=scale, shift=shift))
    w_out, b_out = conv_init(next(ki), hidden_channels, out_channels)
    return dict(w_in=w_in, b_in=b_in, blocks=blocks, w_out=w_out, b_out=b_out)


# ------------------------------ JAX reference ------------------------------

def _conv_ref(x, w, b):
    y = jax.lax.conv_general_dilated(
        x, w, window_strides=(1, 1), padding="SAME",
        dimension_numbers=("NHWC", "HWIO", "NHWC"))
    return y + b.reshape(1, 1, 1, -1)


def resnet_forward_ref(x_nchw, params):
    x = jnp.transpose(x_nchw, (0, 2, 3, 1))
    y = _conv_ref(x, params["w_in"], params["b_in"])
    for blk in params["blocks"]:
        z = _conv_ref(y, blk["w"], blk["b"])
        z = z * blk["scale"].reshape(1, 1, 1, -1) + blk["shift"].reshape(1, 1, 1, -1)
        z = jnp.where(z >= 0, z, NEG_SLOPE * z)
        y = z + y
    y = _conv_ref(y, params["w_out"], params["b_out"])
    return jnp.transpose(y, (0, 3, 1, 2))


if __name__ == "__main__":
    key = jax.random.PRNGKey(0)
    k_param, k_x = jax.random.split(key)
    params = init_params(k_param, in_channels=3, out_channels=3,
                         hidden_channels=32, hidden_layers=3)

    # PyTorch-style NCHW input: batch=2, channels=3, spatial=16x16
    x = jax.random.normal(k_x, (2, 3, 16, 16), jnp.float32)

    out = jax.block_until_ready(resnet_forward_pallas(x, params))
    ref = resnet_forward_ref(x, params)

    assert out.shape == (2, 3, 16, 16)
    # bf16 MXU operands vs f32 reference -> looser tolerance than a pure-f32 kernel.
    assert jnp.allclose(out, ref, atol=5e-2, rtol=5e-2), "Pallas output mismatch vs JAX reference"

    print("KERNEL_OK")
</pallas_src>

<mosaic_0001>
module attributes {stable_mosaic.version = 11 : i64} {
  func.func @_fused_resnet_kernel(%arg0: i32, %arg1: memref<1x32x256xf32, #tpu.memory_space<vmem>>, %arg2: memref<5x32x288xbf16, #tpu.memory_space<vmem>>, %arg3: memref<5x32x1xf32, #tpu.memory_space<vmem>>, %arg4: memref<5x32x1xf32, #tpu.memory_space<vmem>>, %arg5: memref<9x1x256xbf16, #tpu.memory_space<vmem>>, %arg6: memref<1x3x256xf32, #tpu.memory_space<vmem>>, %arg7: memref<288x256xbf16, #tpu.memory_space<vmem>>) attributes {dimension_semantics = [#tpu.dimension_semantics<parallel>], iteration_bounds = array<i64: 2>, scalar_prefetch = 0 : i64, scratch_operands = 1 : i64, tpu.core_type = #tpu.core_type<tc>, window_params = [{transform_indices = @transform_0, window_bounds = array<i64: 1, 32, 256>}, {pipeline_mode = #tpu.pipeline_mode<synchronous>, transform_indices = @transform_1, window_bounds = array<i64: 5, 32, 288>}, {pipeline_mode = #tpu.pipeline_mode<synchronous>, transform_indices = @transform_2, window_bounds = array<i64: 5, 32, 1>}, {pipeline_mode = #tpu.pipeline_mode<synchronous>, transform_indices = @transform_3, window_bounds = array<i64: 5, 32, 1>}, {pipeline_mode = #tpu.pipeline_mode<synchronous>, transform_indices = @transform_4, window_bounds = array<i64: 9, 1, 256>}, {transform_indices = @transform_5, window_bounds = array<i64: 1, 3, 256>}]} {
    %c0 = arith.constant 0 : index
    %c0_0 = arith.constant 0 : index
    %c0_1 = arith.constant 0 : index
    %0 = vector.load %arg1[%c0, %c0_0, %c0_1] : memref<1x32x256xf32, #tpu.memory_space<vmem>>, vector<1x32x256xf32>
    %1 = vector.shape_cast %0 : vector<1x32x256xf32> to vector<32x256xf32>
    %2 = arith.truncf %1 : vector<32x256xf32> to vector<32x256xbf16>
    %3 = vector.extract_strided_slice %2 {offsets = [0, 239], sizes = [32, 17], strides = [1, 1]} : vector<32x256xbf16> to vector<32x17xbf16>
    %4 = vector.extract_strided_slice %2 {offsets = [0, 0], sizes = [32, 239], strides = [1, 1]} : vector<32x256xbf16> to vector<32x239xbf16>
    %5 = tpu.concatenate %3, %4 in 1 : vector<32x17xbf16>, vector<32x239xbf16> -> vector<32x256xbf16>
    %c0_2 = arith.constant 0 : index
    %c0_3 = arith.constant 0 : index
    %c0_4 = arith.constant 0 : index
    %6 = vector.load %arg5[%c0_2, %c0_3, %c0_4] : memref<9x1x256xbf16, #tpu.memory_space<vmem>>, vector<1x1x256xbf16>
    %7 = vector.shape_cast %6 : vector<1x1x256xbf16> to vector<1x256xbf16>
    %8 = vector.broadcast %7 : vector<1x256xbf16> to vector<32x256xbf16>
    %9 = arith.mulf %5, %8 : vector<32x256xbf16>
    %c0_5 = arith.constant 0 : index
    %c0_6 = arith.constant 0 : index
    %10 = vector.load %arg7[%c0_5, %c0_6] : memref<288x256xbf16, #tpu.memory_space<vmem>>, vector<32x256xbf16>
    tpu.vector_store %arg7[%c0_5, %c0_6], %9 {strides = array<i32>} : memref<288x256xbf16, #tpu.memory_space<vmem>>, vector<32x256xbf16>,
    %11 = vector.extract_strided_slice %2 {offsets = [0, 240], sizes = [32, 16], strides = [1, 1]} : vector<32x256xbf16> to vector<32x16xbf16>
    %12 = vector.extract_strided_slice %2 {offsets = [0, 0], sizes = [32, 240], strides = [1, 1]} : vector<32x256xbf16> to vector<32x240xbf16>
    %13 = tpu.concatenate %11, %12 in 1 : vector<32x16xbf16>, vector<32x240xbf16> -> vector<32x256xbf16>
    %c1 = arith.constant 1 : index
    %c0_7 = arith.constant 0 : index
    %c0_8 = arith.constant 0 : index
    %14 = vector.load %arg5[%c1, %c0_7, %c0_8] : memref<9x1x256xbf16, #tpu.memory_space<vmem>>, vector<1x1x256xbf16>
    %15 = vector.shape_cast %14 : vector<1x1x256xbf16> to vector<1x256xbf16>
    %16 = vector.broadcast %15 : vector<1x256xbf16> to vector<32x256xbf16>
    %17 = arith.mulf %13, %16 : vector<32x256xbf16>
    %c32 = arith.constant 32 : index
    %c0_9 = arith.constant 0 : index
    %18 = vector.load %arg7[%c32, %c0_9] : memref<288x256xbf16, #tpu.memory_space<vmem>>, vector<32x256xbf16>
    tpu.vector_store %arg7[%c32, %c0_9], %17 {strides = array<i32>} : memref<288x256xbf16, #tpu.memory_space<vmem>>, vector<32x256xbf16>,
    %19 = vector.extract_strided_slice %2 {offsets = [0, 241], sizes = [32, 15], strides = [1, 1]} : vector<32x256xbf16> to vector<32x15xbf16>
    %20 = vector.extract_strided_slice %2 {offsets = [0, 0], sizes = [32, 241], strides = [1, 1]} : vector<32x256xbf16> to vector<32x241xbf16>
    %21 = tpu.concatenate %19, %20 in 1 : vector<32x15xbf16>, vector<32x241xbf16> -> vector<32x256xbf16>
    %c2 = arith.constant 2 : index
    %c0_10 = arith.constant 0 : index
    %c0_11 = arith.constant 0 : index
    %22 = vector.load %arg5[%c2, %c0_10, %c0_11] : memref<9x1x256xbf16, #tpu.memory_space<vmem>>, vector<1x1x256xbf16>
    %23 = vector.shape_cast %22 : vector<1x1x256xbf16> to vector<1x256xbf16>
    %24 = vector.broadcast %23 : vector<1x256xbf16> to vector<32x256xbf16>
    %25 = arith.mulf %21, %24 : vector<32x256xbf16>
    %c64 = arith.constant 64 : index
    %c0_12 = arith.constant 0 : index
    %26 = vector.load %arg7[%c64, %c0_12] : memref<288x256xbf16, #tpu.memory_space<vmem>>, vector<32x256xbf16>
    tpu.vector_store %arg7[%c64, %c0_12], %25 {strides = array<i32>} : memref<288x256xbf16, #tpu.memory_space<vmem>>, vector<32x256xbf16>,
    %27 = vector.extract_strided_slice %2 {offsets = [0, 255], sizes = [32, 1], strides = [1, 1]} : vector<32x256xbf16> to vector<32x1xbf16>
    %28 = vector.extract_strided_slice %2 {offsets = [0, 0], sizes = [32, 255], strides = [1, 1]} : vector<32x256xbf16> to vector<32x255xbf16>
    %29 = tpu.concatenate %27, %28 in 1 : vector<32x1xbf16>, vector<32x255xbf16> -> vector<32x256xbf16>
    %c3 = arith.constant 3 : index
    %c0_13 = arith.constant 0 : index
    %c0_14 = arith.constant 0 : index
    %30 = vector.load %arg5[%c3, %c0_13, %c0_14] : memref<9x1x256xbf16, #tpu.memory_space<vmem>>, vector<1x1x256xbf16>
    %31 = vector.shape_cast %30 : vector<1x1x256xbf16> to vector<1x256xbf16>
    %32 = vector.broadcast %31 : vector<1x256xbf16> to vector<32x256xbf16>
    %33 = arith.mulf %29, %32 : vector<32x256xbf16>
    %c96 = arith.constant 96 : index
    %c0_15 = arith.constant 0 : index
    %34 = vector.load %arg7[%c96, %c0_15] : memref<288x256xbf16, #tpu.memory_space<vmem>>, vector<32x256xbf16>
    tpu.vector_store %arg7[%c96, %c0_15], %33 {strides = array<i32>} : memref<288x256xbf16, #tpu.memory_space<vmem>>, vector<32x256xbf16>,
    %c128 = arith.constant 128 : index
    %c0_16 = arith.constant 0 : index
    %35 = vector.load %arg7[%c128, %c0_16] : memref<288x256xbf16, #tpu.memory_space<vmem>>, vector<32x256xbf16>
    tpu.vector_store %arg7[%c128, %c0_16], %2 {strides = array<i32>} : memref<288x256xbf16, #tpu.memory_space<vmem>>, vector<32x256xbf16>,
    %36 = vector.extract_strided_slice %2 {offsets = [0, 1], sizes = [32, 255], strides = [1, 1]} : vector<32x256xbf16> to vector<32x255xbf16>
    %37 = vector.extract_strided_slice %2 {offsets = [0, 0], sizes = [32, 1], strides = [1, 1]} : vector<32x256xbf16> to vector<32x1xbf16>
    %38 = tpu.concatenate %36, %37 in 1 : vector<32x255xbf16>, vector<32x1xbf16> -> vector<32x256xbf16>
    %c5 = arith.constant 5 : index
    %c0_17 = arith.constant 0 : index
    %c0_18 = arith.constant 0 : index
    %39 = vector.load %arg5[%c5, %c0_17, %c0_18] : memref<9x1x256xbf16, #tpu.memory_space<vmem>>, vector<1x1x256xbf16>
    %40 = vector.shape_cast %39 : vector<1x1x256xbf16> to vector<1x256xbf16>
    %41 = vector.broadcast %40 : vector<1x256xbf16> to vector<32x256xbf16>
    %42 = arith.mulf %38, %41 : vector<32x256xbf16>
    %c160 = arith.constant 160 : index
    %c0_19 = arith.constant 0 : index
    %43 = vector.load %arg7[%c160, %c0_19] : memref<288x256xbf16, #tpu.memory_space<vmem>>, vector<32x256xbf16>
    tpu.vector_store %arg7[%c160, %c0_19], %42 {strides = array<i32>} : memref<288x256xbf16, #tpu.memory_space<vmem>>, vector<32x256xbf16>,
    %44 = vector.extract_strided_slice %2 {offsets = [0, 15], sizes = [32, 241], strides = [1, 1]} : vector<32x256xbf16> to vector<32x241xbf16>
    %45 = vector.extract_strided_slice %2 {offsets = [0, 0], sizes = [32, 15], strides = [1, 1]} : vector<32x256xbf16> to vector<32x15xbf16>
    %46 = tpu.concatenate %44, %45 in 1 : vector<32x241xbf16>, vector<32x15xbf16> -> vector<32x256xbf16>
    %c6 = arith.constant 6 : index
    %c0_20 = arith.constant 0 : index
    %c0_21 = arith.constant 0 : index
    %47 = vector.load %arg5[%c6, %c0_20, %c0_21] : memref<9x1x256xbf16, #tpu.memory_space<vmem>>, vector<1x1x256xbf16>
    %48 = vector.shape_cast %47 : vector<1x1x256xbf16> to vector<1x256xbf16>
    %49 = vector.broadcast %48 : vector<1x256xbf16> to vector<32x256xbf16>
    %50 = arith.mulf %46, %49 : vector<32x256xbf16>
    %c192 = arith.constant 192 : index
    %c0_22 = arith.constant 0 : index
    %51 = vector.load %arg7[%c192, %c0_22] : memref<288x256xbf16, #tpu.memory_space<vmem>>, vector<32x256xbf16>
    tpu.vector_store %arg7[%c192, %c0_22], %50 {strides = array<i32>} : memref<288x256xbf16, #tpu.memory_space<vmem>>, vector<32x256xbf16>,
    %52 = vector.extract_strided_slice %2 {offsets = [0, 16], sizes = [32, 240], strides = [1, 1]} : vector<32x256xbf16> to vector<32x240xbf16>
    %53 = vector.extract_strided_slice %2 {offsets = [0, 0], sizes = [32, 16], strides = [1, 1]} : vector<32x256xbf16> to vector<32x16xbf16>
    %54 = tpu.concatenate %52, %53 in 1 : vector<32x240xbf16>, vector<32x16xbf16> -> vector<32x256xbf16>
    %c7 = arith.constant 7 : index
    %c0_23 = arith.constant 0 : index
    %c0_24 = arith.constant 0 : index
    %55 = vector.load %arg5[%c7, %c0_23, %c0_24] : memref<9x1x256xbf16, #tpu.memory_space<vmem>>, vector<1x1x256xbf16>
    %56 = vector.shape_cast %55 : vector<1x1x256xbf16> to vector<1x256xbf16>
    %57 = vector.broadcast %56 : vector<1x256xbf16> to vector<32x256xbf16>
    %58 = arith.mulf %54, %57 : vector<32x256xbf16>
    %c224 = arith.constant 224 : index
    %c0_25 = arith.constant 0 : index
    %59 = vector.load %arg7[%c224, %c0_25] : memref<288x256xbf16, #tpu.memory_space<vmem>>, vector<32x256xbf16>
    tpu.vector_store %arg7[%c224, %c0_25], %58 {strides = array<i32>} : memref<288x256xbf16, #tpu.memory_space<vmem>>, vector<32x256xbf16>,
    %60 = vector.extract_strided_slice %2 {offsets = [0, 17], sizes = [32, 239], strides = [1, 1]} : vector<32x256xbf16> to vector<32x239xbf16>
    %61 = vector.extract_strided_slice %2 {offsets = [0, 0], sizes = [32, 17], strides = [1, 1]} : vector<32x256xbf16> to vector<32x17xbf16>
    %62 = tpu.concatenate %60, %61 in 1 : vector<32x239xbf16>, vector<32x17xbf16> -> vector<32x256xbf16>
    %c8 = arith.constant 8 : index
    %c0_26 = arith.constant 0 : index
    %c0_27 = arith.constant 0 : index
    %63 = vector.load %arg5[%c8, %c0_26, %c0_27] : memref<9x1x256xbf16, #tpu.memory_space<vmem>>, vector<1x1x256xbf16>
    %64 = vector.shape_cast %63 : vector<1x1x256xbf16> to vector<1x256xbf16>
    %65 = vector.broadcast %64 : vector<1x256xbf16> to vector<32x256xbf16>
    %66 = arith.mulf %62, %65 : vector<32x256xbf16>
    %c256 = arith.constant 256 : index
    %c0_28 = arith.constant 0 : index
    %67 = vector.load %arg7[%c256, %c0_28] : memref<288x256xbf16, #tpu.memory_space<vmem>>, vector<32x256xbf16>
    tpu.vector_store %arg7[%c256, %c0_28], %66 {strides = array<i32>} : memref<288x256xbf16, #tpu.memory_space<vmem>>, vector<32x256xbf16>,
    %c0_29 = arith.constant 0 : index
    %c0_30 = arith.constant 0 : index
    %c0_31 = arith.constant 0 : index
    %68 = vector.load %arg2[%c0_29, %c0_30, %c0_31] : memref<5x32x288xbf16, #tpu.memory_space<vmem>>, vector<1x32x288xbf16>
    %69 = vector.shape_cast %68 : vector<1x32x288xbf16> to vector<32x288xbf16>
    %c0_32 = arith.constant 0 : index
    %c0_33 = arith.constant 0 : index
    %70 = vector.load %arg7[%c0_32, %c0_33] : memref<288x256xbf16, #tpu.memory_space<vmem>>, vector<288x256xbf16>
    %cst = arith.constant dense<0.000000e+00> : vector<32x256xf32>
    %71 = tpu.matmul %69, %70, %cst {dimension_numbers = #tpu.dot_dimension_numbers<[1], [0], [0], [1], [0, 0, 1, 1], [], []>} : vector<32x288xbf16>, vector<288x256xbf16>, vector<32x256xf32> -> vector<32x256xf32>
    %c0_34 = arith.constant 0 : index
    %c0_35 = arith.constant 0 : index
    %c0_36 = arith.constant 0 : index
    %72 = vector.load %arg3[%c0_34, %c0_35, %c0_36] : memref<5x32x1xf32, #tpu.memory_space<vmem>>, vector<1x32x1xf32>
    %73 = vector.shape_cast %72 : vector<1x32x1xf32> to vector<32x1xf32>
    %74 = vector.broadcast %73 : vector<32x1xf32> to vector<32x256xf32>
    %75 = arith.mulf %71, %74 : vector<32x256xf32>
    %c0_37 = arith.constant 0 : index
    %c0_38 = arith.constant 0 : index
    %c0_39 = arith.constant 0 : index
    %76 = vector.load %arg4[%c0_37, %c0_38, %c0_39] : memref<5x32x1xf32, #tpu.memory_space<vmem>>, vector<1x32x1xf32>
    %77 = vector.shape_cast %76 : vector<1x32x1xf32> to vector<32x1xf32>
    %78 = vector.broadcast %77 : vector<32x1xf32> to vector<32x256xf32>
    %79 = arith.addf %75, %78 : vector<32x256xf32>
    %80 = arith.truncf %79 : vector<32x256xf32> to vector<32x256xbf16>
    %81 = vector.extract_strided_slice %80 {offsets = [0, 239], sizes = [32, 17], strides = [1, 1]} : vector<32x256xbf16> to vector<32x17xbf16>
    %82 = vector.extract_strided_slice %80 {offsets = [0, 0], sizes = [32, 239], strides = [1, 1]} : vector<32x256xbf16> to vector<32x239xbf16>
    %83 = tpu.concatenate %81, %82 in 1 : vector<32x17xbf16>, vector<32x239xbf16> -> vector<32x256xbf16>
    %c0_40 = arith.constant 0 : index
    %c0_41 = arith.constant 0 : index
    %c0_42 = arith.constant 0 : index
    %84 = vector.load %arg5[%c0_40, %c0_41, %c0_42] : memref<9x1x256xbf16, #tpu.memory_space<vmem>>, vector<1x1x256xbf16>
    %85 = vector.shape_cast %84 : vector<1x1x256xbf16> to vector<1x256xbf16>
    %86 = vector.broadcast %85 : vector<1x256xbf16> to vector<32x256xbf16>
    %87 = arith.mulf %83, %86 : vector<32x256xbf16>
    %c0_43 = arith.constant 0 : index
    %c0_44 = arith.constant 0 : index
    %88 = vector.load %arg7[%c0_43, %c0_44] : memref<288x256xbf16, #tpu.memory_space<vmem>>, vector<32x256xbf16>
    tpu.vector_store %arg7[%c0_43, %c0_44], %87 {strides = array<i32>} : memref<288x256xbf16, #tpu.memory_space<vmem>>, vector<32x256xbf16>,
    %89 = vector.extract_strided_slice %80 {offsets = [0, 240], sizes = [32, 16], strides = [1, 1]} : vector<32x256xbf16> to vector<32x16xbf16>
    %90 = vector.extract_strided_slice %80 {offsets = [0, 0], sizes = [32, 240], strides = [1, 1]} : vector<32x256xbf16> to vector<32x240xbf16>
    %91 = tpu.concatenate %89, %90 in 1 : vector<32x16xbf16>, vector<32x240xbf16> -> vector<32x256xbf16>
    %c1_45 = arith.constant 1 : index
    %c0_46 = arith.constant 0 : index
    %c0_47 = arith.constant 0 : index
    %92 = vector.load %arg5[%c1_45, %c0_46, %c0_47] : memref<9x1x256xbf16, #tpu.memory_space<vmem>>, vector<1x1x256xbf16>
    %93 = vector.shape_cast %92 : vector<1x1x256xbf16> to vector<1x256xbf16>
    %94 = vector.broadcast %93 : vector<1x256xbf16> to vector<32x256xbf16>
    %95 = arith.mulf %91, %94 : vector<32x256xbf16>
    %c32_48 = arith.constant 32 : index
    %c0_49 = arith.constant 0 : index
    %96 = vector.load %arg7[%c32_48, %c0_49] : memref<288x256xbf16, #tpu.memory_space<vmem>>, vector<32x256xbf16>
    tpu.vector_store %arg7[%c32_48, %c0_49], %95 {strides = array<i32>} : memref<288x256xbf16, #tpu.memory_space<vmem>>, vector<32x256xbf16>,
    %97 = vector.extract_strided_slice %80 {offsets = [0, 241], sizes = [32, 15], strides = [1, 1]} : vector<32x256xbf16> to vector<32x15xbf16>
    %98 = vector.extract_strided_slice %80 {offsets = [0, 0], sizes = [32, 241], strides = [1, 1]} : vector<32x256xbf16> to vector<32x241xbf16>
    %99 = tpu.concatenate %97, %98 in 1 : vector<32x15xbf16>, vector<32x241xbf16> -> vector<32x256xbf16>
    %c2_50 = arith.constant 2 : index
    %c0_51 = arith.constant 0 : index
    %c0_52 = arith.constant 0 : index
    %100 = vector.load %arg5[%c2_50, %c0_51, %c0_52] : memref<9x1x256xbf16, #tpu.memory_space<vmem>>, vector<1x1x256xbf16>
    %101 = vector.shape_cast %100 : vector<1x1x256xbf16> to vector<1x256xbf16>
    %102 = vector.broadcast %101 : vector<1x256xbf16> to vector<32x256xbf16>
    %103 = arith.mulf %99, %102 : vector<32x256xbf16>
    %c64_53 = arith.constant 64 : index
    %c0_54 = arith.constant 0 : index
    %104 = vector.load %arg7[%c64_53, %c0_54] : memref<288x256xbf16, #tpu.memory_space<vmem>>, vector<32x256xbf16>
    tpu.vector_store %arg7[%c64_53, %c0_54], %103 {strides = array<i32>} : memref<288x256xbf16, #tpu.memory_space<vmem>>, vector<32x256xbf16>,
    %105 = vector.extract_strided_slice %80 {offsets = [0, 255], sizes = [32, 1], strides = [1, 1]} : vector<32x256xbf16> to vector<32x1xbf16>
    %106 = vector.extract_strided_slice %80 {offsets = [0, 0], sizes = [32, 255], strides = [1, 1]} : vector<32x256xbf16> to vector<32x255xbf16>
    %107 = tpu.concatenate %105, %106 in 1 : vector<32x1xbf16>, vector<32x255xbf16> -> vector<32x256xbf16>
    %c3_55 = arith.constant 3 : index
    %c0_56 = arith.constant 0 : index
    %c0_57 = arith.constant 0 : index
    %108 = vector.load %arg5[%c3_55, %c0_56, %c0_57] : memref<9x1x256xbf16, #tpu.memory_space<vmem>>, vector<1x1x256xbf16>
    %109 = vector.shape_cast %108 : vector<1x1x256xbf16> to vector<1x256xbf16>
    %110 = vector.broadcast %109 : vector<1x256xbf16> to vector<32x256xbf16>
    %111 = arith.mulf %107, %110 : vector<32x256xbf16>
    %c96_58 = arith.constant 96 : index
    %c0_59 = arith.constant 0 : index
    %112 = vector.load %arg7[%c96_58, %c0_59] : memref<288x256xbf16, #tpu.memory_space<vmem>>, vector<32x256xbf16>
    tpu.vector_store %arg7[%c96_58, %c0_59], %111 {strides = array<i32>} : memref<288x256xbf16, #tpu.memory_space<vmem>>, vector<32x256xbf16>,
    %c128_60 = arith.constant 128 : index
    %c0_61 = arith.constant 0 : index
    %113 = vector.load %arg7[%c128_60, %c0_61] : memref<288x256xbf16, #tpu.memory_space<vmem>>, vector<32x256xbf16>
    tpu.vector_store %arg7[%c128_60, %c0_61], %80 {strides = array<i32>} : memref<288x256xbf16, #tpu.memory_space<vmem>>, vector<32x256xbf16>,
    %114 = vector.extract_strided_slice %80 {offsets = [0, 1], sizes = [32, 255], strides = [1, 1]} : vector<32x256xbf16> to vector<32x255xbf16>
    %115 = vector.extract_strided_slice %80 {offsets = [0, 0], sizes = [32, 1], strides = [1, 1]} : vector<32x256xbf16> to vector<32x1xbf16>
    %116 = tpu.concatenate %114, %115 in 1 : vector<32x255xbf16>, vector<32x1xbf16> -> vector<32x256xbf16>
    %c5_62 = arith.constant 5 : index
    %c0_63 = arith.constant 0 : index
    %c0_64 = arith.constant 0 : index
    %117 = vector.load %arg5[%c5_62, %c0_63, %c0_64] : memref<9x1x256xbf16, #tpu.memory_space<vmem>>, vector<1x1x256xbf16>
    %118 = vector.shape_cast %117 : vector<1x1x256xbf16> to vector<1x256xbf16>
    %119 = vector.broadcast %118 : vector<1x256xbf16> to vector<32x256xbf16>
    %120 = arith.mulf %116, %119 : vector<32x256xbf16>
    %c160_65 = arith.constant 160 : index
    %c0_66 = arith.constant 0 : index
    %121 = vector.load %arg7[%c160_65, %c0_66] : memref<288x256xbf16, #tpu.memory_space<vmem>>, vector<32x256xbf16>
    tpu.vector_store %arg7[%c160_65, %c0_66], %120 {strides = array<i32>} : memref<288x256xbf16, #tpu.memory_space<vmem>>, vector<32x256xbf16>,
    %122 = vector.extract_strided_slice %80 {offsets = [0, 15], sizes = [32, 241], strides = [1, 1]} : vector<32x256xbf16> to vector<32x241xbf16>
    %123 = vector.extract_strided_slice %80 {offsets = [0, 0], sizes = [32, 15], strides = [1, 1]} : vector<32x256xbf16> to vector<32x15xbf16>
    %124 = tpu.concatenate %122, %123 in 1 : vector<32x241xbf16>, vector<32x15xbf16> -> vector<32x256xbf16>
    %c6_67 = arith.constant 6 : index
    %c0_68 = arith.constant 0 : index
    %c0_69 = arith.constant 0 : index
    %125 = vector.load %arg5[%c6_67, %c0_68, %c0_69] : memref<9x1x256xbf16, #tpu.memory_space<vmem>>, vector<1x1x256xbf16>
    %126 = vector.shape_cast %125 : vector<1x1x256xbf16> to vector<1x256xbf16>
    %127 = vector.broadcast %126 : vector<1x256xbf16> to vector<32x256xbf16>
    %128 = arith.mulf %124, %127 : vector<32x256xbf16>
    %c192_70 = arith.constant 192 : index
    %c0_71 = arith.constant 0 : index
    %129 = vector.load %arg7[%c192_70, %c0_71] : memref<288x256xbf16, #tpu.memory_space<vmem>>, vector<32x256xbf16>
    tpu.vector_store %arg7[%c192_70, %c0_71], %128 {strides = array<i32>} : memref<288x256xbf16, #tpu.memory_space<vmem>>, vector<32x256xbf16>,
    %130 = vector.extract_strided_slice %80 {offsets = [0, 16], sizes = [32, 240], strides = [1, 1]} : vector<32x256xbf16> to vector<32x240xbf16>
    %131 = vector.extract_strided_slice %80 {offsets = [0, 0], sizes = [32, 16], strides = [1, 1]} : vector<32x256xbf16> to vector<32x16xbf16>
    %132 = tpu.concatenate %130, %131 in 1 : vector<32x240xbf16>, vector<32x16xbf16> -> vector<32x256xbf16>
    %c7_72 = arith.constant 7 : index
    %c0_73 = arith.constant 0 : index
    %c0_74 = arith.constant 0 : index
    %133 = vector.load %arg5[%c7_72, %c0_73, %c0_74] : memref<9x1x256xbf16, #tpu.memory_space<vmem>>, vector<1x1x256xbf16>
    %134 = vector.shape_cast %133 : vector<1x1x256xbf16> to vector<1x256xbf16>
    %135 = vector.broadcast %134 : vector<1x256xbf16> to vector<32x256xbf16>
    %136 = arith.mulf %132, %135 : vector<32x256xbf16>
    %c224_75 = arith.constant 224 : index
    %c0_76 = arith.constant 0 : index
    %137 = vector.load %arg7[%c224_75, %c0_76] : memref<288x256xbf16, #tpu.memory_space<vmem>>, vector<32x256xbf16>
    tpu.vector_store %arg7[%c224_75, %c0_76], %136 {strides = array<i32>} : memref<288x256xbf16, #tpu.memory_space<vmem>>, vector<32x256xbf16>,
    %138 = vector.extract_strided_slice %80 {offsets = [0, 17], sizes = [32, 239], strides = [1, 1]} : vector<32x256xbf16> to vector<32x239xbf16>
    %139 = vector.extract_strided_slice %80 {offsets = [0, 0], sizes = [32, 17], strides = [1, 1]} : vector<32x256xbf16> to vector<32x17xbf16>
    %140 = tpu.concatenate %138, %139 in 1 : vector<32x239xbf16>, vector<32x17xbf16> -> vector<32x256xbf16>
    %c8_77 = arith.constant 8 : index
    %c0_78 = arith.constant 0 : index
    %c0_79 = arith.constant 0 : index
    %141 = vector.load %arg5[%c8_77, %c0_78, %c0_79] : memref<9x1x256xbf16, #tpu.memory_space<vmem>>, vector<1x1x256xbf16>
    %142 = vector.shape_cast %141 : vector<1x1x256xbf16> to vector<1x256xbf16>
    %143 = vector.broadcast %142 : vector<1x256xbf16> to vector<32x256xbf16>
    %144 = arith.mulf %140, %143 : vector<32x256xbf16>
    %c256_80 = arith.constant 256 : index
    %c0_81 = arith.constant 0 : index
    %145 = vector.load %arg7[%c256_80, %c0_81] : memref<288x256xbf16, #tpu.memory_space<vmem>>, vector<32x256xbf16>
    tpu.vector_store %arg7[%c256_80, %c0_81], %144 {strides = array<i32>} : memref<288x256xbf16, #tpu.memory_space<vmem>>, vector<32x256xbf16>,
    %c1_82 = arith.constant 1 : index
    %c0_83 = arith.constant 0 : index
    %c0_84 = arith.constant 0 : index
    %146 = vector.load %arg2[%c1_82, %c0_83, %c0_84] : memref<5x32x288xbf16, #tpu.memory_space<vmem>>, vector<1x32x288xbf16>
    %147 = vector.shape_cast %146 : vector<1x32x288xbf16> to vector<32x288xbf16>
    %c0_85 = arith.constant 0 : index
    %c0_86 = arith.constant 0 : index
    %148 = vector.load %arg7[%c0_85, %c0_86] : memref<288x256xbf16, #tpu.memory_space<vmem>>, vector<288x256xbf16>
    %cst_87 = arith.constant dense<0.000000e+00> : vector<32x256xf32>
    %149 = tpu.matmul %147, %148, %cst_87 {dimension_numbers = #tpu.dot_dimension_numbers<[1], [0], [0], [1], [0, 0, 1, 1], [], []>} : vector<32x288xbf16>, vector<288x256xbf16>, vector<32x256xf32> -> vector<32x256xf32>
    %c1_88 = arith.constant 1 : index
    %c0_89 = arith.constant 0 : index
    %c0_90 = arith.constant 0 : index
    %150 = vector.load %arg3[%c1_88, %c0_89, %c0_90] : memref<5x32x1xf32, #tpu.memory_space<vmem>>, vector<1x32x1xf32>
    %151 = vector.shape_cast %150 : vector<1x32x1xf32> to vector<32x1xf32>
    %152 = vector.broadcast %151 : vector<32x1xf32> to vector<32x256xf32>
    %153 = arith.mulf %149, %152 : vector<32x256xf32>
    %c1_91 = arith.constant 1 : index
    %c0_92 = arith.constant 0 : index
    %c0_93 = arith.constant 0 : index
    %154 = vector.load %arg4[%c1_91, %c0_92, %c0_93] : memref<5x32x1xf32, #tpu.memory_space<vmem>>, vector<1x32x1xf32>
    %155 = vector.shape_cast %154 : vector<1x32x1xf32> to vector<32x1xf32>
    %156 = vector.broadcast %155 : vector<32x1xf32> to vector<32x256xf32>
    %157 = arith.addf %153, %156 : vector<32x256xf32>
    %cst_94 = arith.constant 0.000000e+00 : f32
    %158 = vector.broadcast %cst_94 : f32 to vector<32x256xf32>
    %159 = arith.cmpf oge, %157, %158 : vector<32x256xf32>
    %cst_95 = arith.constant 0.00999999977 : f32
    %160 = vector.broadcast %cst_95 : f32 to vector<32x256xf32>
    %161 = arith.mulf %160, %157 : vector<32x256xf32>
    %162 = arith.select %159, %157, %161 : vector<32x256xi1>, vector<32x256xf32>
    %163 = arith.addf %162, %79 : vector<32x256xf32>
    %164 = arith.truncf %163 : vector<32x256xf32> to vector<32x256xbf16>
    %165 = vector.extract_strided_slice %164 {offsets = [0, 239], sizes = [32, 17], strides = [1, 1]} : vector<32x256xbf16> to vector<32x17xbf16>
    %166 = vector.extract_strided_slice %164 {offsets = [0, 0], sizes = [32, 239], strides = [1, 1]} : vector<32x256xbf16> to vector<32x239xbf16>
    %167 = tpu.concatenate %165, %166 in 1 : vector<32x17xbf16>, vector<32x239xbf16> -> vector<32x256xbf16>
    %c0_96 = arith.constant 0 : index
    %c0_97 = arith.constant 0 : index
    %c0_98 = arith.constant 0 : index
    %168 = vector.load %arg5[%c0_96, %c0_97, %c0_98] : memref<9x1x256xbf16, #tpu.memory_space<vmem>>, vector<1x1x256xbf16>
    %169 = vector.shape_cast %168 : vector<1x1x256xbf16> to vector<1x256xbf16>
    %170 = vector.broadcast %169 : vector<1x256xbf16> to vector<32x256xbf16>
    %171 = arith.mulf %167, %170 : vector<32x256xbf16>
    %c0_99 = arith.constant 0 : index
    %c0_100 = arith.constant 0 : index
    %172 = vector.load %arg7[%c0_99, %c0_100] : memref<288x256xbf16, #tpu.memory_space<vmem>>, vector<32x256xbf16>
    tpu.vector_store %arg7[%c0_99, %c0_100], %171 {strides = array<i32>} : memref<288x256xbf16, #tpu.memory_space<vmem>>, vector<32x256xbf16>,
    %173 = vector.extract_strided_slice %164 {offsets = [0, 240], sizes = [32, 16], strides = [1, 1]} : vector<32x256xbf16> to vector<32x16xbf16>
    %174 = vector.extract_strided_slice %164 {offsets = [0, 0], sizes = [32, 240], strides = [1, 1]} : vector<32x256xbf16> to vector<32x240xbf16>
    %175 = tpu.concatenate %173, %174 in 1 : vector<32x16xbf16>, vector<32x240xbf16> -> vector<32x256xbf16>
    %c1_101 = arith.constant 1 : index
    %c0_102 = arith.constant 0 : index
    %c0_103 = arith.constant 0 : index
    %176 = vector.load %arg5[%c1_101, %c0_102, %c0_103] : memref<9x1x256xbf16, #tpu.memory_space<vmem>>, vector<1x1x256xbf16>
    %177 = vector.shape_cast %176 : vector<1x1x256xbf16> to vector<1x256xbf16>
    %178 = vector.broadcast %177 : vector<1x256xbf16> to vector<32x256xbf16>
    %179 = arith.mulf %175, %178 : vector<32x256xbf16>
    %c32_104 = arith.constant 32 : index
    %c0_105 = arith.constant 0 : index
    %180 = vector.load %arg7[%c32_104, %c0_105] : memref<288x256xbf16, #tpu.memory_space<vmem>>, vector<32x256xbf16>
    tpu.vector_store %arg7[%c32_104, %c0_105], %179 {strides = array<i32>} : memref<288x256xbf16, #tpu.memory_space<vmem>>, vector<32x256xbf16>,
    %181 = vector.extract_strided_slice %164 {offsets = [0, 241], sizes = [32, 15], strides = [1, 1]} : vector<32x256xbf16> to vector<32x15xbf16>
    %182 = vector.extract_strided_slice %164 {offsets = [0, 0], sizes = [32, 241], strides = [1, 1]} : vector<32x256xbf16> to vector<32x241xbf16>
    %183 = tpu.concatenate %181, %182 in 1 : vector<32x15xbf16>, vector<32x241xbf16> -> vector<32x256xbf16>
    %c2_106 = arith.constant 2 : index
    %c0_107 = arith.constant 0 : index
    %c0_108 = arith.constant 0 : index
    %184 = vector.load %arg5[%c2_106, %c0_107, %c0_108] : memref<9x1x256xbf16, #tpu.memory_space<vmem>>, vector<1x1x256xbf16>
    %185 = vector.shape_cast %184 : vector<1x1x256xbf16> to vector<1x256xbf16>
    %186 = vector.broadcast %185 : vector<1x256xbf16> to vector<32x256xbf16>
    %187 = arith.mulf %183, %186 : vector<32x256xbf16>
    %c64_109 = arith.constant 64 : index
    %c0_110 = arith.constant 0 : index
    %188 = vector.load %arg7[%c64_109, %c0_110] : memref<288x256xbf16, #tpu.memory_space<vmem>>, vector<32x256xbf16>
    tpu.vector_store %arg7[%c64_109, %c0_110], %187 {strides = array<i32>} : memref<288x256xbf16, #tpu.memory_space<vmem>>, vector<32x256xbf16>,
    %189 = vector.extract_strided_slice %164 {offsets = [0, 255], sizes = [32, 1], strides = [1, 1]} : vector<32x256xbf16> to vector<32x1xbf16>
    %190 = vector.extract_strided_slice %164 {offsets = [0, 0], sizes = [32, 255], strides = [1, 1]} : vector<32x256xbf16> to vector<32x255xbf16>
    %191 = tpu.concatenate %189, %190 in 1 : vector<32x1xbf16>, vector<32x255xbf16> -> vector<32x256xbf16>
    %c3_111 = arith.constant 3 : index
    %c0_112 = arith.constant 0 : index
    %c0_113 = arith.constant 0 : index
    %192 = vector.load %arg5[%c3_111, %c0_112, %c0_113] : memref<9x1x256xbf16, #tpu.memory_space<vmem>>, vector<1x1x256xbf16>
    %193 = vector.shape_cast %192 : vector<1x1x256xbf16> to vector<1x256xbf16>
    %194 = vector.broadcast %193 : vector<1x256xbf16> to vector<32x256xbf16>
    %195 = arith.mulf %191, %194 : vector<32x256xbf16>
    %c96_114 = arith.constant 96 : index
    %c0_115 = arith.constant 0 : index
    %196 = vector.load %arg7[%c96_114, %c0_115] : memref<288x256xbf16, #tpu.memory_space<vmem>>, vector<32x256xbf16>
    tpu.vector_store %arg7[%c96_114, %c0_115], %195 {strides = array<i32>} : memref<288x256xbf16, #tpu.memory_space<vmem>>, vector<32x256xbf16>,
    %c128_116 = arith.constant 128 : index
    %c0_117 = arith.constant 0 : index
    %197 = vector.load %arg7[%c128_116, %c0_117] : memref<288x256xbf16, #tpu.memory_space<vmem>>, vector<32x256xbf16>
    tpu.vector_store %arg7[%c128_116, %c0_117], %164 {strides = array<i32>} : memref<288x256xbf16, #tpu.memory_space<vmem>>, vector<32x256xbf16>,
    %198 = vector.extract_strided_slice %164 {offsets = [0, 1], sizes = [32, 255], strides = [1, 1]} : vector<32x256xbf16> to vector<32x255xbf16>
    %199 = vector.extract_strided_slice %164 {offsets = [0, 0], sizes = [32, 1], strides = [1, 1]} : vector<32x256xbf16> to vector<32x1xbf16>
    %200 = tpu.concatenate %198, %199 in 1 : vector<32x255xbf16>, vector<32x1xbf16> -> vector<32x256xbf16>
    %c5_118 = arith.constant 5 : index
    %c0_119 = arith.constant 0 : index
    %c0_120 = arith.constant 0 : index
    %201 = vector.load %arg5[%c5_118, %c0_119, %c0_120] : memref<9x1x256xbf16, #tpu.memory_space<vmem>>, vector<1x1x256xbf16>
    %202 = vector.shape_cast %201 : vector<1x1x256xbf16> to vector<1x256xbf16>
    %203 = vector.broadcast %202 : vector<1x256xbf16> to vector<32x256xbf16>
    %204 = arith.mulf %200, %203 : vector<32x256xbf16>
    %c160_121 = arith.constant 160 : index
    %c0_122 = arith.constant 0 : index
    %205 = vector.load %arg7[%c160_121, %c0_122] : memref<288x256xbf16, #tpu.memory_space<vmem>>, vector<32x256xbf16>
    tpu.vector_store %arg7[%c160_121, %c0_122], %204 {strides = array<i32>} : memref<288x256xbf16, #tpu.memory_space<vmem>>, vector<32x256xbf16>,
    %206 = vector.extract_strided_slice %164 {offsets = [0, 15], sizes = [32, 241], strides = [1, 1]} : vector<32x256xbf16> to vector<32x241xbf16>
    %207 = vector.extract_strided_slice %164 {offsets = [0, 0], sizes = [32, 15], strides = [1, 1]} : vector<32x256xbf16> to vector<32x15xbf16>
    %208 = tpu.concatenate %206, %207 in 1 : vector<32x241xbf16>, vector<32x15xbf16> -> vector<32x256xbf16>
    %c6_123 = arith.constant 6 : index
    %c0_124 = arith.constant 0 : index
    %c0_125 = arith.constant 0 : index
    %209 = vector.load %arg5[%c6_123, %c0_124, %c0_125] : memref<9x1x256xbf16, #tpu.memory_space<vmem>>, vector<1x1x256xbf16>
    %210 = vector.shape_cast %209 : vector<1x1x256xbf16> to vector<1x256xbf16>
    %211 = vector.broadcast %210 : vector<1x256xbf16> to vector<32x256xbf16>
    %212 = arith.mulf %208, %211 : vector<32x256xbf16>
    %c192_126 = arith.constant 192 : index
    %c0_127 = arith.constant 0 : index
    %213 = vector.load %arg7[%c192_126, %c0_127] : memref<288x256xbf16, #tpu.memory_space<vmem>>, vector<32x256xbf16>
    tpu.vector_store %arg7[%c192_126, %c0_127], %212 {strides = array<i32>} : memref<288x256xbf16, #tpu.memory_space<vmem>>, vector<32x256xbf16>,
    %214 = vector.extract_strided_slice %164 {offsets = [0, 16], sizes = [32, 240], strides = [1, 1]} : vector<32x256xbf16> to vector<32x240xbf16>
    %215 = vector.extract_strided_slice %164 {offsets = [0, 0], sizes = [32, 16], strides = [1, 1]} : vector<32x256xbf16> to vector<32x16xbf16>
    %216 = tpu.concatenate %214, %215 in 1 : vector<32x240xbf16>, vector<32x16xbf16> -> vector<32x256xbf16>
    %c7_128 = arith.constant 7 : index
    %c0_129 = arith.constant 0 : index
    %c0_130 = arith.constant 0 : index
    %217 = vector.load %arg5[%c7_128, %c0_129, %c0_130] : memref<9x1x256xbf16, #tpu.memory_space<vmem>>, vector<1x1x256xbf16>
    %218 = vector.shape_cast %217 : vector<1x1x256xbf16> to vector<1x256xbf16>
    %219 = vector.broadcast %218 : vector<1x256xbf16> to vector<32x256xbf16>
    %220 = arith.mulf %216, %219 : vector<32x256xbf16>
    %c224_131 = arith.constant 224 : index
    %c0_132 = arith.constant 0 : index
    %221 = vector.load %arg7[%c224_131, %c0_132] : memref<288x256xbf16, #tpu.memory_space<vmem>>, vector<32x256xbf16>
    tpu.vector_store %arg7[%c224_131, %c0_132], %220 {strides = array<i32>} : memref<288x256xbf16, #tpu.memory_space<vmem>>, vector<32x256xbf16>,
    %222 = vector.extract_strided_slice %164 {offsets = [0, 17], sizes = [32, 239], strides = [1, 1]} : vector<32x256xbf16> to vector<32x239xbf16>
    %223 = vector.extract_strided_slice %164 {offsets = [0, 0], sizes = [32, 17], strides = [1, 1]} : vector<32x256xbf16> to vector<32x17xbf16>
    %224 = tpu.concatenate %222, %223 in 1 : vector<32x239xbf16>, vector<32x17xbf16> -> vector<32x256xbf16>
    %c8_133 = arith.constant 8 : index
    %c0_134 = arith.constant 0 : index
    %c0_135 = arith.constant 0 : index
    %225 = vector.load %arg5[%c8_133, %c0_134, %c0_135] : memref<9x1x256xbf16, #tpu.memory_space<vmem>>, vector<1x1x256xbf16>
    %226 = vector.shape_cast %225 : vector<1x1x256xbf16> to vector<1x256xbf16>
    %227 = vector.broadcast %226 : vector<1x256xbf16> to vector<32x256xbf16>
    %228 = arith.mulf %224, %227 : vector<32x256xbf16>
    %c256_136 = arith.constant 256 : index
    %c0_137 = arith.constant 0 : index
    %229 = vector.load %arg7[%c256_136, %c0_137] : memref<288x256xbf16, #tpu.memory_space<vmem>>, vector<32x256xbf16>
    tpu.vector_store %arg7[%c256_136, %c0_137], %228 {strides = array<i32>} : memref<288x256xbf16, #tpu.memory_space<vmem>>, vector<32x256xbf16>,
    %c2_138 = arith.constant 2 : index
    %c0_139 = arith.constant 0 : index
    %c0_140 = arith.constant 0 : index
    %230 = vector.load %arg2[%c2_138, %c0_139, %c0_140] : memref<5x32x288xbf16, #tpu.memory_space<vmem>>, vector<1x32x288xbf16>
    %231 = vector.shape_cast %230 : vector<1x32x288xbf16> to vector<32x288xbf16>
    %c0_141 = arith.constant 0 : index
    %c0_142 = arith.constant 0 : index
    %232 = vector.load %arg7[%c0_141, %c0_142] : memref<288x256xbf16, #tpu.memory_space<vmem>>, vector<288x256xbf16>
    %cst_143 = arith.constant dense<0.000000e+00> : vector<32x256xf32>
    %233 = tpu.matmul %231, %232, %cst_143 {dimension_numbers = #tpu.dot_dimension_numbers<[1], [0], [0], [1], [0, 0, 1, 1], [], []>} : vector<32x288xbf16>, vector<288x256xbf16>, vector<32x256xf32> -> vector<32x256xf32>
    %c2_144 = arith.constant 2 : index
    %c0_145 = arith.constant 0 : index
    %c0_146 = arith.constant 0 : index
    %234 = vector.load %arg3[%c2_144, %c0_145, %c0_146] : memref<5x32x1xf32, #tpu.memory_space<vmem>>, vector<1x32x1xf32>
    %235 = vector.shape_cast %234 : vector<1x32x1xf32> to vector<32x1xf32>
    %236 = vector.broadcast %235 : vector<32x1xf32> to vector<32x256xf32>
    %237 = arith.mulf %233, %236 : vector<32x256xf32>
    %c2_147 = arith.constant 2 : index
    %c0_148 = arith.constant 0 : index
    %c0_149 = arith.constant 0 : index
    %238 = vector.load %arg4[%c2_147, %c0_148, %c0_149] : memref<5x32x1xf32, #tpu.memory_space<vmem>>, vector<1x32x1xf32>
    %239 = vector.shape_cast %238 : vector<1x32x1xf32> to vector<32x1xf32>
    %240 = vector.broadcast %239 : vector<32x1xf32> to vector<32x256xf32>
    %241 = arith.addf %237, %240 : vector<32x256xf32>
    %cst_150 = arith.constant 0.000000e+00 : f32
    %242 = vector.broadcast %cst_150 : f32 to vector<32x256xf32>
    %243 = arith.cmpf oge, %241, %242 : vector<32x256xf32>
    %cst_151 = arith.constant 0.00999999977 : f32
    %244 = vector.broadcast %cst_151 : f32 to vector<32x256xf32>
    %245 = arith.mulf %244, %241 : vector<32x256xf32>
    %246 = arith.select %243, %241, %245 : vector<32x256xi1>, vector<32x256xf32>
    %247 = arith.addf %246, %163 : vector<32x256xf32>
    %248 = arith.truncf %247 : vector<32x256xf32> to vector<32x256xbf16>
    %249 = vector.extract_strided_slice %248 {offsets = [0, 239], sizes = [32, 17], strides = [1, 1]} : vector<32x256xbf16> to vector<32x17xbf16>
    %250 = vector.extract_strided_slice %248 {offsets = [0, 0], sizes = [32, 239], strides = [1, 1]} : vector<32x256xbf16> to vector<32x239xbf16>
    %251 = tpu.concatenate %249, %250 in 1 : vector<32x17xbf16>, vector<32x239xbf16> -> vector<32x256xbf16>
    %c0_152 = arith.constant 0 : index
    %c0_153 = arith.constant 0 : index
    %c0_154 = arith.constant 0 : index
    %252 = vector.load %arg5[%c0_152, %c0_153, %c0_154] : memref<9x1x256xbf16, #tpu.memory_space<vmem>>, vector<1x1x256xbf16>
    %253 = vector.shape_cast %252 : vector<1x1x256xbf16> to vector<1x256xbf16>
    %254 = vector.broadcast %253 : vector<1x256xbf16> to vector<32x256xbf16>
    %255 = arith.mulf %251, %254 : vector<32x256xbf16>
    %c0_155 = arith.constant 0 : index
    %c0_156 = arith.constant 0 : index
    %256 = vector.load %arg7[%c0_155, %c0_156] : memref<288x256xbf16, #tpu.memory_space<vmem>>, vector<32x256xbf16>
    tpu.vector_store %arg7[%c0_155, %c0_156], %255 {strides = array<i32>} : memref<288x256xbf16, #tpu.memory_space<vmem>>, vector<32x256xbf16>,
    %257 = vector.extract_strided_slice %248 {offsets = [0, 240], sizes = [32, 16], strides = [1, 1]} : vector<32x256xbf16> to vector<32x16xbf16>
    %258 = vector.extract_strided_slice %248 {offsets = [0, 0], sizes = [32, 240], strides = [1, 1]} : vector<32x256xbf16> to vector<32x240xbf16>
    %259 = tpu.concatenate %257, %258 in 1 : vector<32x16xbf16>, vector<32x240xbf16> -> vector<32x256xbf16>
    %c1_157 = arith.constant 1 : index
    %c0_158 = arith.constant 0 : index
    %c0_159 = arith.constant 0 : index
    %260 = vector.load %arg5[%c1_157, %c0_158, %c0_159] : memref<9x1x256xbf16, #tpu.memory_space<vmem>>, vector<1x1x256xbf16>
    %261 = vector.shape_cast %260 : vector<1x1x256xbf16> to vector<1x256xbf16>
    %262 = vector.broadcast %261 : vector<1x256xbf16> to vector<32x256xbf16>
    %263 = arith.mulf %259, %262 : vector<32x256xbf16>
    %c32_160 = arith.constant 32 : index
    %c0_161 = arith.constant 0 : index
    %264 = vector.load %arg7[%c32_160, %c0_161] : memref<288x256xbf16, #tpu.memory_space<vmem>>, vector<32x256xbf16>
    tpu.vector_store %arg7[%c32_160, %c0_161], %263 {strides = array<i32>} : memref<288x256xbf16, #tpu.memory_space<vmem>>, vector<32x256xbf16>,
    %265 = vector.extract_strided_slice %248 {offsets = [0, 241], sizes = [32, 15], strides = [1, 1]} : vector<32x256xbf16> to vector<32x15xbf16>
    %266 = vector.extract_strided_slice %248 {offsets = [0, 0], sizes = [32, 241], strides = [1, 1]} : vector<32x256xbf16> to vector<32x241xbf16>
    %267 = tpu.concatenate %265, %266 in 1 : vector<32x15xbf16>, vector<32x241xbf16> -> vector<32x256xbf16>
    %c2_162 = arith.constant 2 : index
    %c0_163 = arith.constant 0 : index
    %c0_164 = arith.constant 0 : index
    %268 = vector.load %arg5[%c2_162, %c0_163, %c0_164] : memref<9x1x256xbf16, #tpu.memory_space<vmem>>, vector<1x1x256xbf16>
    %269 = vector.shape_cast %268 : vector<1x1x256xbf16> to vector<1x256xbf16>
    %270 = vector.broadcast %269 : vector<1x256xbf16> to vector<32x256xbf16>
    %271 = arith.mulf %267, %270 : vector<32x256xbf16>
    %c64_165 = arith.constant 64 : index
    %c0_166 = arith.constant 0 : index
    %272 = vector.load %arg7[%c64_165, %c0_166] : memref<288x256xbf16, #tpu.memory_space<vmem>>, vector<32x256xbf16>
    tpu.vector_store %arg7[%c64_165, %c0_166], %271 {strides = array<i32>} : memref<288x256xbf16, #tpu.memory_space<vmem>>, vector<32x256xbf16>,
    %273 = vector.extract_strided_slice %248 {offsets = [0, 255], sizes = [32, 1], strides = [1, 1]} : vector<32x256xbf16> to vector<32x1xbf16>
    %274 = vector.extract_strided_slice %248 {offsets = [0, 0], sizes = [32, 255], strides = [1, 1]} : vector<32x256xbf16> to vector<32x255xbf16>
    %275 = tpu.concatenate %273, %274 in 1 : vector<32x1xbf16>, vector<32x255xbf16> -> vector<32x256xbf16>
    %c3_167 = arith.constant 3 : index
    %c0_168 = arith.constant 0 : index
    %c0_169 = arith.constant 0 : index
    %276 = vector.load %arg5[%c3_167, %c0_168, %c0_169] : memref<9x1x256xbf16, #tpu.memory_space<vmem>>, vector<1x1x256xbf16>
    %277 = vector.shape_cast %276 : vector<1x1x256xbf16> to vector<1x256xbf16>
    %278 = vector.broadcast %277 : vector<1x256xbf16> to vector<32x256xbf16>
    %279 = arith.mulf %275, %278 : vector<32x256xbf16>
    %c96_170 = arith.constant 96 : index
    %c0_171 = arith.constant 0 : index
    %280 = vector.load %arg7[%c96_170, %c0_171] : memref<288x256xbf16, #tpu.memory_space<vmem>>, vector<32x256xbf16>
    tpu.vector_store %arg7[%c96_170, %c0_171], %279 {strides = array<i32>} : memref<288x256xbf16, #tpu.memory_space<vmem>>, vector<32x256xbf16>,
    %c128_172 = arith.constant 128 : index
    %c0_173 = arith.constant 0 : index
    %281 = vector.load %arg7[%c128_172, %c0_173] : memref<288x256xbf16, #tpu.memory_space<vmem>>, vector<32x256xbf16>
    tpu.vector_store %arg7[%c128_172, %c0_173], %248 {strides = array<i32>} : memref<288x256xbf16, #tpu.memory_space<vmem>>, vector<32x256xbf16>,
    %282 = vector.extract_strided_slice %248 {offsets = [0, 1], sizes = [32, 255], strides = [1, 1]} : vector<32x256xbf16> to vector<32x255xbf16>
    %283 = vector.extract_strided_slice %248 {offsets = [0, 0], sizes = [32, 1], strides = [1, 1]} : vector<32x256xbf16> to vector<32x1xbf16>
    %284 = tpu.concatenate %282, %283 in 1 : vector<32x255xbf16>, vector<32x1xbf16> -> vector<32x256xbf16>
    %c5_174 = arith.constant 5 : index
    %c0_175 = arith.constant 0 : index
    %c0_176 = arith.constant 0 : index
    %285 = vector.load %arg5[%c5_174, %c0_175, %c0_176] : memref<9x1x256xbf16, #tpu.memory_space<vmem>>, vector<1x1x256xbf16>
    %286 = vector.shape_cast %285 : vector<1x1x256xbf16> to vector<1x256xbf16>
    %287 = vector.broadcast %286 : vector<1x256xbf16> to vector<32x256xbf16>
    %288 = arith.mulf %284, %287 : vector<32x256xbf16>
    %c160_177 = arith.constant 160 : index
    %c0_178 = arith.constant 0 : index
    %289 = vector.load %arg7[%c160_177, %c0_178] : memref<288x256xbf16, #tpu.memory_space<vmem>>, vector<32x256xbf16>
    tpu.vector_store %arg7[%c160_177, %c0_178], %288 {strides = array<i32>} : memref<288x256xbf16, #tpu.memory_space<vmem>>, vector<32x256xbf16>,
    %290 = vector.extract_strided_slice %248 {offsets = [0, 15], sizes = [32, 241], strides = [1, 1]} : vector<32x256xbf16> to vector<32x241xbf16>
    %291 = vector.extract_strided_slice %248 {offsets = [0, 0], sizes = [32, 15], strides = [1, 1]} : vector<32x256xbf16> to vector<32x15xbf16>
    %292 = tpu.concatenate %290, %291 in 1 : vector<32x241xbf16>, vector<32x15xbf16> -> vector<32x256xbf16>
    %c6_179 = arith.constant 6 : index
    %c0_180 = arith.constant 0 : index
    %c0_181 = arith.constant 0 : index
    %293 = vector.load %arg5[%c6_179, %c0_180, %c0_181] : memref<9x1x256xbf16, #tpu.memory_space<vmem>>, vector<1x1x256xbf16>
    %294 = vector.shape_cast %293 : vector<1x1x256xbf16> to vector<1x256xbf16>
    %295 = vector.broadcast %294 : vector<1x256xbf16> to vector<32x256xbf16>
    %296 = arith.mulf %292, %295 : vector<32x256xbf16>
    %c192_182 = arith.constant 192 : index
    %c0_183 = arith.constant 0 : index
    %297 = vector.load %arg7[%c192_182, %c0_183] : memref<288x256xbf16, #tpu.memory_space<vmem>>, vector<32x256xbf16>
    tpu.vector_store %arg7[%c192_182, %c0_183], %296 {strides = array<i32>} : memref<288x256xbf16, #tpu.memory_space<vmem>>, vector<32x256xbf16>,
    %298 = vector.extract_strided_slice %248 {offsets = [0, 16], sizes = [32, 240], strides = [1, 1]} : vector<32x256xbf16> to vector<32x240xbf16>
    %299 = vector.extract_strided_slice %248 {offsets = [0, 0], sizes = [32, 16], strides = [1, 1]} : vector<32x256xbf16> to vector<32x16xbf16>
    %300 = tpu.concatenate %298, %299 in 1 : vector<32x240xbf16>, vector<32x16xbf16> -> vector<32x256xbf16>
    %c7_184 = arith.constant 7 : index
    %c0_185 = arith.constant 0 : index
    %c0_186 = arith.constant 0 : index
    %301 = vector.load %arg5[%c7_184, %c0_185, %c0_186] : memref<9x1x256xbf16, #tpu.memory_space<vmem>>, vector<1x1x256xbf16>
    %302 = vector.shape_cast %301 : vector<1x1x256xbf16> to vector<1x256xbf16>
    %303 = vector.broadcast %302 : vector<1x256xbf16> to vector<32x256xbf16>
    %304 = arith.mulf %300, %303 : vector<32x256xbf16>
    %c224_187 = arith.constant 224 : index
    %c0_188 = arith.constant 0 : index
    %305 = vector.load %arg7[%c224_187, %c0_188] : memref<288x256xbf16, #tpu.memory_space<vmem>>, vector<32x256xbf16>
    tpu.vector_store %arg7[%c224_187, %c0_188], %304 {strides = array<i32>} : memref<288x256xbf16, #tpu.memory_space<vmem>>, vector<32x256xbf16>,
    %306 = vector.extract_strided_slice %248 {offsets = [0, 17], sizes = [32, 239], strides = [1, 1]} : vector<32x256xbf16> to vector<32x239xbf16>
    %307 = vector.extract_strided_slice %248 {offsets = [0, 0], sizes = [32, 17], strides = [1, 1]} : vector<32x256xbf16> to vector<32x17xbf16>
    %308 = tpu.concatenate %306, %307 in 1 : vector<32x239xbf16>, vector<32x17xbf16> -> vector<32x256xbf16>
    %c8_189 = arith.constant 8 : index
    %c0_190 = arith.constant 0 : index
    %c0_191 = arith.constant 0 : index
    %309 = vector.load %arg5[%c8_189, %c0_190, %c0_191] : memref<9x1x256xbf16, #tpu.memory_space<vmem>>, vector<1x1x256xbf16>
    %310 = vector.shape_cast %309 : vector<1x1x256xbf16> to vector<1x256xbf16>
    %311 = vector.broadcast %310 : vector<1x256xbf16> to vector<32x256xbf16>
    %312 = arith.mulf %308, %311 : vector<32x256xbf16>
    %c256_192 = arith.constant 256 : index
    %c0_193 = arith.constant 0 : index
    %313 = vector.load %arg7[%c256_192, %c0_193] : memref<288x256xbf16, #tpu.memory_space<vmem>>, vector<32x256xbf16>
    tpu.vector_store %arg7[%c256_192, %c0_193], %312 {strides = array<i32>} : memref<288x256xbf16, #tpu.memory_space<vmem>>, vector<32x256xbf16>,
    %c3_194 = arith.constant 3 : index
    %c0_195 = arith.constant 0 : index
    %c0_196 = arith.constant 0 : index
    %314 = vector.load %arg2[%c3_194, %c0_195, %c0_196] : memref<5x32x288xbf16, #tpu.memory_space<vmem>>, vector<1x32x288xbf16>
    %315 = vector.shape_cast %314 : vector<1x32x288xbf16> to vector<32x288xbf16>
    %c0_197 = arith.constant 0 : index
    %c0_198 = arith.constant 0 : index
    %316 = vector.load %arg7[%c0_197, %c0_198] : memref<288x256xbf16, #tpu.memory_space<vmem>>, vector<288x256xbf16>
    %cst_199 = arith.constant dense<0.000000e+00> : vector<32x256xf32>
    %317 = tpu.matmul %315, %316, %cst_199 {dimension_numbers = #tpu.dot_dimension_numbers<[1], [0], [0], [1], [0, 0, 1, 1], [], []>} : vector<32x288xbf16>, vector<288x256xbf16>, vector<32x256xf32> -> vector<32x256xf32>
    %c3_200 = arith.constant 3 : index
    %c0_201 = arith.constant 0 : index
    %c0_202 = arith.constant 0 : index
    %318 = vector.load %arg3[%c3_200, %c0_201, %c0_202] : memref<5x32x1xf32, #tpu.memory_space<vmem>>, vector<1x32x1xf32>
    %319 = vector.shape_cast %318 : vector<1x32x1xf32> to vector<32x1xf32>
    %320 = vector.broadcast %319 : vector<32x1xf32> to vector<32x256xf32>
    %321 = arith.mulf %317, %320 : vector<32x256xf32>
    %c3_203 = arith.constant 3 : index
    %c0_204 = arith.constant 0 : index
    %c0_205 = arith.constant 0 : index
    %322 = vector.load %arg4[%c3_203, %c0_204, %c0_205] : memref<5x32x1xf32, #tpu.memory_space<vmem>>, vector<1x32x1xf32>
    %323 = vector.shape_cast %322 : vector<1x32x1xf32> to vector<32x1xf32>
    %324 = vector.broadcast %323 : vector<32x1xf32> to vector<32x256xf32>
    %325 = arith.addf %321, %324 : vector<32x256xf32>
    %cst_206 = arith.constant 0.000000e+00 : f32
    %326 = vector.broadcast %cst_206 : f32 to vector<32x256xf32>
    %327 = arith.cmpf oge, %325, %326 : vector<32x256xf32>
    %cst_207 = arith.constant 0.00999999977 : f32
    %328 = vector.broadcast %cst_207 : f32 to vector<32x256xf32>
    %329 = arith.mulf %328, %325 : vector<32x256xf32>
    %330 = arith.select %327, %325, %329 : vector<32x256xi1>, vector<32x256xf32>
    %331 = arith.addf %330, %247 : vector<32x256xf32>
    %332 = arith.truncf %331 : vector<32x256xf32> to vector<32x256xbf16>
    %333 = vector.extract_strided_slice %332 {offsets = [0, 239], sizes = [32, 17], strides = [1, 1]} : vector<32x256xbf16> to vector<32x17xbf16>
    %334 = vector.extract_strided_slice %332 {offsets = [0, 0], sizes = [32, 239], strides = [1, 1]} : vector<32x256xbf16> to vector<32x239xbf16>
    %335 = tpu.concatenate %333, %334 in 1 : vector<32x17xbf16>, vector<32x239xbf16> -> vector<32x256xbf16>
    %c0_208 = arith.constant 0 : index
    %c0_209 = arith.constant 0 : index
    %c0_210 = arith.constant 0 : index
    %336 = vector.load %arg5[%c0_208, %c0_209, %c0_210] : memref<9x1x256xbf16, #tpu.memory_space<vmem>>, vector<1x1x256xbf16>
    %337 = vector.shape_cast %336 : vector<1x1x256xbf16> to vector<1x256xbf16>
    %338 = vector.broadcast %337 : vector<1x256xbf16> to vector<32x256xbf16>
    %339 = arith.mulf %335, %338 : vector<32x256xbf16>
    %c0_211 = arith.constant 0 : index
    %c0_212 = arith.constant 0 : index
    %340 = vector.load %arg7[%c0_211, %c0_212] : memref<288x256xbf16, #tpu.memory_space<vmem>>, vector<32x256xbf16>
    tpu.vector_store %arg7[%c0_211, %c0_212], %339 {strides = array<i32>} : memref<288x256xbf16, #tpu.memory_space<vmem>>, vector<32x256xbf16>,
    %341 = vector.extract_strided_slice %332 {offsets = [0, 240], sizes = [32, 16], strides = [1, 1]} : vector<32x256xbf16> to vector<32x16xbf16>
    %342 = vector.extract_strided_slice %332 {offsets = [0, 0], sizes = [32, 240], strides = [1, 1]} : vector<32x256xbf16> to vector<32x240xbf16>
    %343 = tpu.concatenate %341, %342 in 1 : vector<32x16xbf16>, vector<32x240xbf16> -> vector<32x256xbf16>
    %c1_213 = arith.constant 1 : index
    %c0_214 = arith.constant 0 : index
    %c0_215 = arith.constant 0 : index
    %344 = vector.load %arg5[%c1_213, %c0_214, %c0_215] : memref<9x1x256xbf16, #tpu.memory_space<vmem>>, vector<1x1x256xbf16>
    %345 = vector.shape_cast %344 : vector<1x1x256xbf16> to vector<1x256xbf16>
    %346 = vector.broadcast %345 : vector<1x256xbf16> to vector<32x256xbf16>
    %347 = arith.mulf %343, %346 : vector<32x256xbf16>
    %c32_216 = arith.constant 32 : index
    %c0_217 = arith.constant 0 : index
    %348 = vector.load %arg7[%c32_216, %c0_217] : memref<288x256xbf16, #tpu.memory_space<vmem>>, vector<32x256xbf16>
    tpu.vector_store %arg7[%c32_216, %c0_217], %347 {strides = array<i32>} : memref<288x256xbf16, #tpu.memory_space<vmem>>, vector<32x256xbf16>,
    %349 = vector.extract_strided_slice %332 {offsets = [0, 241], sizes = [32, 15], strides = [1, 1]} : vector<32x256xbf16> to vector<32x15xbf16>
    %350 = vector.extract_strided_slice %332 {offsets = [0, 0], sizes = [32, 241], strides = [1, 1]} : vector<32x256xbf16> to vector<32x241xbf16>
    %351 = tpu.concatenate %349, %350 in 1 : vector<32x15xbf16>, vector<32x241xbf16> -> vector<32x256xbf16>
    %c2_218 = arith.constant 2 : index
    %c0_219 = arith.constant 0 : index
    %c0_220 = arith.constant 0 : index
    %352 = vector.load %arg5[%c2_218, %c0_219, %c0_220] : memref<9x1x256xbf16, #tpu.memory_space<vmem>>, vector<1x1x256xbf16>
    %353 = vector.shape_cast %352 : vector<1x1x256xbf16> to vector<1x256xbf16>
    %354 = vector.broadcast %353 : vector<1x256xbf16> to vector<32x256xbf16>
    %355 = arith.mulf %351, %354 : vector<32x256xbf16>
    %c64_221 = arith.constant 64 : index
    %c0_222 = arith.constant 0 : index
    %356 = vector.load %arg7[%c64_221, %c0_222] : memref<288x256xbf16, #tpu.memory_space<vmem>>, vector<32x256xbf16>
    tpu.vector_store %arg7[%c64_221, %c0_222], %355 {strides = array<i32>} : memref<288x256xbf16, #tpu.memory_space<vmem>>, vector<32x256xbf16>,
    %357 = vector.extract_strided_slice %332 {offsets = [0, 255], sizes = [32, 1], strides = [1, 1]} : vector<32x256xbf16> to vector<32x1xbf16>
    %358 = vector.extract_strided_slice %332 {offsets = [0, 0], sizes = [32, 255], strides = [1, 1]} : vector<32x256xbf16> to vector<32x255xbf16>
    %359 = tpu.concatenate %357, %358 in 1 : vector<32x1xbf16>, vector<32x255xbf16> -> vector<32x256xbf16>
    %c3_223 = arith.constant 3 : index
    %c0_224 = arith.constant 0 : index
    %c0_225 = arith.constant 0 : index
    %360 = vector.load %arg5[%c3_223, %c0_224, %c0_225] : memref<9x1x256xbf16, #tpu.memory_space<vmem>>, vector<1x1x256xbf16>
    %361 = vector.shape_cast %360 : vector<1x1x256xbf16> to vector<1x256xbf16>
    %362 = vector.broadcast %361 : vector<1x256xbf16> to vector<32x256xbf16>
    %363 = arith.mulf %359, %362 : vector<32x256xbf16>
    %c96_226 = arith.constant 96 : index
    %c0_227 = arith.constant 0 : index
    %364 = vector.load %arg7[%c96_226, %c0_227] : memref<288x256xbf16, #tpu.memory_space<vmem>>, vector<32x256xbf16>
    tpu.vector_store %arg7[%c96_226, %c0_227], %363 {strides = array<i32>} : memref<288x256xbf16, #tpu.memory_space<vmem>>, vector<32x256xbf16>,
    %c128_228 = arith.constant 128 : index
    %c0_229 = arith.constant 0 : index
    %365 = vector.load %arg7[%c128_228, %c0_229] : memref<288x256xbf16, #tpu.memory_space<vmem>>, vector<32x256xbf16>
    tpu.vector_store %arg7[%c128_228, %c0_229], %332 {strides = array<i32>} : memref<288x256xbf16, #tpu.memory_space<vmem>>, vector<32x256xbf16>,
    %366 = vector.extract_strided_slice %332 {offsets = [0, 1], sizes = [32, 255], strides = [1, 1]} : vector<32x256xbf16> to vector<32x255xbf16>
    %367 = vector.extract_strided_slice %332 {offsets = [0, 0], sizes = [32, 1], strides = [1, 1]} : vector<32x256xbf16> to vector<32x1xbf16>
    %368 = tpu.concatenate %366, %367 in 1 : vector<32x255xbf16>, vector<32x1xbf16> -> vector<32x256xbf16>
    %c5_230 = arith.constant 5 : index
    %c0_231 = arith.constant 0 : index
    %c0_232 = arith.constant 0 : index
    %369 = vector.load %arg5[%c5_230, %c0_231, %c0_232] : memref<9x1x256xbf16, #tpu.memory_space<vmem>>, vector<1x1x256xbf16>
    %370 = vector.shape_cast %369 : vector<1x1x256xbf16> to vector<1x256xbf16>
    %371 = vector.broadcast %370 : vector<1x256xbf16> to vector<32x256xbf16>
    %372 = arith.mulf %368, %371 : vector<32x256xbf16>
    %c160_233 = arith.constant 160 : index
    %c0_234 = arith.constant 0 : index
    %373 = vector.load %arg7[%c160_233, %c0_234] : memref<288x256xbf16, #tpu.memory_space<vmem>>, vector<32x256xbf16>
    tpu.vector_store %arg7[%c160_233, %c0_234], %372 {strides = array<i32>} : memref<288x256xbf16, #tpu.memory_space<vmem>>, vector<32x256xbf16>,
    %374 = vector.extract_strided_slice %332 {offsets = [0, 15], sizes = [32, 241], strides = [1, 1]} : vector<32x256xbf16> to vector<32x241xbf16>
    %375 = vector.extract_strided_slice %332 {offsets = [0, 0], sizes = [32, 15], strides = [1, 1]} : vector<32x256xbf16> to vector<32x15xbf16>
    %376 = tpu.concatenate %374, %375 in 1 : vector<32x241xbf16>, vector<32x15xbf16> -> vector<32x256xbf16>
    %c6_235 = arith.constant 6 : index
    %c0_236 = arith.constant 0 : index
    %c0_237 = arith.constant 0 : index
    %377 = vector.load %arg5[%c6_235, %c0_236, %c0_237] : memref<9x1x256xbf16, #tpu.memory_space<vmem>>, vector<1x1x256xbf16>
    %378 = vector.shape_cast %377 : vector<1x1x256xbf16> to vector<1x256xbf16>
    %379 = vector.broadcast %378 : vector<1x256xbf16> to vector<32x256xbf16>
    %380 = arith.mulf %376, %379 : vector<32x256xbf16>
    %c192_238 = arith.constant 192 : index
    %c0_239 = arith.constant 0 : index
    %381 = vector.load %arg7[%c192_238, %c0_239] : memref<288x256xbf16, #tpu.memory_space<vmem>>, vector<32x256xbf16>
    tpu.vector_store %arg7[%c192_238, %c0_239], %380 {strides = array<i32>} : memref<288x256xbf16, #tpu.memory_space<vmem>>, vector<32x256xbf16>,
    %382 = vector.extract_strided_slice %332 {offsets = [0, 16], sizes = [32, 240], strides = [1, 1]} : vector<32x256xbf16> to vector<32x240xbf16>
    %383 = vector.extract_strided_slice %332 {offsets = [0, 0], sizes = [32, 16], strides = [1, 1]} : vector<32x256xbf16> to vector<32x16xbf16>
    %384 = tpu.concatenate %382, %383 in 1 : vector<32x240xbf16>, vector<32x16xbf16> -> vector<32x256xbf16>
    %c7_240 = arith.constant 7 : index
    %c0_241 = arith.constant 0 : index
    %c0_242 = arith.constant 0 : index
    %385 = vector.load %arg5[%c7_240, %c0_241, %c0_242] : memref<9x1x256xbf16, #tpu.memory_space<vmem>>, vector<1x1x256xbf16>
    %386 = vector.shape_cast %385 : vector<1x1x256xbf16> to vector<1x256xbf16>
    %387 = vector.broadcast %386 : vector<1x256xbf16> to vector<32x256xbf16>
    %388 = arith.mulf %384, %387 : vector<32x256xbf16>
    %c224_243 = arith.constant 224 : index
    %c0_244 = arith.constant 0 : index
    %389 = vector.load %arg7[%c224_243, %c0_244] : memref<288x256xbf16, #tpu.memory_space<vmem>>, vector<32x256xbf16>
    tpu.vector_store %arg7[%c224_243, %c0_244], %388 {strides = array<i32>} : memref<288x256xbf16, #tpu.memory_space<vmem>>, vector<32x256xbf16>,
    %390 = vector.extract_strided_slice %332 {offsets = [0, 17], sizes = [32, 239], strides = [1, 1]} : vector<32x256xbf16> to vector<32x239xbf16>
    %391 = vector.extract_strided_slice %332 {offsets = [0, 0], sizes = [32, 17], strides = [1, 1]} : vector<32x256xbf16> to vector<32x17xbf16>
    %392 = tpu.concatenate %390, %391 in 1 : vector<32x239xbf16>, vector<32x17xbf16> -> vector<32x256xbf16>
    %c8_245 = arith.constant 8 : index
    %c0_246 = arith.constant 0 : index
    %c0_247 = arith.constant 0 : index
    %393 = vector.load %arg5[%c8_245, %c0_246, %c0_247] : memref<9x1x256xbf16, #tpu.memory_space<vmem>>, vector<1x1x256xbf16>
    %394 = vector.shape_cast %393 : vector<1x1x256xbf16> to vector<1x256xbf16>
    %395 = vector.broadcast %394 : vector<1x256xbf16> to vector<32x256xbf16>
    %396 = arith.mulf %392, %395 : vector<32x256xbf16>
    %c256_248 = arith.constant 256 : index
    %c0_249 = arith.constant 0 : index
    %397 = vector.load %arg7[%c256_248, %c0_249] : memref<288x256xbf16, #tpu.memory_space<vmem>>, vector<32x256xbf16>
    tpu.vector_store %arg7[%c256_248, %c0_249], %396 {strides = array<i32>} : memref<288x256xbf16, #tpu.memory_space<vmem>>, vector<32x256xbf16>,
    %c4 = arith.constant 4 : index
    %c0_250 = arith.constant 0 : index
    %c0_251 = arith.constant 0 : index
    %398 = vector.load %arg2[%c4, %c0_250, %c0_251] : memref<5x32x288xbf16, #tpu.memory_space<vmem>>, vector<1x32x288xbf16>
    %399 = vector.shape_cast %398 : vector<1x32x288xbf16> to vector<32x288xbf16>
    %c0_252 = arith.constant 0 : index
    %c0_253 = arith.constant 0 : index
    %400 = vector.load %arg7[%c0_252, %c0_253] : memref<288x256xbf16, #tpu.memory_space<vmem>>, vector<288x256xbf16>
    %cst_254 = arith.constant dense<0.000000e+00> : vector<32x256xf32>
    %401 = tpu.matmul %399, %400, %cst_254 {dimension_numbers = #tpu.dot_dimension_numbers<[1], [0], [0], [1], [0, 0, 1, 1], [], []>} : vector<32x288xbf16>, vector<288x256xbf16>, vector<32x256xf32> -> vector<32x256xf32>
    %c4_255 = arith.constant 4 : index
    %c0_256 = arith.constant 0 : index
    %c0_257 = arith.constant 0 : index
    %402 = vector.load %arg3[%c4_255, %c0_256, %c0_257] : memref<5x32x1xf32, #tpu.memory_space<vmem>>, vector<1x32x1xf32>
    %403 = vector.shape_cast %402 : vector<1x32x1xf32> to vector<32x1xf32>
    %404 = vector.broadcast %403 : vector<32x1xf32> to vector<32x256xf32>
    %405 = arith.mulf %401, %404 : vector<32x256xf32>
    %c4_258 = arith.constant 4 : index
    %c0_259 = arith.constant 0 : index
    %c0_260 = arith.constant 0 : index
    %406 = vector.load %arg4[%c4_258, %c0_259, %c0_260] : memref<5x32x1xf32, #tpu.memory_space<vmem>>, vector<1x32x1xf32>
    %407 = vector.shape_cast %406 : vector<1x32x1xf32> to vector<32x1xf32>
    %408 = vector.broadcast %407 : vector<32x1xf32> to vector<32x256xf32>
    %409 = arith.addf %405, %408 : vector<32x256xf32>
    %410 = vector.extract_strided_slice %409 {offsets = [0, 0], sizes = [3, 256], strides = [1, 1]} : vector<32x256xf32> to vector<3x256xf32>
    %c0_261 = arith.constant 0 : index
    %c0_262 = arith.constant 0 : index
    %c0_263 = arith.constant 0 : index
    %411 = vector.load %arg6[%c0_261, %c0_262, %c0_263] : memref<1x3x256xf32, #tpu.memory_space<vmem>>, vector<1x3x256xf32>
    %412 = vector.shape_cast %411 : vector<1x3x256xf32> to vector<3x256xf32>
    %413 = vector.shape_cast %410 : vector<3x256xf32> to vector<1x3x256xf32>
    tpu.vector_store %arg6[%c0_261, %c0_262, %c0_263], %413 {strides = array<i32>} : memref<1x3x256xf32, #tpu.memory_space<vmem>>, vector<1x3x256xf32>,
    return
  }
  func.func @transform_0(%arg0: i32) -> (i32, i32, i32) {
    %c0_i32 = arith.constant 0 : i32
    %c0_i32_0 = arith.constant 0 : i32
    %c0_i32_1 = arith.constant 0 : i32
    return %arg0, %c0_i32, %c0_i32_0 : i32, i32, i32
  }
  func.func @transform_1(%arg0: i32) -> (i32, i32, i32) {
    %c0_i32 = arith.constant 0 : i32
    %c0_i32_0 = arith.constant 0 : i32
    %c0_i32_1 = arith.constant 0 : i32
    %c0_i32_2 = arith.constant 0 : i32
    return %c0_i32, %c0_i32_0, %c0_i32_1 : i32, i32, i32
  }
  func.func @transform_2(%arg0: i32) -> (i32, i32, i32) {
    %c0_i32 = arith.constant 0 : i32
    %c0_i32_0 = arith.constant 0 : i32
    %c0_i32_1 = arith.constant 0 : i32
    %c0_i32_2 = arith.constant 0 : i32
    return %c0_i32, %c0_i32_0, %c0_i32_1 : i32, i32, i32
  }
  func.func @transform_3(%arg0: i32) -> (i32, i32, i32) {
    %c0_i32 = arith.constant 0 : i32
    %c0_i32_0 = arith.constant 0 : i32
    %c0_i32_1 = arith.constant 0 : i32
    %c0_i32_2 = arith.constant 0 : i32
    return %c0_i32, %c0_i32_0, %c0_i32_1 : i32, i32, i32
  }
  func.func @transform_4(%arg0: i32) -> (i32, i32, i32) {
    %c0_i32 = arith.constant 0 : i32
    %c0_i32_0 = arith.constant 0 : i32
    %c0_i32_1 = arith.constant 0 : i32
    %c0_i32_2 = arith.constant 0 : i32
    return %c0_i32, %c0_i32_0, %c0_i32_1 : i32, i32, i32
  }
  func.func @transform_5(%arg0: i32) -> (i32, i32, i32) {
    %c0_i32 = arith.constant 0 : i32
    %c0_i32_0 = arith.constant 0 : i32
    %c0_i32_1 = arith.constant 0 : i32
    return %arg0, %c0_i32, %c0_i32_0 : i32, i32, i32
  }
}

</mosaic_0001>

<bundles_post_ra>
// kernel: tpu_custom_call.1
= control target key start
LH: loop header
LB: loop body
LE: loop exit
PB: predicated region body
PF: predicated region fallthrough
CT: control target
= control target key end

     0   :  { %10 = vsyncpa [#allocation4], 0  ;;  %s6095_s0 = inlined_call_operand.hbm [shape: f32[2,32,256], index: 0, kind: input, shape index: {}]   ;;  %s6096_s1 = inlined_call_operand.vmem [shape: bf16[5,32,288], index: 1, kind: input, shape index: {}]   ;;  %s6097_s2 = inlined_call_operand.vmem [shape: f32[5,32,1], index: 2, kind: input, shape index: {}]   ;;  %s6098_s3 = inlined_call_operand.vmem [shape: f32[5,32,1], index: 3, kind: input, shape index: {}]   ;;  %s6099_s4 = inlined_call_operand.vmem [shape: bf16[9,1,256], index: 4, kind: input, shape index: {}]   ;;  %s6100_s5 = inlined_call_operand.vmem [shape: f32[2,3,256], index: 5, kind: output, shape index: {}]  }
   0x1   :  { %12 = vsyncpa [#allocation4 + $0x1], 0  ;;  %s4773_s18 = smov 0   ;;  %s4775_s19 = smov 0  }
   0x2   :  { %s4777_s20 = smov 0   ;;  %s4779_s21 = smov 0  }
   0x3 LB: > { %s4792_s22 = sadd.s32 4294967295, %s4728_s21   ;;  %s4795_s23 = sadd.s32 1, %s4728_s21   ;;  %s4728_s21 = sphi %s4779_s21, %s6107_s21   ;;  %s4724_s20 = sphi %s4777_s20, %s6106_s20   ;;  %s4720_s19 = sphi %s4775_s19, %s6105_s19   ;;  %s4716_s18 = sphi %s4773_s18, %s6104_s18  }
   0x4   : > { %s22_s24 = ssub.s32 %s4728_s21, %s4795_s23  ;;  %s25_s25 = sadd.s32 1, %s4724_s20 }
   0x5   : > { %p23_p0 = scmp.eq.s32.totalorder %s22_s24, 0  ;;  %p32_p1 = scmp.ne.s32.totalorder %s4724_s20, %s4720_s19 }
   0x6   : > { %p33_p2 = scmp.eq.s32.totalorder %s4728_s21, 0  ;;  %p38_p3 = scmp.ne.s32.totalorder %s4720_s19, %s4716_s18 }
   0x7   : > { %s4805_s26 = scalar_select %p23_p0, %s4724_s20, %s25_s25  }
   0x8   : > { %p34_p4 = por %p33_p2, %p32_p1  ;;  %p39_p5 = scmp.eq.s32.totalorder %s4792_s22, 0 }
   0x9   : > { %p4577_p6 = scmp.lt.s32.totalorder %s4728_s21, 2  ;;  %s184_s28 = sand.u32 1, %s4724_s20  }
   0xa   : > { %p4809_p7 = por %p39_p5, %p38_p3  ;;  %s4351_s29 = sshll.u32 %s184_s28, 6 }
   0xb   : > { %s4533_s30 = sshll.u32 %s4728_s21, 10  ;;  %s188_s9 = scalar_lea.vmem [#allocation3], %s4351_s29 }
   0xc   : > { %s4818_s8 = scalar_lea.hbm %s6095_s0, %s4533_s30  ;;  %s195_s10 = sshll.u32 %s188_s9, 4  ;;  %s4820_s10 = int_to_ptr.vmem [resolvable:$true] %s195_s10 }
   0xd   : > { %p4822_p8 = pnand %p4577_p6, %p34_p4  ;;  %s4827_s12 = scalar_lea.sflag [#allocation4], %s184_s28 }
   0xe   : > { %s4664_s13 = scalar_lea.hbm %s4818_s8, 1024  ;;  %s4669_s16 = scalar_lea.hbm %s6095_s0, 2048 }
   0xf   : > { %p4665_p10 = scmp.ne.s32.totalorder %s4818_s8, %s4664_s13  ;;  %p4666_p11 = pneg %p4822_p8 }
  0x10   : > { %p4670_p0 = scmp.lt.u32.totalorder %s4818_s8, %s6095_s0  ;;  %p4671_p1 = scmp.lt.u32.totalorder %s4669_s16, %s4664_s13 }
  0x11   : > { %p4667_p12 = pnand %p4666_p11, %p4665_p10  ;;  %p4673_p3 = scmp.lt.u32.totalorder %s4664_s13, %s4818_s8 }
  0x12   : > { %p4672_p2 = por %p4671_p1, %p4670_p0 }
  0x13   : > { %p4668_p13 = pneg %p4667_p12 }
  0x14   : > { %p4674_p4 = por %p4673_p3, %p4672_p2 }
  0x16   : > { %p4675_p5 = pnand %p4674_p4, %p4668_p13 }
  0x18   : > { %4678 = shalt.err (!%p4675_p5)
}
  0x19   : > { %s4679_s24 = scalar_lea.vmem %s4820_s10, 1024  ;;  %s4730_s25 = smov [#allocation3]  }
  0x1a   : > { %p4680_p6 = scmp.ne.s32.totalorder %s4820_s10, %s4679_s24  ;;  %s4684_s28 = sshll.u32 %s4730_s25, 4  ;;  %s4685_s28 = int_to_ptr.vmem [resolvable:$false] %s4684_s28 }
  0x1b   : > { %s4686_s29 = scalar_lea.vmem %s4685_s28, 2048  ;;  %p4687_p9 = scmp.lt.s32.totalorder %s4820_s10, %s4685_s28 }
  0x1c   : > { %p4682_p10 = pnand %p4680_p6, %p4666_p11  ;;  %p4688_p0 = scmp.lt.s32.totalorder %s4686_s29, %s4679_s24 }
  0x1e   : > { %p4683_p12 = pneg %p4682_p10  ;;  %p4689_p1 = por %p4688_p0, %p4687_p9 }
  0x20   : > { %p4690_p2 = pnand %p4689_p1, %p4683_p12 }
  0x22   : > { %4693 = shalt.err (!%p4690_p2)
}
  0x23   : > { %s4731_s30 = smov 256   ;;  %s4732_s6 = smov 16  }
  0x24   : > { %4576 = dma.hbm_to_vmem [thread:$0]  (!%p4822_p8), %s4818_s8, 1024, %s4820_s10, %s4827_s12, %s4731_s30, %s4731_s30, %s4732_s6  }
  0x25   : > { %p203_p11 = scmp.lt.s32.totalorder %s4728_s21, 3  ;;  %p6103_p13 = scmp.ge.s32.totalorder %s4728_s21, 1 }
  0x27   : > { %p204_p3 = pnand %p6103_p13, %p203_p11 }
  0x28   : > { %s209_s7 = sand.u32 (!%p204_p3), 1, %s4720_s19  }
  0x29   : > { %207 = sbr.rel (%p204_p3) target bundleno = 2143 (0x85f), region = 40  ;;  %s4355_s9 = sshll.u32 (!%p204_p3), %s209_s7, 6 }
  0x2a   : > { %s210_s13 = scalar_lea.sflag (!%p204_p3), [#allocation4], %s209_s7  ;;  %s213_s14 = scalar_lea.vmem (!%p204_p3), [#allocation3], %s4355_s9 }
  0x30   : > { %4711 = dma.done.wait (%p4809_p7), %s210_s13, 1024  }
  0x31   : > { %4713 = vsyncadd (%p4809_p7), %s210_s13, 4294966272  ;;  %v251_v0 = vld [vmem:[%s213_s14 + $0x28] sm:$0xff]  ;;  %v253_v1 = vld [vmem:[%s213_s14 + $0x38] sm:$0xff]  ;;  %s4733_s21 = smov 17   ;;  %s4734_s27 = smov 16   ;;  %v4741_v12 = vmov 0   ;;  %v297_v24 = vlaneseq }
  0x32   : > { %v247_v2 = vld [vmem:[%s213_s14 + $0x8] sm:$0xff]  ;;  %v4863_v3 = vpack.c.bf16 %v253_v1, %v251_v0  ;;  %v249_v4 = vld [vmem:[%s213_s14 + $0x18] sm:$0xff]  ;;  %v250_v5 = vld [vmem:[%s213_s14 + $0x20] sm:$0xff]  ;;  %s4735_s8 = smov 15   ;;  %s4736_s10 = smov 1   ;;  %983 = vmatprep.mubr.bf16.mxu0 %v4741_v12  ;;  %4623 = vset.pattern.permute.xlu1 %v4741_v12  ;;  %vm270_vm0 = vcmask 138240  }
  0x33   : > { %v252_v6 = vld [vmem:[%s213_s14 + $0x30] sm:$0xff]  ;;  %v4865_v7 = vpack.c.bf16 %v249_v4, %v247_v2  ;;  %v246_v8 = vld [vmem:[%s213_s14] sm:$0xff]  ;;  %s4737_s11 = smov 127   ;;  %s4738_s12 = smov 113   ;;  %4622 = vset.pattern.permute.xlu0 %v4741_v12  ;;  %v1005_v14 = vld [vmem:[%s6097_s2 + $0x8] sm:$0xff]  ;;  %v298_v26 = vshrl.u32 %v297_v24, 7 }
  0x34   : > { %v248_v9 = vld [vmem:[%s213_s14 + $0x10] sm:$0xff]  ;;  %262 = vrot.lane.b32.xlu1 %v4863_v3, %s4733_s21  ;;  %v4869_v10 = vpack.c.bf16 %v252_v6, %v250_v5  ;;  %s4739_s15 = smov 112   ;;  %s4740_s16 = smov 111   ;;  %v1004_v15 = vld [vmem:[%s6097_s2] sm:$0xff]  ;;  %v1037_v17 = vld [vmem:[%s6098_s3 + $0x8] sm:$0xff]  ;;  %vm338_vm1 = vcmask 130048  }
  0x35   : > { %260 = vrot.lane.b32.xlu0 %v4865_v7, %s4733_s21  ;;  %v4873_v11 = vpack.c.bf16 %v248_v9, %v246_v8  ;;  %v4627_v13 = vld [vmem:[%s6096_s1 + $0x4] ss:$12 sps:$4 sm:$0xff]   ;;  %v1007_v19 = vld [vmem:[%s6097_s2 + $0x18] sm:$0xff]  ;;  %v4742_v22 = vmov 1966171168   ;;  %v4975_v34 = vsub.s32 0, %v298_v26 }
  0x36   : > { %930 = vmatprep.mubr.bf16.mxu1 %v4627_v13  ;;  %v1036_v16 = vld [vmem:[%s6098_s3] sm:$0xff]  ;;  %v1006_v18 = vld [vmem:[%s6097_s2 + $0x10] sm:$0xff]  ;;  %v1039_v21 = vld [vmem:[%s6098_s3 + $0x18] sm:$0xff]  ;;  %v295_v23 = vunpack.c.l.s4 %v4742_v22  ;;  %vm407_vm2 = vcmask 121856   ;;  %vm476_vm3 = vcmask 7168   ;;  %vm549_vm4 = vcmask 1039360  }
  0x37   : > { %v1038_v20 = vld [vmem:[%s6098_s3 + $0x10] sm:$0xff]  ;;  %v4358_v27 = vld.sshfl [vmem:[%s6099_s4] sm:$0x11 pattern:$0x75316420]  ;;  %vm618_vm5 = vcmask 924672  }
  0x38   : > { %268 = vrot.lane.b32.xlu1 %v4869_v10, %s4733_s21  ;;  %v296_v25 = vunpack.c.0.s8 %v295_v23  ;;  %v293_v28 = vcombine.high %v4358_v27, %v4358_v27  ;;  %v4360_v30 = vld.sshfl [vmem:[%s6099_s4 + $0x2] sm:$0x11 pattern:$0x75316420]  ;;  %vm756_vm6 = vcmask 908288   ;;  %vm687_vm7 = vcmask 916480  }
  0x39   : > { %266 = vrot.lane.b32.xlu0 %v4873_v11, %s4733_s21  ;;  %v362_v33 = vcombine.high %v4360_v30, %v4360_v30  ;;  %v4362_v39 = vld.sshfl [vmem:[%s6099_s4 + $0x4] sm:$0x11 pattern:$0x75316420]  ;;  %vm891_vm8 = vcmask 261120   ;;  %p240_p7 = scmp.lt.s32.totalorder %s4792_s22, 1 }
  0x3a   : > { %v4968_v29 = vsub.s32 %v296_v25, %v298_v26  ;;  %v431_v45 = vcombine.high %v4362_v39, %v4362_v39  ;;  %v4364_v57 = vld.sshfl [vmem:[%s6099_s4 + $0x6] sm:$0x11 pattern:$0x75316420] }
  0x3b   : > { %v500_v4 = vcombine.high %v4364_v57, %v4364_v57  ;;  %s6109_s22 = smov (!%p240_p7, %s4792_s22), 1 }
  0x3c   : > { %334 = vrot.lane.b32.xlu1 %v4873_v11, %s4734_s27  ;;  %v307_v31 = vrot.slane %v293_v28, %v4968_v29  ;;  %v300_v32 = vrot.slane %v4358_v27, %v4968_v29  ;;  %v376_v37 = vrot.slane %v362_v33, %v4968_v29  ;;  %v369_v41 = vrot.slane %v4360_v30, %v4968_v29  ;;  %s4534_s28 = sshll.u32 %s6109_s22, 3 }
  0x3d   : > { %330 = vrot.lane.b32.xlu0 %v4865_v7, %s4734_s27  ;;  %v445_v55 = vrot.slane %v431_v45, %v4968_v29  ;;  %v438_v63 = vrot.slane %v4362_v39, %v4968_v29  ;;  %v507_v24 = vrot.slane %v4364_v57, %v4968_v29  ;;  %v4366_v45 = vld.sshfl [vmem:[%s6099_s4 + $0xa] sm:$0x11 pattern:$0x75316420]  ;;  %s244_s6 = scalar_lea.vmem %s6100_s5, %s4534_s28 }
  0x3e   : > { %v316_v35 = vpack.i.b16 %v307_v31, %v307_v31  ;;  %v309_v36 = vpack.i.b16 %v300_v32, %v300_v32  ;;  %v385_v44 = vpack.i.b16 %v376_v37, %v376_v37  ;;  %v378_v51 = vpack.i.b16 %v369_v41, %v369_v41 }
  0x3f   : > { %v454_v2 = vpack.i.b16 %v445_v55, %v445_v55  ;;  %v516_v33 = vpack.i.b16 %v507_v24, %v507_v24 }
  0x40   : > { %336 = vrot.lane.b32.xlu1 %v4869_v10, %s4734_s27  ;;  %v4983_v42 = vrot.slane %v316_v35, %v4975_v34  ;;  %v4986_v43 = vrot.slane %v309_v36, %v4975_v34  ;;  %v4994_v54 = vrot.slane %v385_v44, %v4975_v34  ;;  %v5004_v62 = vrot.slane %v378_v51, %v4975_v34 }
  0x41   : > { %332 = vrot.lane.b32.xlu0 %v4863_v3, %s4734_s27  ;;  %v5036_v44 = vrot.slane %v516_v33, %v4975_v34 }
  0x44   : > { %403 = vrot.lane.b32.xlu1 %v4873_v11, %s4735_s8 }
  0x45   : > { %399 = vrot.lane.b32.xlu0 %v4865_v7, %s4735_s8 }
  0x48   : > { %405 = vrot.lane.b32.xlu1 %v4869_v10, %s4735_s8 }
  0x49   : > { %401 = vrot.lane.b32.xlu0 %v4863_v3, %s4735_s8 }
  0x4c   : > { %472 = vrot.lane.b32.xlu1 %v4873_v11, %s4736_s10 }
  0x4d   : > { %468 = vrot.lane.b32.xlu0 %v4865_v7, %s4736_s10 }
  0x50   : > { %474 = vrot.lane.b32.xlu1 %v4869_v10, %s4736_s10 }
  0x51   : > { %470 = vrot.lane.b32.xlu0 %v4863_v3, %s4736_s10 }
  0x54   : > { %543 = vrot.lane.b32.xlu1 %v4865_v7, %s4737_s11 }
  0x55   : > { %541 = vrot.lane.b32.xlu0 %v4873_v11, %s4737_s11 }
  0x58   : > { %547 = vrot.lane.b32.xlu1 %v4863_v3, %s4737_s11 }
  0x59   : > { %545 = vrot.lane.b32.xlu0 %v4869_v10, %s4737_s11 }
  0x5c   : > { %612 = vrot.lane.b32.xlu1 %v4865_v7, %s4738_s12 }
  0x5d   : > { %610 = vrot.lane.b32.xlu0 %v4873_v11, %s4738_s12 }
  0x60   : > { %616 = vrot.lane.b32.xlu1 %v4863_v3, %s4738_s12 }
  0x61   : > { %614 = vrot.lane.b32.xlu0 %v4869_v10, %s4738_s12 }
  0x64   : > { %681 = vrot.lane.b32.xlu1 %v4865_v7, %s4739_s15 }
  0x65   : > { %679 = vrot.lane.b32.xlu0 %v4873_v11, %s4739_s15 }
  0x68   : > { %750 = vrot.lane.b32.xlu1 %v4865_v7, %s4740_s16 }
  0x69   : > { %748 = vrot.lane.b32.xlu0 %v4873_v11, %s4740_s16 }
  0x6c   : > { %685 = vrot.lane.b32.xlu1 %v4863_v3, %s4739_s15 }
  0x6d   : > { %683 = vrot.lane.b32.xlu0 %v4869_v10, %s4739_s15 }
  0x70   : > { %754 = vrot.lane.b32.xlu1 %v4863_v3, %s4740_s16 }
  0x71   : > { %752 = vrot.lane.b32.xlu0 %v4869_v10, %s4740_s16 }
  0x74   : > { %1015 = vperm.xlu1 %4623, %v1005_v14   ;;  %v447_v14 = vpack.i.b16 %v438_v63, %v438_v63  ;;  %v580_v63 = vrot.slane %v4366_v45, %v4968_v29 }
  0x75   : > { %1010 = vperm.xlu0 %4622, %v1004_v15  }
  0x76   : > { %v5021_v23 = vrot.slane %v447_v14, %v4975_v34 }
  0x78   : > { %1042 = vperm.xlu1 %4623, %v1036_v16  }
  0x79   : > { %1047 = vperm.xlu0 %4622, %v1037_v17   ;;  %v5015_v17 = vrot.slane %v454_v2, %v4975_v34 }
  0x7c   : > { %1020 = vperm.xlu1 %4623, %v1006_v18   ;;  %v514_v18 = vrot.slane %v500_v4, %v4968_v29 }
  0x7d   : > { %1025 = vperm.xlu0 %4622, %v1007_v19  }
  0x7e   : > { %v523_v27 = vpack.i.b16 %v514_v18, %v514_v18 }
  0x80   : > { %1052 = vperm.xlu1 %4623, %v1038_v20   ;;  %v5031_v37 = vrot.slane %v523_v27, %v4975_v34 }
  0x81   : > { %1057 = vperm.xlu0 %4622, %v1039_v21  }
  0xa6   : > { %v263_v38 = vpop.permute.xlu1 %262 }
  0xa7   : > { %v261_v40 = vpop.permute.xlu0 %260 }
  0xaa   : > { %v269_v46 = vpop.permute.xlu1 %268 }
  0xab   : > { %v267_v47 = vpop.permute.xlu0 %266  ;;  %v272_v48 = vsel %vm270_vm0, %v269_v46, %v263_v38  ;;  %v282_v58 = vsel %vm270_vm0, %v263_v38, %v269_v46 }
  0xac   : > { %v271_v49 = vsel %vm270_vm0, %v267_v47, %v261_v40  ;;  %v278_v50 = vsel %vm270_vm0, %v261_v40, %v267_v47  ;;  %v325_v60 = vmul.bf16 %v4983_v42, %v272_v48  ;;  %v324_v6 = vmul.bf16 %v4986_v43, %v282_v58 }
  0xad   : > { %v323_v52 = vmul.bf16 %v4983_v42, %v271_v49  ;;  %v322_v53 = vmul.bf16 %v4986_v43, %v278_v50  ;;  %v573_v50 = vcombine.high %v4366_v45, %v4366_v45 }
  0xae   : > { %v335_v56 = vpop.permute.xlu1 %334 }
  0xaf   : > { %898 = vmatprep.subr.bf16.mxu1 %v323_v52  ;;  %v331_v59 = vpop.permute.xlu0 %330  ;;  %v587_v58 = vrot.slane %v573_v50, %v4968_v29 }
  0xb0   : > { %899 = vmatpush1.bf16.msra.mxu1 %v322_v53  ;;  %v339_v61 = vsel %vm338_vm1, %v335_v56, %v331_v59  ;;  %v346_v0 = vsel %vm338_vm1, %v331_v59, %v335_v56 }
  0xb1   : > { %900 = vmatprep.subr.bf16.mxu1 %v325_v60  ;;  %v392_v1 = vmul.bf16 %v4994_v54, %v339_v61  ;;  %v391_v13 = vmul.bf16 %v5004_v62, %v346_v0  ;;  %v4368_v60 = vld.sshfl [vmem:[%s6099_s4 + $0xc] sm:$0x11 pattern:$0x75316420]  ;;  %v596_v2 = vpack.i.b16 %v587_v58, %v587_v58 }
  0xb2   : > { %v337_v5 = vpop.permute.xlu1 %336  ;;  %v4372_v0 = vld.sshfl [vmem:[%s6099_s4 + $0x10] sm:$0x11 pattern:$0x75316420]  ;;  %v642_v4 = vcombine.high %v4368_v60, %v4368_v60 }
  0xb3   : > { %v333_v8 = vpop.permute.xlu0 %332  ;;  %v787_v18 = vrot.slane %v4372_v0, %v4968_v29 }
  0xb4   : > { %901 = vmatpush1.bf16.msra.mxu1 %v324_v6  ;;  %v340_v9 = vsel %vm338_vm1, %v337_v5, %v333_v8  ;;  %v350_v15 = vsel %vm338_vm1, %v333_v8, %v337_v5  ;;  %v780_v5 = vcombine.high %v4372_v0, %v4372_v0  ;;  %v589_v8 = vpack.i.b16 %v580_v63, %v580_v63 }
  0xb5   : > { %902 = vmatprep.subr.bf16.mxu1 %v392_v1  ;;  %v394_v16 = vmul.bf16 %v4994_v54, %v340_v9  ;;  %v393_v22 = vmul.bf16 %v5004_v62, %v350_v15  ;;  %v656_v14 = vrot.slane %v642_v4, %v4968_v29 }
  0xb6   : > { %v404_v19 = vpop.permute.xlu1 %403 }
  0xb7   : > { %v400_v20 = vpop.permute.xlu0 %399 }
  0xb8   : > { %903 = vmatpush1.bf16.msra.mxu1 %v391_v13  ;;  %v408_v21 = vsel %vm407_vm2, %v404_v19, %v400_v20  ;;  %v415_v25 = vsel %vm407_vm2, %v400_v20, %v404_v19  ;;  %v5058_v13 = vrot.slane %v596_v2, %v4975_v34  ;;  %v5070_v20 = vrot.slane %v589_v8, %v4975_v34 }
  0xb9   : > { %904 = vmatprep.subr.bf16.mxu1 %v394_v16  ;;  %v461_v26 = vmul.bf16 %v5015_v17, %v408_v21  ;;  %v460_v32 = vmul.bf16 %v5021_v23, %v415_v25  ;;  %v4370_v16 = vld.sshfl [vmem:[%s6099_s4 + $0xe] sm:$0x11 pattern:$0x75316420]  ;;  %v649_v21 = vrot.slane %v4368_v60, %v4968_v29  ;;  %v665_v25 = vpack.i.b16 %v656_v14, %v656_v14 }
  0xba   : > { %v406_v28 = vpop.permute.xlu1 %405 }
  0xbb   : > { %v402_v30 = vpop.permute.xlu0 %401 }
  0xbc   : > { %905 = vmatpush1.bf16.msra.mxu1 %v393_v22  ;;  %v409_v31 = vsel %vm407_vm2, %v406_v28, %v402_v30  ;;  %v419_v35 = vsel %vm407_vm2, %v402_v30, %v406_v28  ;;  %v796_v28 = vpack.i.b16 %v787_v18, %v787_v18 }
  0xbd   : > { %906 = vmatprep.subr.bf16.mxu1 %v461_v26  ;;  %v463_v36 = vmul.bf16 %v5015_v17, %v409_v31  ;;  %v462_v41 = vmul.bf16 %v5021_v23, %v419_v35  ;;  %v711_v26 = vcombine.high %v4370_v16, %v4370_v16 }
  0xbe   : > { %v473_v38 = vpop.permute.xlu1 %472 }
  0xbf   : > { %v469_v39 = vpop.permute.xlu0 %468 }
  0xc0   : > { %907 = vmatpush1.bf16.msra.mxu1 %v460_v32  ;;  %v477_v40 = vsel %vm476_vm3, %v473_v38, %v469_v39  ;;  %v484_v46 = vsel %vm476_vm3, %v469_v39, %v473_v38  ;;  %v658_v32 = vpack.i.b16 %v649_v21, %v649_v21  ;;  %v5081_v38 = vrot.slane %v665_v25, %v4975_v34  ;;  %v4624_v25 = vld [vmem:[%s6096_s1 + $0x8] ss:$12 sps:$4 sm:$0xff]  }
  0xc1   : > { %908 = vmatprep.subr.bf16.mxu1 %v463_v36  ;;  %v530_v47 = vmul.bf16 %v5031_v37, %v477_v40  ;;  %v529_v52 = vmul.bf16 %v5036_v44, %v484_v46  ;;  %v725_v39 = vrot.slane %v711_v26, %v4968_v29 }
  0xc2   : > { %v475_v48 = vpop.permute.xlu1 %474 }
  0xc3   : > { %v471_v49 = vpop.permute.xlu0 %470 }
  0xc4   : > { %909 = vmatpush1.bf16.msra.mxu1 %v462_v41  ;;  %v478_v51 = vsel %vm476_vm3, %v475_v48, %v471_v49  ;;  %v488_v53 = vsel %vm476_vm3, %v471_v49, %v475_v48  ;;  %v5089_v41 = vrot.slane %v796_v28, %v4975_v34  ;;  %v718_v48 = vrot.slane %v4370_v16, %v4968_v29  ;;  %v4628_v28 = vld [vmem:[%s6096_s1 + $0x20] ss:$12 sps:$4 sm:$0xff]  }
  0xc5   : > { %910 = vmatprep.subr.bf16.mxu1 %v530_v47  ;;  %v532_v55 = vmul.bf16 %v5031_v37, %v478_v51  ;;  %v531_v59 = vmul.bf16 %v5036_v44, %v488_v53  ;;  %v5093_v47 = vrot.slane %v658_v32, %v4975_v34 }
  0xc6   : > { %v544_v56 = vpop.permute.xlu1 %543 }
  0xc7   : > { %v542_v57 = vpop.permute.xlu0 %541 }
  0xc8   : > { %911 = vmatpush1.bf16.msra.mxu1 %v529_v52  ;;  %v557_v15 = vsel %vm549_vm4, %v544_v56, %v542_v57  ;;  %v550_v22 = vsel %vm549_vm4, %v542_v57, %v544_v56  ;;  %v734_v52 = vpack.i.b16 %v725_v39, %v725_v39 }
  0xc9   : > { %912 = vmatprep.subr.bf16.mxu1 %v532_v55  ;;  %v602_v31 = vmul.bf16 %v5070_v20, %v550_v22 }
  0xca   : > { %v548_v61 = vpop.permute.xlu1 %547  ;;  %v5107_v2 = vrot.slane %v734_v52, %v4975_v34 }
  0xcb   : > { %v546_v1 = vpop.permute.xlu0 %545 }
  0xcc   : > { %913 = vmatpush1.bf16.msra.mxu1 %v531_v59  ;;  %v561_v27 = vsel %vm549_vm4, %v548_v61, %v546_v1  ;;  %v551_v33 = vsel %vm549_vm4, %v546_v1, %v548_v61  ;;  %v727_v61 = vpack.i.b16 %v718_v48, %v718_v48 }
  0xcd   : > { %914 = vmatprep.subr.bf16.mxu1 %v4865_v7  ;;  %v794_v7 = vrot.slane %v780_v5, %v4968_v29  ;;  %v605_v36 = vmul.bf16 %v5058_v13, %v561_v27  ;;  %v604_v46 = vmul.bf16 %v5070_v20, %v551_v33  ;;  %v4625_v27 = vld [vmem:[%s6096_s1] ss:$12 sps:$4 sm:$0xff]  }
  0xce   : > { %v613_v6 = vpop.permute.xlu1 %612  ;;  %v5112_v8 = vrot.slane %v727_v61, %v4975_v34 }
  0xcf   : > { %v611_v9 = vpop.permute.xlu0 %610 }
  0xd0   : > { %915 = vmatpush1.bf16.msra.mxu1 %v4873_v11  ;;  %v603_v11 = vmul.bf16 %v5058_v13, %v557_v15  ;;  %v619_v49 = vsel %vm618_vm5, %v611_v9, %v613_v6 }
  0xd1   : > { %916 = vmatprep.subr.bf16.mxu1 %v4863_v3  ;;  %v803_v3 = vpack.i.b16 %v794_v7, %v794_v7  ;;  %v671_v60 = vmul.bf16 %v5093_v47, %v619_v49 }
  0xd2   : > { %v617_v19 = vpop.permute.xlu1 %616 }
  0xd3   : > { %v615_v24 = vpop.permute.xlu0 %614  ;;  %v5086_v40 = vrot.slane %v803_v3, %v4975_v34  ;;  %v4629_v3 = vld [vmem:[%s6096_s1 + $0x1c] ss:$12 sps:$4 sm:$0xff]  }
  0xd4   : > { %917 = vmatpush1.bf16.msra.mxu1 %v4869_v10  ;;  %v626_v10 = vsel %vm618_vm5, %v613_v6, %v611_v9  ;;  %v630_v53 = vsel %vm618_vm5, %v617_v19, %v615_v24  ;;  %v620_v63 = vsel %vm618_vm5, %v615_v24, %v617_v19 }
  0xd5   : > { %918 = vmatprep.subr.bf16.mxu1 %v603_v11  ;;  %v672_v51 = vmul.bf16 %v5081_v38, %v626_v10  ;;  %v674_v1 = vmul.bf16 %v5081_v38, %v630_v53  ;;  %v673_v6 = vmul.bf16 %v5093_v47, %v620_v63 }
  0xd6   : > { %v682_v30 = vpop.permute.xlu1 %681 }
  0xd7   : > { %v680_v35 = vpop.permute.xlu0 %679 }
  0xd8   : > { %919 = vmatpush1.bf16.msra.mxu1 %v602_v31  ;;  %v695_v4 = vsel %vm687_vm7, %v682_v30, %v680_v35  ;;  %v688_v9 = vsel %vm687_vm7, %v680_v35, %v682_v30  ;;  %v4631_v30 = vld [vmem:[%s6096_s1 + $0x18] ss:$12 sps:$4 sm:$0xff]  }
  0xd9   : > { %920 = vmatprep.subr.bf16.mxu1 %v605_v36  ;;  %v741_v15 = vmul.bf16 %v5107_v2, %v695_v4  ;;  %v740_v22 = vmul.bf16 %v5112_v8, %v688_v9 }
  0xda   : > { %v751_v45 = vpop.permute.xlu1 %750 }
  0xdb   : > { %v749_v50 = vpop.permute.xlu0 %748 }
  0xdc   : > { %921 = vmatpush1.bf16.msra.mxu1 %v604_v46  ;;  %v764_v55 = vsel %vm756_vm6, %v751_v45, %v749_v50  ;;  %v757_v56 = vsel %vm756_vm6, %v749_v50, %v751_v45 }
  0xdd   : > { %922 = vmatprep.subr.bf16.mxu1 %v672_v51  ;;  %v810_v57 = vmul.bf16 %v5086_v40, %v764_v55  ;;  %v809_v58 = vmul.bf16 %v5089_v41, %v757_v56 }
  0xde   : > { %v686_v59 = vpop.permute.xlu1 %685 }
  0xdf   : > { %v684_v0 = vpop.permute.xlu0 %683  ;;  %951 = vmatprep.subr.bf16.mxu0 %v810_v57 }
  0xe0   : > { %923 = vmatpush1.bf16.msra.mxu1 %v671_v60  ;;  %952 = vmatpush1.bf16.msra.mxu0 %v809_v58  ;;  %v699_v16 = vsel %vm687_vm7, %v686_v59, %v684_v0  ;;  %v689_v24 = vsel %vm687_vm7, %v684_v0, %v686_v59 }
  0xe1   : > { %924 = vmatprep.subr.bf16.mxu1 %v674_v1  ;;  %v743_v11 = vmul.bf16 %v5107_v2, %v699_v16  ;;  %v742_v26 = vmul.bf16 %v5112_v8, %v689_v24 }
  0xe2   : > { %v755_v5 = vpop.permute.xlu1 %754 }
  0xe3   : > { %v753_v14 = vpop.permute.xlu0 %752 }
  0xe4   : > { %925 = vmatpush1.bf16.msra.mxu1 %v673_v6  ;;  %v758_v7 = vsel %vm756_vm6, %v753_v14, %v755_v5  ;;  %v768_v18 = vsel %vm756_vm6, %v755_v5, %v753_v14 }
  0xe5   : > { %926 = vmatprep.subr.bf16.mxu1 %v741_v15  ;;  %v812_v19 = vmul.bf16 %v5086_v40, %v768_v18  ;;  %v811_v21 = vmul.bf16 %v5089_v41, %v758_v7 }
  0xe7   : > { %953 = vmatprep.subr.bf16.mxu0 %v812_v19 }
  0xe8   : > { %927 = vmatpush1.bf16.msra.mxu1 %v740_v22  ;;  %954 = vmatpush1.bf16.msra.mxu0 %v811_v21 }
  0xe9   : > { %928 = vmatprep.subr.bf16.mxu1 %v743_v11 }
  0xeb   : > { %4379 = vmatmul.mubr.msk.bf16.vlgmr.msra.gmra.mrb[0].mxu0 %vm891_vm8, %v4624_v25 }
  0xec   : > { %929 = vmatpush1.bf16.msra.mxu1 %v742_v26  ;;  %993 = vmatprep.mubr.bf16.mxu0 %v4741_v12 }
  0xef   : > { %931 = vmatmul.mubr.bf16.vlgmr.msra.gmra.mrb[0].mxu1 %v4625_v27 }
  0xf0   : > { %940 = vmatprep.mubr.bf16.mxu1 %v4629_v3 }
  0xf3   : > { %4380 = vmatmul.mubr.msk.bf16.gmra.mrb[4].mxu0 %vm891_vm8, %v4628_v28  ;;  %v1016_v31 = vpop.permute.xlu1 %1015 }
  0xf4   : > { %1774 = vmatprep.mubr.bf16.mxu0 %v4741_v12  ;;  %v1011_v32 = vpop.permute.xlu0 %1010 }
  0xf7   : > { %941 = vmatmul.mubr.bf16.gmra.mrb[4].mxu1 %v4631_v30  ;;  %v1043_v45 = vpop.permute.xlu1 %1042 }
  0xf8   : > { %v1048_v49 = vpop.permute.xlu0 %1047 }
  0xfb   : > { %v1021_v0 = vpop.permute.xlu1 %1020 }
  0xfc   : > { %v1026_v6 = vpop.permute.xlu0 %1025 }
  0xff   : > { %v1053_v28 = vpop.permute.xlu1 %1052 }
 0x100   : > { %v1058_v30 = vpop.permute.xlu0 %1057 }
 0x1be   : > { %v985_v33 = vpop.f32.mrb[0].mxu0 }
 0x1bf   : > { %v987_v35 = vpop.f32.mrb[1].mxu0 }
 0x1c0   : > { %v989_v36 = vpop.f32.mrb[2].mxu0 }
 0x1c1   : > { %v991_v39 = vpop.f32.mrb[3].mxu0 }
 0x1c2   : > { %v932_v10 = vpop.f32.mrb[0].mxu1 }
 0x1c3   : > { %v986_v46 = vadd.f32 %v985_v33, %v932_v10  ;;  %v934_v48 = vpop.f32.mrb[1].mxu1 }
 0x1c4   : > { %v988_v50 = vadd.f32 %v987_v35, %v934_v48  ;;  %v936_v51 = vpop.f32.mrb[2].mxu1  ;;  %v4412_v48 = vld [vmem:[%s6097_s2 + $0x20] sm:$0xff] }
 0x1c5   : > { %v1028_v52 = vmul.f32 %v1011_v32, %v986_v46  ;;  %v990_v53 = vadd.f32 %v989_v36, %v936_v51  ;;  %v938_v55 = vpop.f32.mrb[3].mxu1  ;;  %v4413_v46 = vld [vmem:[%s6097_s2 + $0x28] sm:$0xff]  ;;  %v4415_v51 = vld [vmem:[%s6097_s2 + $0x38] sm:$0xff] }
 0x1c6   : > { %v1029_v56 = vmul.f32 %v1011_v32, %v988_v50  ;;  %v992_v57 = vadd.f32 %v991_v39, %v938_v55  ;;  %v995_v58 = vpop.f32.mrb[4].mxu0  ;;  %v4416_v50 = vld [vmem:[%s6098_s3 + $0x20] sm:$0xff]  ;;  %v4418_v55 = vld [vmem:[%s6098_s3 + $0x30] sm:$0xff] }
 0x1c7   : > { %v1030_v59 = vmul.f32 %v1016_v31, %v990_v53  ;;  %v997_v60 = vpop.f32.mrb[5].mxu0  ;;  %v5144_v1 = vadd.f32 %v1043_v45, %v1028_v52  ;;  %v4414_v52 = vld [vmem:[%s6097_s2 + $0x30] sm:$0xff]  ;;  %v4419_v53 = vld [vmem:[%s6098_s3 + $0x38] sm:$0xff] }
 0x1c8   : > { %v1031_v61 = vmul.f32 %v1016_v31, %v992_v57  ;;  %v999_v63 = vpop.f32.mrb[6].mxu0  ;;  %v5148_v9 = vadd.f32 %v1043_v45, %v1029_v56  ;;  %v4634_v45 = vld [vmem:[%s6096_s1 + $0x34] ss:$12 sps:$4 sm:$0xff]  }
 0x1c9   : > { %v5146_v4 = vadd.f32 %v1048_v49, %v1030_v59  ;;  %v1001_v5 = vpop.f32.mrb[7].mxu0  ;;  %1721 = vmatprep.mubr.bf16.mxu1 %v4634_v45 }
 0x1ca   : > { %v5150_v14 = vadd.f32 %v1048_v49, %v1031_v61  ;;  %v942_v15 = vpop.f32.mrb[4].mxu1  ;;  %v4417_v49 = vld [vmem:[%s6098_s3 + $0x28] sm:$0xff] }
 0x1cb   : > { %v5154_v16 = vpack.c.bf16 %v5146_v4, %v5144_v1  ;;  %v996_v7 = vadd.f32 %v995_v58, %v942_v15  ;;  %v944_v18 = vpop.f32.mrb[5].mxu1 }
 0x1cc   : > { %v5158_v19 = vpack.c.bf16 %v5150_v14, %v5148_v9  ;;  %v998_v21 = vadd.f32 %v997_v60, %v944_v18  ;;  %v946_v22 = vpop.f32.mrb[6].mxu1 }
 0x1cd   : > { %v1032_v24 = vmul.f32 %v1021_v0, %v996_v7  ;;  %v1000_v11 = vadd.f32 %v999_v63, %v946_v22  ;;  %v948_v25 = vpop.f32.mrb[7].mxu1  ;;  %1080 = vrot.lane.b32.xlu0 %v5154_v16, %s4733_s21 }
 0x1ce   : > { %v1033_v26 = vmul.f32 %v1021_v0, %v998_v21  ;;  %v1002_v27 = vadd.f32 %v1001_v5, %v948_v25  ;;  %1074 = vrot.lane.b32.xlu1 %v5158_v19, %s4733_s21 }
 0x1cf   : > { %v1034_v3 = vmul.f32 %v1026_v6, %v1000_v11  ;;  %v5164_v32 = vadd.f32 %v1053_v28, %v1032_v24 }
 0x1d0   : > { %v1035_v31 = vmul.f32 %v1026_v6, %v1002_v27  ;;  %v5168_v35 = vadd.f32 %v1053_v28, %v1033_v26 }
 0x1d1   : > { %v5166_v33 = vadd.f32 %v1058_v30, %v1034_v3 }
 0x1d2   : > { %v5170_v36 = vadd.f32 %v1058_v30, %v1035_v31 }
 0x1d3   : > { %v5174_v39 = vpack.c.bf16 %v5166_v33, %v5164_v32 }
 0x1d4   : > { %v5178_v10 = vpack.c.bf16 %v5170_v36, %v5168_v35 }
 0x1d5   : > { %1082 = vrot.lane.b32.xlu0 %v5174_v39, %s4733_s21 }
 0x1d6   : > { %1076 = vrot.lane.b32.xlu1 %v5178_v10, %s4733_s21 }
 0x1d9   : > { %1146 = vrot.lane.b32.xlu0 %v5154_v16, %s4734_s27 }
 0x1da   : > { %1142 = vrot.lane.b32.xlu1 %v5158_v19, %s4734_s27 }
 0x1dd   : > { %1148 = vrot.lane.b32.xlu0 %v5174_v39, %s4734_s27 }
 0x1de   : > { %1144 = vrot.lane.b32.xlu1 %v5178_v10, %s4734_s27 }
 0x1e1   : > { %1212 = vrot.lane.b32.xlu0 %v5154_v16, %s4735_s8 }
 0x1e2   : > { %1208 = vrot.lane.b32.xlu1 %v5158_v19, %s4735_s8 }
 0x1e5   : > { %1214 = vrot.lane.b32.xlu0 %v5174_v39, %s4735_s8 }
 0x1e6   : > { %1210 = vrot.lane.b32.xlu1 %v5178_v10, %s4735_s8 }
 0x1e9   : > { %1278 = vrot.lane.b32.xlu0 %v5154_v16, %s4736_s10 }
 0x1ea   : > { %1274 = vrot.lane.b32.xlu1 %v5158_v19, %s4736_s10 }
 0x1ed   : > { %1280 = vrot.lane.b32.xlu0 %v5174_v39, %s4736_s10 }
 0x1ee   : > { %1276 = vrot.lane.b32.xlu1 %v5178_v10, %s4736_s10 }
 0x1f1   : > { %1346 = vrot.lane.b32.xlu0 %v5158_v19, %s4737_s11 }
 0x1f2   : > { %1344 = vrot.lane.b32.xlu1 %v5154_v16, %s4737_s11 }
 0x1f5   : > { %1412 = vrot.lane.b32.xlu0 %v5158_v19, %s4738_s12 }
 0x1f6   : > { %1348 = vrot.lane.b32.xlu1 %v5174_v39, %s4737_s11 }
 0x1f9   : > { %1478 = vrot.lane.b32.xlu0 %v5158_v19, %s4739_s15 }
 0x1fa   : > { %1410 = vrot.lane.b32.xlu1 %v5154_v16, %s4738_s12 }
 0x1fd   : > { %1350 = vrot.lane.b32.xlu0 %v5178_v10, %s4737_s11 }
 0x1fe   : > { %1414 = vrot.lane.b32.xlu1 %v5174_v39, %s4738_s12 }
 0x201   : > { %1544 = vrot.lane.b32.xlu0 %v5158_v19, %s4740_s16 }
 0x202   : > { %1476 = vrot.lane.b32.xlu1 %v5154_v16, %s4739_s15 }
 0x205   : > { %1416 = vrot.lane.b32.xlu0 %v5178_v10, %s4738_s12 }
 0x206   : > { %1542 = vrot.lane.b32.xlu1 %v5154_v16, %s4740_s16 }
 0x209   : > { %1482 = vrot.lane.b32.xlu0 %v5178_v10, %s4739_s15 }
 0x20a   : > { %1480 = vrot.lane.b32.xlu1 %v5174_v39, %s4739_s15 }
 0x20d   : > { %1548 = vrot.lane.b32.xlu0 %v5178_v10, %s4740_s16 }
 0x20e   : > { %1546 = vrot.lane.b32.xlu1 %v5174_v39, %s4740_s16 }
 0x211   : > { %1807 = vperm.xlu0 %4622, %v4413_v46  }
 0x212   : > { %1802 = vperm.xlu1 %4623, %v4412_v48  }
 0x215   : > { %1840 = vperm.xlu0 %4622, %v4417_v49  }
 0x216   : > { %1835 = vperm.xlu1 %4623, %v4416_v50  }
 0x219   : > { %1817 = vperm.xlu0 %4622, %v4415_v51  }
 0x21a   : > { %1812 = vperm.xlu1 %4623, %v4414_v52  }
 0x21d   : > { %1850 = vperm.xlu0 %4622, %v4419_v53  }
 0x21e   : > { %1845 = vperm.xlu1 %4623, %v4418_v55  }
 0x23f   : > { %v1081_v56 = vpop.permute.xlu0 %1080 }
 0x240   : > { %v1075_v57 = vpop.permute.xlu1 %1074 }
 0x241   : > { %v1084_v58 = vsel %vm270_vm0, %v1081_v56, %v1075_v57  ;;  %v1090_v59 = vsel %vm270_vm0, %v1075_v57, %v1081_v56 }
 0x242   : > { %v1134_v60 = vmul.bf16 %v1090_v59, %v4986_v43  ;;  %v1135_v61 = vmul.bf16 %v1084_v58, %v4983_v42 }
 0x244   : > { %1689 = vmatprep.subr.bf16.mxu1 %v1135_v61 }
 0x245   : > { %1690 = vmatpush1.bf16.msra.mxu1 %v1134_v60 }
 0x247   : > { %v1083_v63 = vpop.permute.xlu0 %1082 }
 0x248   : > { %v1077_v0 = vpop.permute.xlu1 %1076 }
 0x249   : > { %v1085_v5 = vsel %vm270_vm0, %v1083_v63, %v1077_v0  ;;  %v1094_v6 = vsel %vm270_vm0, %v1077_v0, %v1083_v63 }
 0x24a   : > { %v1136_v15 = vmul.bf16 %v1094_v6, %v4986_v43  ;;  %v1137_v7 = vmul.bf16 %v1085_v5, %v4983_v42 }
 0x24b   : > { %v1147_v18 = vpop.permute.xlu0 %1146 }
 0x24c   : > { %v1143_v21 = vpop.permute.xlu1 %1142  ;;  %1691 = vmatprep.subr.bf16.mxu1 %v1137_v7 }
 0x24d   : > { %v1150_v22 = vsel %vm338_vm1, %v1147_v18, %v1143_v21  ;;  %v1156_v24 = vsel %vm338_vm1, %v1143_v21, %v1147_v18  ;;  %1692 = vmatpush1.bf16.msra.mxu1 %v1136_v15 }
 0x24e   : > { %v1200_v11 = vmul.bf16 %v1156_v24, %v5004_v62  ;;  %v1201_v25 = vmul.bf16 %v1150_v22, %v4994_v54 }
 0x24f   : > { %v1149_v26 = vpop.permute.xlu0 %1148 }
 0x250   : > { %v1145_v27 = vpop.permute.xlu1 %1144  ;;  %1693 = vmatprep.subr.bf16.mxu1 %v1201_v25 }
 0x251   : > { %v1151_v3 = vsel %vm338_vm1, %v1149_v26, %v1145_v27  ;;  %v1160_v43 = vsel %vm338_vm1, %v1145_v27, %v1149_v26  ;;  %1694 = vmatpush1.bf16.msra.mxu1 %v1200_v11 }
 0x252   : > { %v1202_v42 = vmul.bf16 %v1160_v43, %v5004_v62  ;;  %v1203_v28 = vmul.bf16 %v1151_v3, %v4994_v54 }
 0x253   : > { %v1213_v30 = vpop.permute.xlu0 %1212 }
 0x254   : > { %v1209_v31 = vpop.permute.xlu1 %1208  ;;  %1695 = vmatprep.subr.bf16.mxu1 %v1203_v28 }
 0x255   : > { %v1216_v45 = vsel %vm407_vm2, %v1213_v30, %v1209_v31  ;;  %v1222_v46 = vsel %vm407_vm2, %v1209_v31, %v1213_v30  ;;  %1696 = vmatpush1.bf16.msra.mxu1 %v1202_v42 }
 0x256   : > { %v1266_v48 = vmul.bf16 %v1222_v46, %v5021_v23  ;;  %v1267_v49 = vmul.bf16 %v1216_v45, %v5015_v17 }
 0x257   : > { %v1215_v50 = vpop.permute.xlu0 %1214 }
 0x258   : > { %v1211_v51 = vpop.permute.xlu1 %1210  ;;  %1697 = vmatprep.subr.bf16.mxu1 %v1267_v49 }
 0x259   : > { %v1217_v52 = vsel %vm407_vm2, %v1215_v50, %v1211_v51  ;;  %v1226_v62 = vsel %vm407_vm2, %v1211_v51, %v1215_v50  ;;  %1698 = vmatpush1.bf16.msra.mxu1 %v1266_v48 }
 0x25a   : > { %v1268_v54 = vmul.bf16 %v1226_v62, %v5021_v23  ;;  %v1269_v53 = vmul.bf16 %v1217_v52, %v5015_v17 }
 0x25b   : > { %v1279_v55 = vpop.permute.xlu0 %1278 }
 0x25c   : > { %v1275_v56 = vpop.permute.xlu1 %1274  ;;  %1699 = vmatprep.subr.bf16.mxu1 %v1269_v53 }
 0x25d   : > { %v1282_v57 = vsel %vm476_vm3, %v1279_v55, %v1275_v56  ;;  %v1288_v58 = vsel %vm476_vm3, %v1275_v56, %v1279_v55  ;;  %1700 = vmatpush1.bf16.msra.mxu1 %v1268_v54 }
 0x25e   : > { %v1332_v59 = vmul.bf16 %v1288_v58, %v5036_v44  ;;  %v1333_v60 = vmul.bf16 %v1282_v57, %v5031_v37 }
 0x25f   : > { %v1281_v61 = vpop.permute.xlu0 %1280 }
 0x260   : > { %v1277_v63 = vpop.permute.xlu1 %1276  ;;  %1701 = vmatprep.subr.bf16.mxu1 %v1333_v60 }
 0x261   : > { %v1283_v0 = vsel %vm476_vm3, %v1281_v61, %v1277_v63  ;;  %v1292_v23 = vsel %vm476_vm3, %v1277_v63, %v1281_v61  ;;  %1702 = vmatpush1.bf16.msra.mxu1 %v1332_v59 }
 0x262   : > { %v1334_v17 = vmul.bf16 %v1292_v23, %v5036_v44  ;;  %v1335_v5 = vmul.bf16 %v1283_v0, %v5031_v37 }
 0x263   : > { %v1347_v6 = vpop.permute.xlu0 %1346 }
 0x264   : > { %v1345_v15 = vpop.permute.xlu1 %1344  ;;  %1703 = vmatprep.subr.bf16.mxu1 %v1335_v5  ;;  %v4632_v5 = vld [vmem:[%s6096_s1 + $0x30] ss:$12 sps:$4 sm:$0xff]  }
 0x265   : > { %1704 = vmatpush1.bf16.msra.mxu1 %v1334_v17  ;;  %v1358_v21 = vsel %vm549_vm4, %v1347_v6, %v1345_v15  ;;  %v1352_v24 = vsel %vm549_vm4, %v1345_v15, %v1347_v6 }
 0x266   : > { %1705 = vmatprep.subr.bf16.mxu1 %v5158_v19  ;;  %v1403_v37 = vmul.bf16 %v1358_v21, %v5058_v13  ;;  %v1402_v11 = vmul.bf16 %v1352_v24, %v5070_v20 }
 0x267   : > { %v1413_v7 = vpop.permute.xlu0 %1412 }
 0x268   : > { %v1349_v18 = vpop.permute.xlu1 %1348 }
 0x269   : > { %1706 = vmatpush1.bf16.msra.mxu1 %v5154_v16 }
 0x26a   : > { %1707 = vmatprep.subr.bf16.mxu1 %v5178_v10 }
 0x26b   : > { %v1479_v22 = vpop.permute.xlu0 %1478 }
 0x26c   : > { %v1411_v44 = vpop.permute.xlu1 %1410 }
 0x26d   : > { %1708 = vmatpush1.bf16.msra.mxu1 %v5174_v39  ;;  %v1424_v16 = vsel %vm618_vm5, %v1413_v7, %v1411_v44  ;;  %v1418_v39 = vsel %vm618_vm5, %v1411_v44, %v1413_v7 }
 0x26e   : > { %1709 = vmatprep.subr.bf16.mxu1 %v1403_v37  ;;  %v1469_v28 = vmul.bf16 %v1424_v16, %v5081_v38  ;;  %v1468_v30 = vmul.bf16 %v1418_v39, %v5093_v47 }
 0x26f   : > { %v1351_v19 = vpop.permute.xlu0 %1350 }
 0x270   : > { %v1353_v25 = vsel %vm549_vm4, %v1349_v18, %v1351_v19  ;;  %v1362_v26 = vsel %vm549_vm4, %v1351_v19, %v1349_v18  ;;  %v1415_v27 = vpop.permute.xlu1 %1414 }
 0x271   : > { %1710 = vmatpush1.bf16.msra.mxu1 %v1402_v11  ;;  %v1405_v10 = vmul.bf16 %v1362_v26, %v5058_v13  ;;  %v1404_v3 = vmul.bf16 %v1353_v25, %v5070_v20 }
 0x273   : > { %1711 = vmatprep.subr.bf16.mxu1 %v1405_v10  ;;  %v1545_v43 = vpop.permute.xlu0 %1544 }
 0x274   : > { %v1477_v42 = vpop.permute.xlu1 %1476 }
 0x275   : > { %1712 = vmatpush1.bf16.msra.mxu1 %v1404_v3  ;;  %v1490_v13 = vsel %vm687_vm7, %v1479_v22, %v1477_v42  ;;  %v1484_v53 = vsel %vm687_vm7, %v1477_v42, %v1479_v22 }
 0x276   : > { %1713 = vmatprep.subr.bf16.mxu1 %v1469_v28  ;;  %v1535_v56 = vmul.bf16 %v1490_v13, %v5107_v2 }
 0x277   : > { %v1417_v31 = vpop.permute.xlu0 %1416 }
 0x278   : > { %v1419_v45 = vsel %vm618_vm5, %v1415_v27, %v1417_v31  ;;  %v1428_v46 = vsel %vm618_vm5, %v1417_v31, %v1415_v27  ;;  %v1543_v48 = vpop.permute.xlu1 %1542 }
 0x279   : > { %v1550_v20 = vsel %vm756_vm6, %v1543_v48, %v1545_v43  ;;  %v1556_v49 = vsel %vm756_vm6, %v1545_v43, %v1543_v48  ;;  %1714 = vmatpush1.bf16.msra.mxu1 %v1468_v30  ;;  %v1471_v50 = vmul.bf16 %v1428_v46, %v5081_v38  ;;  %v1470_v62 = vmul.bf16 %v1419_v45, %v5093_v47 }
 0x27a   : > { %v1600_v51 = vmul.bf16 %v1550_v20, %v5089_v41  ;;  %v1601_v52 = vmul.bf16 %v1556_v49, %v5086_v40  ;;  %v1534_v38 = vmul.bf16 %v1484_v53, %v5112_v8 }
 0x27b   : > { %1715 = vmatprep.subr.bf16.mxu1 %v1471_v50  ;;  %v1483_v54 = vpop.permute.xlu0 %1482 }
 0x27c   : > { %v1481_v55 = vpop.permute.xlu1 %1480  ;;  %1742 = vmatprep.subr.bf16.mxu0 %v1601_v52 }
 0x27d   : > { %v1494_v57 = vsel %vm687_vm7, %v1483_v54, %v1481_v55  ;;  %1716 = vmatpush1.bf16.msra.mxu1 %v1470_v62  ;;  %1743 = vmatpush1.bf16.msra.mxu0 %v1600_v51  ;;  %v1485_v59 = vsel %vm687_vm7, %v1481_v55, %v1483_v54 }
 0x27e   : > { %1717 = vmatprep.subr.bf16.mxu1 %v1535_v56  ;;  %v1537_v47 = vmul.bf16 %v1494_v57, %v5107_v2  ;;  %v1536_v17 = vmul.bf16 %v1485_v59, %v5112_v8  ;;  %v4635_v2 = vld [vmem:[%s6096_s1 + $0x38] ss:$12 sps:$4 sm:$0xff]   ;;  %v4639_v8 = vld [vmem:[%s6096_s1 + $0x50] ss:$12 sps:$4 sm:$0xff]  }
 0x27f   : > { %v1549_v58 = vpop.permute.xlu0 %1548 }
 0x280   : > { %v1547_v60 = vpop.permute.xlu1 %1546 }
 0x281   : > { %v1551_v61 = vsel %vm756_vm6, %v1547_v60, %v1549_v58  ;;  %v1560_v63 = vsel %vm756_vm6, %v1549_v58, %v1547_v60  ;;  %1718 = vmatpush1.bf16.msra.mxu1 %v1534_v38 }
 0x282   : > { %v1602_v0 = vmul.bf16 %v1551_v61, %v5089_v41  ;;  %1719 = vmatprep.subr.bf16.mxu1 %v1537_v47  ;;  %v1603_v23 = vmul.bf16 %v1560_v63, %v5086_v40  ;;  %v4636_v41 = vld [vmem:[%s6096_s1 + $0x4c] ss:$12 sps:$4 sm:$0xff]   ;;  %v4638_v40 = vld [vmem:[%s6096_s1 + $0x48] ss:$12 sps:$4 sm:$0xff]  }
 0x284   : > { %1744 = vmatprep.subr.bf16.mxu0 %v1603_v23 }
 0x285   : > { %1720 = vmatpush1.bf16.msra.mxu1 %v1536_v17  ;;  %1745 = vmatpush1.bf16.msra.mxu0 %v1602_v0 }
 0x288   : > { %1722 = vmatmul.mubr.bf16.vlgmr.msra.gmra.mrb[8].mxu1 %v4632_v5  ;;  %4410 = vmatmul.mubr.msk.bf16.vlgmr.msra.gmra.mrb[8].mxu0 %vm891_vm8, %v4635_v2 }
 0x289   : > { %1731 = vmatprep.mubr.bf16.mxu1 %v4636_v41  ;;  %1784 = vmatprep.mubr.bf16.mxu0 %v4741_v12 }
 0x290   : > { %1732 = vmatmul.mubr.bf16.gmra.mrb[12].mxu1 %v4638_v40  ;;  %4411 = vmatmul.mubr.msk.bf16.gmra.mrb[12].mxu0 %vm891_vm8, %v4639_v8  ;;  %v1808_v6 = vpop.permute.xlu0 %1807 }
 0x291   : > { %v1803_v15 = vpop.permute.xlu1 %1802 }
 0x294   : > { %v1841_v7 = vpop.permute.xlu0 %1840 }
 0x295   : > { %v1836_v18 = vpop.permute.xlu1 %1835 }
 0x298   : > { %v1818_v45 = vpop.permute.xlu0 %1817 }
 0x299   : > { %v1813_v28 = vpop.permute.xlu1 %1812 }
 0x29d   : > { %v1846_v0 = vpop.permute.xlu1 %1845 }
 0x35b   : > { %v1723_v21 = vpop.f32.mrb[8].mxu1  ;;  %v1776_v22 = vpop.f32.mrb[8].mxu0 }
 0x35c   : > { %v1777_v24 = vadd.f32 %v1776_v22, %v1723_v21  ;;  %v1725_v44 = vpop.f32.mrb[9].mxu1  ;;  %v1778_v37 = vpop.f32.mrb[9].mxu0 }
 0x35d   : > { %v1779_v11 = vadd.f32 %v1778_v37, %v1725_v44  ;;  %v1727_v19 = vpop.f32.mrb[10].mxu1  ;;  %v1780_v25 = vpop.f32.mrb[10].mxu0 }
 0x35e   : > { %v1820_v26 = vmul.f32 %v1803_v15, %v1777_v24  ;;  %v1781_v27 = vadd.f32 %v1780_v25, %v1727_v19  ;;  %v1729_v16 = vpop.f32.mrb[11].mxu1  ;;  %v1782_v10 = vpop.f32.mrb[11].mxu0 }
 0x35f   : > { %v1821_v3 = vmul.f32 %v1803_v15, %v1779_v11  ;;  %v1783_v43 = vadd.f32 %v1782_v10, %v1729_v16 }
 0x360   : > { %v1853_v39 = vadd.f32 %v1836_v18, %v1820_v26  ;;  %v1822_v42 = vmul.f32 %v1808_v6, %v1781_v27 }
 0x361   : > { %v1854_v30 = vadd.f32 %v1836_v18, %v1821_v3  ;;  %v1823_v31 = vmul.f32 %v1808_v6, %v1783_v43  ;;  %v1851_v18 = vpop.permute.xlu0 %1850 }
 0x362   : > { %vm1861_vm9 = vcmp.ge.f32.partialorder %v1853_v39, 0.0  ;;  %v1869_v46 = vmul.f32 0.01, %v1853_v39  ;;  %v1855_v48 = vadd.f32 %v1841_v7, %v1822_v42  ;;  %v4455_v42 = vld [vmem:[%s6098_s3 + $0x40] sm:$0xff] }
 0x363   : > { %vm1862_vm10 = vcmp.ge.f32.partialorder %v1854_v30, 0.0  ;;  %v1870_v13 = vmul.f32 0.01, %v1854_v30  ;;  %v1856_v20 = vadd.f32 %v1841_v7, %v1823_v31  ;;  %v1733_v49 = vpop.f32.mrb[12].mxu1  ;;  %v1786_v50 = vpop.f32.mrb[12].mxu0  ;;  %v4458_v31 = vld [vmem:[%s6098_s3 + $0x58] sm:$0xff] }
 0x364   : > { %v1877_v51 = vsel %vm1861_vm9, %v1853_v39, %v1869_v46  ;;  %vm1863_vm11 = vcmp.ge.f32.partialorder %v1855_v48, 0.0  ;;  %v1871_v52 = vmul.f32 0.01, %v1855_v48  ;;  %v1787_v62 = vadd.f32 %v1786_v50, %v1733_v49  ;;  %v1735_v54 = vpop.f32.mrb[13].mxu1  ;;  %v1788_v53 = vpop.f32.mrb[13].mxu0 }
 0x365   : > { %v1878_v55 = vsel %vm1862_vm10, %v1854_v30, %v1870_v13  ;;  %vm1864_vm12 = vcmp.ge.f32.partialorder %v1856_v20, 0.0  ;;  %v1872_v56 = vmul.f32 0.01, %v1856_v20  ;;  %v1737_v57 = vpop.f32.mrb[14].mxu1  ;;  %v1790_v38 = vpop.f32.mrb[14].mxu0  ;;  %v5354_v58 = vadd.f32 %v1877_v51, %v5144_v1  ;;  %v4453_v30 = vld [vmem:[%s6097_s2 + $0x50] sm:$0xff] }
 0x366   : > { %v1879_v59 = vsel %vm1863_vm11, %v1855_v48, %v1871_v52  ;;  %v1824_v60 = vmul.f32 %v1813_v28, %v1787_v62  ;;  %v1789_v47 = vadd.f32 %v1788_v53, %v1735_v54  ;;  %v1739_v61 = vpop.f32.mrb[15].mxu1  ;;  %v1792_v63 = vpop.f32.mrb[15].mxu0  ;;  %v1791_v5 = vadd.f32 %v1790_v38, %v1737_v57  ;;  %v4420_v46 = vld.sshfl [vmem:[%s6099_s4] sm:$0x11 pattern:$0x75316420] }
 0x367   : > { %v5357_v23 = vadd.f32 %v1879_v59, %v5146_v4  ;;  %v1880_v17 = vsel %vm1864_vm12, %v1856_v20, %v1872_v56  ;;  %v1793_v2 = vadd.f32 %v1792_v63, %v1739_v61  ;;  %v5360_v41 = vadd.f32 %v1878_v55, %v5148_v9  ;;  %v4422_v51 = vld.sshfl [vmem:[%s6099_s4 + $0x2] sm:$0x11 pattern:$0x75316420] }
 0x368   : > { %v5363_v40 = vadd.f32 %v1880_v17, %v5150_v14  ;;  %v1857_v1 = vadd.f32 %v1846_v0, %v1824_v60  ;;  %v1825_v8 = vmul.f32 %v1813_v28, %v1789_v47  ;;  %v1826_v15 = vmul.f32 %v1818_v45, %v1791_v5  ;;  %v4454_v28 = vld [vmem:[%s6097_s2 + $0x58] sm:$0xff]  ;;  %v4424_v61 = vld.sshfl [vmem:[%s6099_s4 + $0x4] sm:$0x11 pattern:$0x75316420] }
 0x369   : > { %v5367_v6 = vpack.c.bf16 %v5357_v23, %v5354_v58  ;;  %v1827_v7 = vmul.f32 %v1818_v45, %v1793_v2  ;;  %v4457_v45 = vld [vmem:[%s6098_s3 + $0x50] sm:$0xff]  ;;  %v1930_v48 = vcombine.high %v4420_v46, %v4420_v46  ;;  %v1937_v13 = vrot.slane %v4420_v46, %v4968_v29 }
 0x36a   : > { %v5371_v4 = vpack.c.bf16 %v5363_v40, %v5360_v41  ;;  %vm1865_vm13 = vcmp.ge.f32.partialorder %v1857_v1, 0.0  ;;  %v1873_v21 = vmul.f32 0.01, %v1857_v1  ;;  %v1858_v9 = vadd.f32 %v1846_v0, %v1825_v8 }
 0x36b   : > { %v1859_v22 = vadd.f32 %v1851_v18, %v1826_v15  ;;  %v1860_v24 = vadd.f32 %v1851_v18, %v1827_v7  ;;  %1905 = vrot.lane.b32.xlu0 %v5367_v6, %s4733_s21  ;;  %v1944_v20 = vrot.slane %v1930_v48, %v4968_v29  ;;  %v1946_v49 = vpack.i.b16 %v1937_v13, %v1937_v13 }
 0x36c   : > { %vm1866_vm14 = vcmp.ge.f32.partialorder %v1858_v9, 0.0  ;;  %v1874_v14 = vmul.f32 0.01, %v1858_v9  ;;  %1899 = vrot.lane.b32.xlu1 %v5371_v4, %s4733_s21  ;;  %v1881_v44 = vsel %vm1865_vm13, %v1857_v1, %v1873_v21  ;;  %v1996_v53 = vcombine.high %v4422_v51, %v4422_v51 }
 0x36d   : > { %vm1867_vm15 = vcmp.ge.f32.partialorder %v1859_v22, 0.0  ;;  %v1875_v37 = vmul.f32 0.01, %v1859_v22  ;;  %vm1868_vm9 = vcmp.ge.f32.partialorder %v1860_v24, 0.0  ;;  %v1876_v19 = vmul.f32 0.01, %v1860_v24 }
 0x36e   : > { %v1882_v11 = vsel %vm1866_vm14, %v1858_v9, %v1874_v14  ;;  %v5378_v26 = vadd.f32 %v1881_v44, %v5164_v32  ;;  %v4642_v32 = vld [vmem:[%s6096_s1 + $0x64] ss:$12 sps:$4 sm:$0xff]   ;;  %v1953_v50 = vpack.i.b16 %v1944_v20, %v1944_v20  ;;  %v5493_v52 = vrot.slane %v1946_v49, %v4975_v34 }
 0x36f   : > { %v1883_v25 = vsel %vm1867_vm15, %v1859_v22, %v1875_v37  ;;  %v1884_v16 = vsel %vm1868_vm9, %v1860_v24, %v1876_v19  ;;  %v5384_v10 = vadd.f32 %v1882_v11, %v5168_v35  ;;  %2546 = vmatprep.mubr.bf16.mxu0 %v4642_v32  ;;  %v4451_v35 = vld [vmem:[%s6097_s2 + $0x40] sm:$0xff]  ;;  %v2003_v60 = vrot.slane %v4422_v51, %v4968_v29 }
 0x370   : > { %v5381_v27 = vadd.f32 %v1883_v25, %v5166_v33  ;;  %v5387_v3 = vadd.f32 %v1884_v16, %v5170_v36  ;;  %v4452_v33 = vld [vmem:[%s6097_s2 + $0x48] sm:$0xff]  ;;  %v5496_v62 = vrot.slane %v1953_v50, %v4975_v34  ;;  %v2010_v47 = vrot.slane %v1996_v53, %v4968_v29  ;;  %v4426_v14 = vld.sshfl [vmem:[%s6099_s4 + $0x6] sm:$0x11 pattern:$0x75316420] }
 0x371   : > { %v4456_v36 = vld [vmem:[%s6098_s3 + $0x48] sm:$0xff]  ;;  %v2062_v63 = vcombine.high %v4424_v61, %v4424_v61  ;;  %v2012_v0 = vpack.i.b16 %v2003_v60, %v2003_v60  ;;  %v2069_v15 = vrot.slane %v4424_v61, %v4968_v29  ;;  %v2135_v48 = vrot.slane %v4426_v14, %v4968_v29 }
 0x372   : > { %v5391_v43 = vpack.c.bf16 %v5381_v27, %v5378_v26  ;;  %v5395_v39 = vpack.c.bf16 %v5387_v3, %v5384_v10  ;;  %v2019_v17 = vpack.i.b16 %v2010_v47, %v2010_v47  ;;  %v4428_v47 = vld.sshfl [vmem:[%s6099_s4 + $0xa] sm:$0x11 pattern:$0x75316420] }
 0x373   : > { %v2076_v7 = vrot.slane %v2062_v63, %v4968_v29  ;;  %v5513_v21 = vrot.slane %v2012_v0, %v4975_v34  ;;  %v2078_v19 = vpack.i.b16 %v2069_v15, %v2069_v15 }
 0x374   : > { %1907 = vrot.lane.b32.xlu0 %v5391_v43, %s4733_s21  ;;  %1901 = vrot.lane.b32.xlu1 %v5395_v39, %s4733_s21  ;;  %v5517_v22 = vrot.slane %v2019_v17, %v4975_v34 }
 0x375   : > { %v2085_v25 = vpack.i.b16 %v2076_v7, %v2076_v7 }
 0x378   : > { %1971 = vrot.lane.b32.xlu0 %v5367_v6, %s4734_s27  ;;  %1967 = vrot.lane.b32.xlu1 %v5371_v4, %s4734_s27 }
 0x37c   : > { %1973 = vrot.lane.b32.xlu0 %v5391_v43, %s4734_s27  ;;  %1969 = vrot.lane.b32.xlu1 %v5395_v39, %s4734_s27 }
 0x380   : > { %2037 = vrot.lane.b32.xlu0 %v5367_v6, %s4735_s8  ;;  %2033 = vrot.lane.b32.xlu1 %v5371_v4, %s4735_s8 }
 0x384   : > { %2039 = vrot.lane.b32.xlu0 %v5391_v43, %s4735_s8  ;;  %2035 = vrot.lane.b32.xlu1 %v5395_v39, %s4735_s8 }
 0x388   : > { %2103 = vrot.lane.b32.xlu0 %v5367_v6, %s4736_s10  ;;  %2099 = vrot.lane.b32.xlu1 %v5371_v4, %s4736_s10 }
 0x38c   : > { %2105 = vrot.lane.b32.xlu0 %v5391_v43, %s4736_s10  ;;  %2101 = vrot.lane.b32.xlu1 %v5395_v39, %s4736_s10 }
 0x390   : > { %2171 = vrot.lane.b32.xlu0 %v5371_v4, %s4737_s11  ;;  %2169 = vrot.lane.b32.xlu1 %v5367_v6, %s4737_s11 }
 0x394   : > { %2175 = vrot.lane.b32.xlu0 %v5395_v39, %s4737_s11  ;;  %2173 = vrot.lane.b32.xlu1 %v5391_v43, %s4737_s11 }
 0x398   : > { %2237 = vrot.lane.b32.xlu0 %v5371_v4, %s4738_s12  ;;  %2235 = vrot.lane.b32.xlu1 %v5367_v6, %s4738_s12 }
 0x39c   : > { %2241 = vrot.lane.b32.xlu0 %v5395_v39, %s4738_s12  ;;  %2239 = vrot.lane.b32.xlu1 %v5391_v43, %s4738_s12 }
 0x3a0   : > { %2303 = vrot.lane.b32.xlu0 %v5371_v4, %s4739_s15  ;;  %2301 = vrot.lane.b32.xlu1 %v5367_v6, %s4739_s15 }
 0x3a4   : > { %2307 = vrot.lane.b32.xlu0 %v5395_v39, %s4739_s15  ;;  %2305 = vrot.lane.b32.xlu1 %v5391_v43, %s4739_s15 }
 0x3a8   : > { %2369 = vrot.lane.b32.xlu0 %v5371_v4, %s4740_s16  ;;  %2367 = vrot.lane.b32.xlu1 %v5367_v6, %s4740_s16 }
 0x3ac   : > { %2373 = vrot.lane.b32.xlu0 %v5395_v39, %s4740_s16  ;;  %2371 = vrot.lane.b32.xlu1 %v5391_v43, %s4740_s16 }
 0x3b0   : > { %2632 = vperm.xlu0 %4622, %v4452_v33   ;;  %2627 = vperm.xlu1 %4623, %v4451_v35   ;;  %v2128_v33 = vcombine.high %v4426_v14, %v4426_v14 }
 0x3b2   : > { %v2142_v13 = vrot.slane %v2128_v33, %v4968_v29 }
 0x3b4   : > { %2665 = vperm.xlu0 %4622, %v4456_v36   ;;  %2660 = vperm.xlu1 %4623, %v4455_v42  }
 0x3b8   : > { %2642 = vperm.xlu0 %4622, %v4454_v28   ;;  %2637 = vperm.xlu1 %4623, %v4453_v30   ;;  %v5529_v30 = vrot.slane %v2078_v19, %v4975_v34 }
 0x3bc   : > { %2675 = vperm.xlu0 %4622, %v4458_v31   ;;  %2670 = vperm.xlu1 %4623, %v4457_v45   ;;  %v5532_v31 = vrot.slane %v2085_v25, %v4975_v34 }
 0x3dd   : > { %v1906_v54 = vpop.permute.xlu0 %1905 }
 0x3de   : > { %v1900_v55 = vpop.permute.xlu1 %1899 }
 0x3df   : > { %v1909_v56 = vsel %vm270_vm0, %v1906_v54, %v1900_v55  ;;  %v1915_v57 = vsel %vm270_vm0, %v1900_v55, %v1906_v54  ;;  %v2144_v55 = vpack.i.b16 %v2135_v48, %v2135_v48 }
 0x3e0   : > { %v1959_v38 = vmul.bf16 %v5493_v52, %v1915_v57  ;;  %v1960_v59 = vmul.bf16 %v5496_v62, %v1909_v56  ;;  %v2151_v56 = vpack.i.b16 %v2142_v13, %v2142_v13 }
 0x3e1   : > { %v5549_v63 = vrot.slane %v2144_v55, %v4975_v34 }
 0x3e2   : > { %2514 = vmatprep.subr.bf16.mxu0 %v1960_v59  ;;  %v5553_v17 = vrot.slane %v2151_v56, %v4975_v34 }
 0x3e3   : > { %2515 = vmatpush1.bf16.msra.mxu0 %v1959_v38 }
 0x3e6   : > { %v1908_v5 = vpop.permute.xlu0 %1907  ;;  %v1902_v2 = vpop.permute.xlu1 %1901 }
 0x3e7   : > { %v1910_v1 = vsel %vm270_vm0, %v1908_v5, %v1902_v2  ;;  %v1919_v8 = vsel %vm270_vm0, %v1902_v2, %v1908_v5 }
 0x3e8   : > { %v1961_v18 = vmul.bf16 %v5493_v52, %v1919_v8  ;;  %v1962_v9 = vmul.bf16 %v5496_v62, %v1910_v1  ;;  %v2198_v1 = vcombine.high %v4428_v47, %v4428_v47 }
 0x3ea   : > { %v1972_v24 = vpop.permute.xlu0 %1971  ;;  %v1968_v44 = vpop.permute.xlu1 %1967  ;;  %2516 = vmatprep.subr.bf16.mxu0 %v1962_v9  ;;  %v2212_v14 = vrot.slane %v2198_v1, %v4968_v29 }
 0x3eb   : > { %v1975_v37 = vsel %vm338_vm1, %v1972_v24, %v1968_v44  ;;  %v1981_v11 = vsel %vm338_vm1, %v1968_v44, %v1972_v24  ;;  %2517 = vmatpush1.bf16.msra.mxu0 %v1961_v18 }
 0x3ec   : > { %v2025_v16 = vmul.bf16 %v5513_v21, %v1981_v11  ;;  %v2026_v32 = vmul.bf16 %v5517_v22, %v1975_v37  ;;  %v4430_v11 = vld.sshfl [vmem:[%s6099_s4 + $0xc] sm:$0x11 pattern:$0x75316420]  ;;  %v2221_v33 = vpack.i.b16 %v2212_v14, %v2212_v14 }
 0x3ee   : > { %v1974_v35 = vpop.permute.xlu0 %1973  ;;  %v1970_v36 = vpop.permute.xlu1 %1969  ;;  %2518 = vmatprep.subr.bf16.mxu0 %v2026_v32  ;;  %v2205_v32 = vrot.slane %v4428_v47, %v4968_v29 }
 0x3ef   : > { %v1976_v42 = vsel %vm338_vm1, %v1974_v35, %v1970_v36  ;;  %v1985_v28 = vsel %vm338_vm1, %v1970_v36, %v1974_v35  ;;  %2519 = vmatpush1.bf16.msra.mxu0 %v2025_v16  ;;  %v2264_v36 = vcombine.high %v4430_v11, %v4430_v11 }
 0x3f0   : > { %v2027_v45 = vmul.bf16 %v5513_v21, %v1985_v28  ;;  %v2028_v46 = vmul.bf16 %v5517_v22, %v1976_v42  ;;  %v2214_v42 = vpack.i.b16 %v2205_v32, %v2205_v32 }
 0x3f1   : > { %v2278_v48 = vrot.slane %v2264_v36, %v4968_v29 }
 0x3f2   : > { %v2038_v20 = vpop.permute.xlu0 %2037  ;;  %v2034_v49 = vpop.permute.xlu1 %2033  ;;  %2520 = vmatprep.subr.bf16.mxu0 %v2028_v46 }
 0x3f3   : > { %v2041_v50 = vsel %vm407_vm2, %v2038_v20, %v2034_v49  ;;  %v2047_v51 = vsel %vm407_vm2, %v2034_v49, %v2038_v20  ;;  %2521 = vmatpush1.bf16.msra.mxu0 %v2027_v45  ;;  %v5570_v45 = vrot.slane %v2221_v33, %v4975_v34  ;;  %v4432_v20 = vld.sshfl [vmem:[%s6099_s4 + $0xe] sm:$0x11 pattern:$0x75316420] }
 0x3f4   : > { %v2091_v54 = vmul.bf16 %v5529_v30, %v2047_v51  ;;  %v2092_v53 = vmul.bf16 %v5532_v31, %v2041_v50  ;;  %v2271_v50 = vrot.slane %v4430_v11, %v4968_v29  ;;  %v2330_v56 = vcombine.high %v4432_v20, %v4432_v20 }
 0x3f6   : > { %v2040_v57 = vpop.permute.xlu0 %2039  ;;  %v2036_v38 = vpop.permute.xlu1 %2035  ;;  %2522 = vmatprep.subr.bf16.mxu0 %v2092_v53  ;;  %v2287_v53 = vpack.i.b16 %v2278_v48, %v2278_v48 }
 0x3f7   : > { %v2042_v59 = vsel %vm407_vm2, %v2040_v57, %v2036_v38  ;;  %v2051_v60 = vsel %vm407_vm2, %v2036_v38, %v2040_v57  ;;  %2523 = vmatpush1.bf16.msra.mxu0 %v2091_v54  ;;  %v2280_v57 = vpack.i.b16 %v2271_v50, %v2271_v50 }
 0x3f8   : > { %v2093_v61 = vmul.bf16 %v5529_v30, %v2051_v60  ;;  %v2094_v0 = vmul.bf16 %v5532_v31, %v2042_v59  ;;  %v5591_v47 = vrot.slane %v2287_v53, %v4975_v34 }
 0x3f9   : > { %v5600_v1 = vrot.slane %v2280_v57, %v4975_v34 }
 0x3fa   : > { %v2104_v5 = vpop.permute.xlu0 %2103  ;;  %v2100_v2 = vpop.permute.xlu1 %2099  ;;  %2524 = vmatprep.subr.bf16.mxu0 %v2094_v0  ;;  %v2344_v0 = vrot.slane %v2330_v56, %v4968_v29 }
 0x3fb   : > { %v2107_v8 = vsel %vm476_vm3, %v2104_v5, %v2100_v2  ;;  %v2113_v15 = vsel %vm476_vm3, %v2100_v2, %v2104_v5  ;;  %2525 = vmatpush1.bf16.msra.mxu0 %v2093_v61 }
 0x3fc   : > { %v2157_v7 = vmul.bf16 %v5549_v63, %v2113_v15  ;;  %v2158_v18 = vmul.bf16 %v5553_v17, %v2107_v8  ;;  %v2337_v15 = vrot.slane %v4432_v20, %v4968_v29 }
 0x3fe   : > { %v2106_v9 = vpop.permute.xlu0 %2105  ;;  %v2102_v24 = vpop.permute.xlu1 %2101  ;;  %2526 = vmatprep.subr.bf16.mxu0 %v2158_v18  ;;  %v2346_v11 = vpack.i.b16 %v2337_v15, %v2337_v15 }
 0x3ff   : > { %v2108_v44 = vsel %vm476_vm3, %v2106_v9, %v2102_v24  ;;  %v2117_v37 = vsel %vm476_vm3, %v2102_v24, %v2106_v9  ;;  %2527 = vmatpush1.bf16.msra.mxu0 %v2157_v7  ;;  %v2353_v9 = vpack.i.b16 %v2344_v0, %v2344_v0 }
 0x400   : > { %v2159_v19 = vmul.bf16 %v5549_v63, %v2117_v37  ;;  %v2160_v25 = vmul.bf16 %v5553_v17, %v2108_v44 }
 0x401   : > { %v5610_v32 = vrot.slane %v2353_v9, %v4975_v34  ;;  %v4645_v9 = vld [vmem:[%s6096_s1 + $0x78] ss:$12 sps:$4 sm:$0xff]  }
 0x402   : > { %v2172_v16 = vpop.permute.xlu0 %2171  ;;  %v2170_v35 = vpop.permute.xlu1 %2169  ;;  %2528 = vmatprep.subr.bf16.mxu0 %v2160_v25 }
 0x403   : > { %2529 = vmatpush1.bf16.msra.mxu0 %v2159_v19  ;;  %v2183_v13 = vsel %vm549_vm4, %v2172_v16, %v2170_v35  ;;  %v2177_v51 = vsel %vm549_vm4, %v2170_v35, %v2172_v16 }
 0x404   : > { %2530 = vmatprep.subr.bf16.mxu0 %v5371_v4  ;;  %v5580_v4 = vrot.slane %v2214_v42, %v4975_v34  ;;  %v2228_v54 = vmul.bf16 %v5570_v45, %v2183_v13 }
 0x406   : > { %v2176_v28 = vpop.permute.xlu0 %2175  ;;  %v2174_v46 = vpop.permute.xlu1 %2173 }
 0x407   : > { %2531 = vmatpush1.bf16.msra.mxu0 %v5367_v6  ;;  %v2187_v6 = vsel %vm549_vm4, %v2176_v28, %v2174_v46  ;;  %v2178_v59 = vsel %vm549_vm4, %v2174_v46, %v2176_v28  ;;  %v5616_v28 = vrot.slane %v2346_v11, %v4975_v34 }
 0x408   : > { %2532 = vmatprep.subr.bf16.mxu0 %v5395_v39  ;;  %v2227_v39 = vmul.bf16 %v5580_v4, %v2177_v51  ;;  %v2230_v60 = vmul.bf16 %v5570_v45, %v2187_v6  ;;  %v2229_v2 = vmul.bf16 %v5580_v4, %v2178_v59 }
 0x40a   : > { %v2238_v49 = vpop.permute.xlu0 %2237  ;;  %v2236_v55 = vpop.permute.xlu1 %2235 }
 0x40b   : > { %2533 = vmatpush1.bf16.msra.mxu0 %v5391_v43  ;;  %v2249_v5 = vsel %vm618_vm5, %v2238_v49, %v2236_v55  ;;  %v4434_v43 = vld.sshfl [vmem:[%s6099_s4 + $0x10] sm:$0x11 pattern:$0x75316420]  ;;  %v2243_v7 = vsel %vm618_vm5, %v2236_v55, %v2238_v49 }
 0x40c   : > { %2534 = vmatprep.subr.bf16.mxu0 %v2228_v54  ;;  %v2294_v18 = vmul.bf16 %v5591_v47, %v2249_v5  ;;  %v2396_v14 = vcombine.high %v4434_v43, %v4434_v43  ;;  %v2293_v37 = vmul.bf16 %v5600_v1, %v2243_v7  ;;  %v2403_v46 = vrot.slane %v4434_v43, %v4968_v29  ;;  %v4640_v5 = vld [vmem:[%s6096_s1 + $0x60] ss:$12 sps:$4 sm:$0xff]  }
 0x40e   : > { %v2242_v38 = vpop.permute.xlu0 %2241  ;;  %v2240_v61 = vpop.permute.xlu1 %2239  ;;  %v2410_v35 = vrot.slane %v2396_v14, %v4968_v29  ;;  %v2412_v53 = vpack.i.b16 %v2403_v46, %v2403_v46  ;;  %v4647_v14 = vld [vmem:[%s6096_s1 + $0x80] ss:$12 sps:$4 sm:$0xff]  }
 0x40f   : > { %2535 = vmatpush1.bf16.msra.mxu0 %v2227_v39  ;;  %v2253_v44 = vsel %vm618_vm5, %v2242_v38, %v2240_v61  ;;  %v2244_v25 = vsel %vm618_vm5, %v2240_v61, %v2242_v38 }
 0x410   : > { %2536 = vmatprep.subr.bf16.mxu0 %v2230_v60  ;;  %v2296_v16 = vmul.bf16 %v5591_v47, %v2253_v44  ;;  %v2295_v42 = vmul.bf16 %v5600_v1, %v2244_v25  ;;  %v2419_v49 = vpack.i.b16 %v2410_v35, %v2410_v35  ;;  %v5631_v60 = vrot.slane %v2412_v53, %v4975_v34 }
 0x412   : > { %v2304_v8 = vpop.permute.xlu0 %2303  ;;  %v2302_v24 = vpop.permute.xlu1 %2301  ;;  %v5626_v6 = vrot.slane %v2419_v49, %v4975_v34 }
 0x413   : > { %2537 = vmatpush1.bf16.msra.mxu0 %v2229_v2  ;;  %v2315_v36 = vsel %vm687_vm7, %v2304_v8, %v2302_v24  ;;  %v2309_v48 = vsel %vm687_vm7, %v2302_v24, %v2304_v8  ;;  %v4643_v2 = vld [vmem:[%s6096_s1 + $0x7c] ss:$12 sps:$4 sm:$0xff]  }
 0x414   : > { %2538 = vmatprep.subr.bf16.mxu0 %v2294_v18  ;;  %v2360_v13 = vmul.bf16 %v5610_v32, %v2315_v36  ;;  %v2359_v54 = vmul.bf16 %v5616_v28, %v2309_v48  ;;  %v4646_v24 = vld [vmem:[%s6096_s1 + $0x68] ss:$12 sps:$4 sm:$0xff]  }
 0x416   : > { %v2308_v19 = vpop.permute.xlu0 %2307  ;;  %v2306_v33 = vpop.permute.xlu1 %2305 }
 0x417   : > { %2539 = vmatpush1.bf16.msra.mxu0 %v2293_v37  ;;  %v2319_v51 = vsel %vm687_vm7, %v2308_v19, %v2306_v33  ;;  %v2310_v55 = vsel %vm687_vm7, %v2306_v33, %v2308_v19 }
 0x418   : > { %2540 = vmatprep.subr.bf16.mxu0 %v2296_v16  ;;  %v2362_v56 = vmul.bf16 %v5610_v32, %v2319_v51  ;;  %v2361_v59 = vmul.bf16 %v5616_v28, %v2310_v55 }
 0x41a   : > { %v2370_v20 = vpop.permute.xlu0 %2369  ;;  %v2368_v50 = vpop.permute.xlu1 %2367 }
 0x41b   : > { %2541 = vmatpush1.bf16.msra.mxu0 %v2295_v42  ;;  %v2381_v39 = vsel %vm756_vm6, %v2370_v20, %v2368_v50  ;;  %v2375_v61 = vsel %vm756_vm6, %v2368_v50, %v2370_v20 }
 0x41c   : > { %2542 = vmatprep.subr.bf16.mxu0 %v2360_v13  ;;  %v2426_v0 = vmul.bf16 %v5626_v6, %v2381_v39  ;;  %v2425_v8 = vmul.bf16 %v5631_v60, %v2375_v61 }
 0x41e   : > { %v2374_v57 = vpop.permute.xlu0 %2373  ;;  %v2372_v38 = vpop.permute.xlu1 %2371 }
 0x41f   : > { %2543 = vmatpush1.bf16.msra.mxu0 %v2359_v54  ;;  %v2385_v43 = vsel %vm756_vm6, %v2374_v57, %v2372_v38  ;;  %v2376_v15 = vsel %vm756_vm6, %v2372_v38, %v2374_v57 }
 0x420   : > { %2544 = vmatprep.subr.bf16.mxu0 %v2362_v56  ;;  %v2428_v7 = vmul.bf16 %v5626_v6, %v2385_v43  ;;  %v2427_v18 = vmul.bf16 %v5631_v60, %v2376_v15 }
 0x423   : > { %2545 = vmatpush1.bf16.msra.mxu0 %v2361_v59 }
 0x424   : > { %2567 = vmatprep.subr.bf16.mxu0 %v2426_v0 }
 0x426   : > { %2547 = vmatmul.mubr.bf16.vlgmr.msra.gmra.mrb[16].mxu0 %v4640_v5 }
 0x427   : > { %2568 = vmatpush1.bf16.msra.mxu0 %v2425_v8  ;;  %2556 = vmatprep.mubr.bf16.mxu0 %v4643_v2 }
 0x428   : > { %2569 = vmatprep.subr.bf16.mxu0 %v2428_v7 }
 0x42b   : > { %2570 = vmatpush1.bf16.msra.mxu0 %v2427_v18 }
 0x42e   : > { %2557 = vmatmul.mubr.bf16.gmra.mrb[20].mxu0 %v4645_v9 }
 0x42f   : > { %2599 = vmatprep.mubr.bf16.mxu0 %v4741_v12  ;;  %v2628_v44 = vpop.permute.xlu1 %2627  ;;  %v2633_v37 = vpop.permute.xlu0 %2632 }
 0x433   : > { %v2661_v11 = vpop.permute.xlu1 %2660  ;;  %v2666_v19 = vpop.permute.xlu0 %2665 }
 0x436   : > { %4449 = vmatmul.mubr.msk.bf16.vlgmr.msra.gmra.mrb[16].mxu0 %vm891_vm8, %v4646_v24 }
 0x437   : > { %2609 = vmatprep.mubr.bf16.mxu0 %v4741_v12  ;;  %v2638_v13 = vpop.permute.xlu1 %2637  ;;  %v2643_v54 = vpop.permute.xlu0 %2642 }
 0x43b   : > { %v2671_v43 = vpop.permute.xlu1 %2670 }
 0x43e   : > { %4450 = vmatmul.mubr.msk.bf16.gmra.mrb[20].mxu0 %vm891_vm8, %v4647_v14 }
 0x43f   : > { %3424 = vmatprep.mubr.bf16.mxu0 %v4741_v12 }
 0x509   : > { %v2601_v25 = vpop.f32.mrb[16].mxu0 }
 0x50a   : > { %v2645_v16 = vmul.f32 %v2628_v44, %v2601_v25  ;;  %v2603_v33 = vpop.f32.mrb[17].mxu0 }
 0x50b   : > { %v2646_v35 = vmul.f32 %v2628_v44, %v2603_v33  ;;  %v2605_v36 = vpop.f32.mrb[18].mxu0 }
 0x50c   : > { %v2678_v42 = vadd.f32 %v2661_v11, %v2645_v16  ;;  %v2647_v46 = vmul.f32 %v2633_v37, %v2605_v36  ;;  %v2607_v48 = vpop.f32.mrb[19].mxu0 }
 0x50d   : > { %v2679_v20 = vadd.f32 %v2661_v11, %v2646_v35  ;;  %v2648_v49 = vmul.f32 %v2633_v37, %v2607_v48  ;;  %v2676_v11 = vpop.permute.xlu0 %2675 }
 0x50e   : > { %vm2686_vm10 = vcmp.ge.f32.partialorder %v2678_v42, 0.0  ;;  %v2694_v50 = vmul.f32 0.01, %v2678_v42  ;;  %v2680_v51 = vadd.f32 %v2666_v19, %v2647_v46 }
 0x50f   : > { %vm2687_vm11 = vcmp.ge.f32.partialorder %v2679_v20, 0.0  ;;  %v2695_v53 = vmul.f32 0.01, %v2679_v20  ;;  %v2681_v55 = vadd.f32 %v2666_v19, %v2648_v49 }
 0x510   : > { %v2702_v56 = vsel %vm2686_vm10, %v2678_v42, %v2694_v50  ;;  %vm2688_vm12 = vcmp.ge.f32.partialorder %v2680_v51, 0.0  ;;  %v2696_v39 = vmul.f32 0.01, %v2680_v51 }
 0x511   : > { %v2703_v57 = vsel %vm2687_vm11, %v2679_v20, %v2695_v53  ;;  %vm2689_vm13 = vcmp.ge.f32.partialorder %v2681_v55, 0.0  ;;  %v2697_v38 = vmul.f32 0.01, %v2681_v55  ;;  %v2611_v59 = vpop.f32.mrb[20].mxu0  ;;  %v5661_v2 = vadd.f32 %v2702_v56, %v5354_v58  ;;  %v4493_v56 = vld [vmem:[%s6097_s2 + $0x78] sm:$0xff] }
 0x512   : > { %v2704_v61 = vsel %vm2688_vm12, %v2680_v51, %v2696_v39  ;;  %v2649_v0 = vmul.f32 %v2638_v13, %v2611_v59  ;;  %v2613_v5 = vpop.f32.mrb[21].mxu0  ;;  %v5667_v9 = vadd.f32 %v2703_v57, %v5360_v41  ;;  %v4492_v39 = vld [vmem:[%s6097_s2 + $0x70] sm:$0xff]  ;;  %v4497_v57 = vld [vmem:[%s6098_s3 + $0x78] sm:$0xff] }
 0x513   : > { %v5664_v8 = vadd.f32 %v2704_v61, %v5357_v23  ;;  %v2705_v15 = vsel %vm2689_vm13, %v2681_v55, %v2697_v38  ;;  %v2650_v7 = vmul.f32 %v2638_v13, %v2613_v5  ;;  %v2615_v18 = vpop.f32.mrb[22].mxu0  ;;  %v4494_v55 = vld [vmem:[%s6098_s3 + $0x60] sm:$0xff]  ;;  %v4496_v38 = vld [vmem:[%s6098_s3 + $0x70] sm:$0xff] }
 0x514   : > { %v5670_v24 = vadd.f32 %v2705_v15, %v5363_v40  ;;  %v2682_v14 = vadd.f32 %v2671_v43, %v2649_v0  ;;  %v2651_v44 = vmul.f32 %v2643_v54, %v2615_v18  ;;  %v2617_v37 = vpop.f32.mrb[23].mxu0 }
 0x515   : > { %v5674_v58 = vpack.c.bf16 %v5664_v8, %v5661_v2  ;;  %v2683_v19 = vadd.f32 %v2671_v43, %v2650_v7  ;;  %v2652_v23 = vmul.f32 %v2643_v54, %v2617_v37 }
 0x516   : > { %v5678_v25 = vpack.c.bf16 %v5670_v24, %v5667_v9  ;;  %vm2690_vm14 = vcmp.ge.f32.partialorder %v2682_v14, 0.0  ;;  %v2698_v41 = vmul.f32 0.01, %v2682_v14  ;;  %v2684_v16 = vadd.f32 %v2676_v11, %v2651_v44 }
 0x517   : > { %vm2691_vm15 = vcmp.ge.f32.partialorder %v2683_v19, 0.0  ;;  %v2699_v40 = vmul.f32 0.01, %v2683_v19  ;;  %v2685_v33 = vadd.f32 %v2676_v11, %v2652_v23  ;;  %2730 = vrot.lane.b32.xlu0 %v5674_v58, %s4733_s21 }
 0x518   : > { %v2706_v35 = vsel %vm2690_vm14, %v2682_v14, %v2698_v41  ;;  %vm2692_vm9 = vcmp.ge.f32.partialorder %v2684_v16, 0.0  ;;  %v2700_v36 = vmul.f32 0.01, %v2684_v16  ;;  %2724 = vrot.lane.b32.xlu1 %v5678_v25, %s4733_s21 }
 0x519   : > { %v2707_v42 = vsel %vm2691_vm15, %v2683_v19, %v2699_v40  ;;  %vm2693_vm10 = vcmp.ge.f32.partialorder %v2685_v33, 0.0  ;;  %v2701_v46 = vmul.f32 0.01, %v2685_v33  ;;  %v5685_v13 = vadd.f32 %v2706_v35, %v5378_v26  ;;  %v4650_v26 = vld [vmem:[%s6096_s1 + $0x94] ss:$12 sps:$4 sm:$0xff]  }
 0x51a   : > { %v2708_v48 = vsel %vm2692_vm9, %v2684_v16, %v2700_v36  ;;  %v5691_v50 = vadd.f32 %v2707_v42, %v5384_v10  ;;  %3371 = vmatprep.mubr.bf16.mxu1 %v4650_v26  ;;  %v4490_v10 = vld [vmem:[%s6097_s2 + $0x60] sm:$0xff] }
 0x51b   : > { %v5688_v20 = vadd.f32 %v2708_v48, %v5381_v27  ;;  %v2709_v49 = vsel %vm2693_vm10, %v2685_v33, %v2701_v46  ;;  %v4491_v27 = vld [vmem:[%s6097_s2 + $0x68] sm:$0xff] }
 0x51c   : > { %v5694_v51 = vadd.f32 %v2709_v49, %v5387_v3  ;;  %v4495_v3 = vld [vmem:[%s6098_s3 + $0x68] sm:$0xff] }
 0x51d   : > { %v5698_v54 = vpack.c.bf16 %v5688_v20, %v5685_v13 }
 0x51e   : > { %v5702_v53 = vpack.c.bf16 %v5694_v51, %v5691_v50 }
 0x51f   : > { %2732 = vrot.lane.b32.xlu0 %v5698_v54, %s4733_s21 }
 0x520   : > { %2726 = vrot.lane.b32.xlu1 %v5702_v53, %s4733_s21 }
 0x523   : > { %2796 = vrot.lane.b32.xlu0 %v5674_v58, %s4734_s27 }
 0x524   : > { %2792 = vrot.lane.b32.xlu1 %v5678_v25, %s4734_s27 }
 0x527   : > { %2798 = vrot.lane.b32.xlu0 %v5698_v54, %s4734_s27 }
 0x528   : > { %2794 = vrot.lane.b32.xlu1 %v5702_v53, %s4734_s27 }
 0x52b   : > { %2862 = vrot.lane.b32.xlu0 %v5674_v58, %s4735_s8 }
 0x52c   : > { %2858 = vrot.lane.b32.xlu1 %v5678_v25, %s4735_s8 }
 0x52f   : > { %2864 = vrot.lane.b32.xlu0 %v5698_v54, %s4735_s8 }
 0x530   : > { %2860 = vrot.lane.b32.xlu1 %v5702_v53, %s4735_s8 }
 0x533   : > { %2928 = vrot.lane.b32.xlu0 %v5674_v58, %s4736_s10 }
 0x534   : > { %2924 = vrot.lane.b32.xlu1 %v5678_v25, %s4736_s10 }
 0x537   : > { %2930 = vrot.lane.b32.xlu0 %v5698_v54, %s4736_s10 }
 0x538   : > { %2926 = vrot.lane.b32.xlu1 %v5702_v53, %s4736_s10 }
 0x53b   : > { %2996 = vrot.lane.b32.xlu0 %v5678_v25, %s4737_s11 }
 0x53c   : > { %2994 = vrot.lane.b32.xlu1 %v5674_v58, %s4737_s11 }
 0x53f   : > { %3062 = vrot.lane.b32.xlu0 %v5678_v25, %s4738_s12 }
 0x540   : > { %2998 = vrot.lane.b32.xlu1 %v5698_v54, %s4737_s11 }
 0x543   : > { %3128 = vrot.lane.b32.xlu0 %v5678_v25, %s4739_s15 }
 0x544   : > { %3060 = vrot.lane.b32.xlu1 %v5674_v58, %s4738_s12 }
 0x547   : > { %3000 = vrot.lane.b32.xlu0 %v5702_v53, %s4737_s11 }
 0x548   : > { %3064 = vrot.lane.b32.xlu1 %v5698_v54, %s4738_s12 }
 0x54b   : > { %3194 = vrot.lane.b32.xlu0 %v5678_v25, %s4740_s16 }
 0x54c   : > { %3126 = vrot.lane.b32.xlu1 %v5674_v58, %s4739_s15 }
 0x54f   : > { %3066 = vrot.lane.b32.xlu0 %v5702_v53, %s4738_s12 }
 0x550   : > { %3192 = vrot.lane.b32.xlu1 %v5674_v58, %s4740_s16 }
 0x553   : > { %3132 = vrot.lane.b32.xlu0 %v5702_v53, %s4739_s15 }
 0x554   : > { %3130 = vrot.lane.b32.xlu1 %v5698_v54, %s4739_s15 }
 0x557   : > { %3198 = vrot.lane.b32.xlu0 %v5702_v53, %s4740_s16 }
 0x558   : > { %3196 = vrot.lane.b32.xlu1 %v5698_v54, %s4740_s16 }
 0x55b   : > { %3457 = vperm.xlu0 %4622, %v4491_v27  }
 0x55c   : > { %3452 = vperm.xlu1 %4623, %v4490_v10  }
 0x55f   : > { %3490 = vperm.xlu0 %4622, %v4495_v3  }
 0x560   : > { %3485 = vperm.xlu1 %4623, %v4494_v55  }
 0x563   : > { %3467 = vperm.xlu0 %4622, %v4493_v56  }
 0x564   : > { %3462 = vperm.xlu1 %4623, %v4492_v39  }
 0x567   : > { %3500 = vperm.xlu0 %4622, %v4497_v57  }
 0x568   : > { %3495 = vperm.xlu1 %4623, %v4496_v38  }
 0x589   : > { %v2731_v59 = vpop.permute.xlu0 %2730 }
 0x58a   : > { %v2725_v61 = vpop.permute.xlu1 %2724 }
 0x58b   : > { %v2734_v0 = vsel %vm270_vm0, %v2731_v59, %v2725_v61  ;;  %v2740_v5 = vsel %vm270_vm0, %v2725_v61, %v2731_v59 }
 0x58c   : > { %v2784_v43 = vmul.bf16 %v2740_v5, %v5493_v52  ;;  %v2785_v15 = vmul.bf16 %v2734_v0, %v5496_v62 }
 0x58e   : > { %3339 = vmatprep.subr.bf16.mxu1 %v2785_v15 }
 0x58f   : > { %3340 = vmatpush1.bf16.msra.mxu1 %v2784_v43 }
 0x591   : > { %v2733_v7 = vpop.permute.xlu0 %2732 }
 0x592   : > { %v2727_v18 = vpop.permute.xlu1 %2726 }
 0x593   : > { %v2735_v14 = vsel %vm270_vm0, %v2733_v7, %v2727_v18  ;;  %v2744_v44 = vsel %vm270_vm0, %v2727_v18, %v2733_v7 }
 0x594   : > { %v2786_v37 = vmul.bf16 %v2744_v44, %v5493_v52  ;;  %v2787_v11 = vmul.bf16 %v2735_v14, %v5496_v62 }
 0x595   : > { %v2797_v19 = vpop.permute.xlu0 %2796 }
 0x596   : > { %v2793_v23 = vpop.permute.xlu1 %2792  ;;  %3341 = vmatprep.subr.bf16.mxu1 %v2787_v11 }
 0x597   : > { %v2800_v41 = vsel %vm338_vm1, %v2797_v19, %v2793_v23  ;;  %v2806_v16 = vsel %vm338_vm1, %v2793_v23, %v2797_v19  ;;  %3342 = vmatpush1.bf16.msra.mxu1 %v2786_v37 }
 0x598   : > { %v2850_v40 = vmul.bf16 %v2806_v16, %v5513_v21  ;;  %v2851_v33 = vmul.bf16 %v2800_v41, %v5517_v22 }
 0x599   : > { %v2799_v35 = vpop.permute.xlu0 %2798 }
 0x59a   : > { %v2795_v36 = vpop.permute.xlu1 %2794  ;;  %3343 = vmatprep.subr.bf16.mxu1 %v2851_v33 }
 0x59b   : > { %v2801_v42 = vsel %vm338_vm1, %v2799_v35, %v2795_v36  ;;  %v2810_v52 = vsel %vm338_vm1, %v2795_v36, %v2799_v35  ;;  %3344 = vmatpush1.bf16.msra.mxu1 %v2850_v40 }
 0x59c   : > { %v2852_v62 = vmul.bf16 %v2810_v52, %v5513_v21  ;;  %v2853_v46 = vmul.bf16 %v2801_v42, %v5517_v22 }
 0x59d   : > { %v2863_v48 = vpop.permute.xlu0 %2862 }
 0x59e   : > { %v2859_v49 = vpop.permute.xlu1 %2858  ;;  %3345 = vmatprep.subr.bf16.mxu1 %v2853_v46 }
 0x59f   : > { %v2866_v26 = vsel %vm407_vm2, %v2863_v48, %v2859_v49  ;;  %v2872_v27 = vsel %vm407_vm2, %v2859_v49, %v2863_v48  ;;  %3346 = vmatpush1.bf16.msra.mxu1 %v2852_v62 }
 0x5a0   : > { %v2916_v10 = vmul.bf16 %v2872_v27, %v5529_v30  ;;  %v2917_v3 = vmul.bf16 %v2866_v26, %v5532_v31 }
 0x5a1   : > { %v2865_v55 = vpop.permute.xlu0 %2864 }
 0x5a2   : > { %v2861_v56 = vpop.permute.xlu1 %2860  ;;  %3347 = vmatprep.subr.bf16.mxu1 %v2917_v3 }
 0x5a3   : > { %v2867_v39 = vsel %vm407_vm2, %v2865_v55, %v2861_v56  ;;  %v2876_v21 = vsel %vm407_vm2, %v2861_v56, %v2865_v55  ;;  %3348 = vmatpush1.bf16.msra.mxu1 %v2916_v10 }
 0x5a4   : > { %v2918_v22 = vmul.bf16 %v2876_v21, %v5529_v30  ;;  %v2919_v57 = vmul.bf16 %v2867_v39, %v5532_v31 }
 0x5a5   : > { %v2929_v38 = vpop.permute.xlu0 %2928 }
 0x5a6   : > { %v2925_v59 = vpop.permute.xlu1 %2924  ;;  %3349 = vmatprep.subr.bf16.mxu1 %v2919_v57 }
 0x5a7   : > { %v2932_v61 = vsel %vm476_vm3, %v2929_v38, %v2925_v59  ;;  %v2938_v0 = vsel %vm476_vm3, %v2925_v59, %v2929_v38  ;;  %3350 = vmatpush1.bf16.msra.mxu1 %v2918_v22 }
 0x5a8   : > { %v2982_v5 = vmul.bf16 %v2938_v0, %v5549_v63  ;;  %v2983_v43 = vmul.bf16 %v2932_v61, %v5553_v17 }
 0x5a9   : > { %v2931_v15 = vpop.permute.xlu0 %2930 }
 0x5aa   : > { %v2927_v7 = vpop.permute.xlu1 %2926  ;;  %3351 = vmatprep.subr.bf16.mxu1 %v2983_v43 }
 0x5ab   : > { %v2933_v18 = vsel %vm476_vm3, %v2931_v15, %v2927_v7  ;;  %v2942_v30 = vsel %vm476_vm3, %v2927_v7, %v2931_v15  ;;  %3352 = vmatpush1.bf16.msra.mxu1 %v2982_v5 }
 0x5ac   : > { %v2984_v31 = vmul.bf16 %v2942_v30, %v5549_v63  ;;  %v2985_v14 = vmul.bf16 %v2933_v18, %v5553_v17 }
 0x5ad   : > { %v2997_v44 = vpop.permute.xlu0 %2996 }
 0x5ae   : > { %v2995_v37 = vpop.permute.xlu1 %2994  ;;  %3353 = vmatprep.subr.bf16.mxu1 %v2985_v14  ;;  %v4648_v14 = vld [vmem:[%s6096_s1 + $0x90] ss:$12 sps:$4 sm:$0xff]  }
 0x5af   : > { %3354 = vmatpush1.bf16.msra.mxu1 %v2984_v31  ;;  %v3008_v23 = vsel %vm549_vm4, %v2997_v44, %v2995_v37  ;;  %v3002_v16 = vsel %vm549_vm4, %v2995_v37, %v2997_v44 }
 0x5b0   : > { %3355 = vmatprep.subr.bf16.mxu1 %v5678_v25  ;;  %v3053_v63 = vmul.bf16 %v3008_v23, %v5570_v45  ;;  %v3052_v40 = vmul.bf16 %v3002_v16, %v5580_v4 }
 0x5b1   : > { %v3063_v11 = vpop.permute.xlu0 %3062 }
 0x5b2   : > { %v2999_v19 = vpop.permute.xlu1 %2998 }
 0x5b3   : > { %3356 = vmatpush1.bf16.msra.mxu1 %v5674_v58 }
 0x5b4   : > { %3357 = vmatprep.subr.bf16.mxu1 %v5702_v53 }
 0x5b5   : > { %v3129_v41 = vpop.permute.xlu0 %3128 }
 0x5b6   : > { %v3061_v17 = vpop.permute.xlu1 %3060 }
 0x5b7   : > { %3358 = vmatpush1.bf16.msra.mxu1 %v5698_v54  ;;  %v3074_v58 = vsel %vm618_vm5, %v3063_v11, %v3061_v17  ;;  %v3068_v54 = vsel %vm618_vm5, %v3061_v17, %v3063_v11 }
 0x5b8   : > { %3359 = vmatprep.subr.bf16.mxu1 %v3053_v63  ;;  %v3119_v62 = vmul.bf16 %v3074_v58, %v5591_v47  ;;  %v3118_v48 = vmul.bf16 %v3068_v54, %v5600_v1 }
 0x5b9   : > { %v3001_v25 = vpop.permute.xlu0 %3000 }
 0x5ba   : > { %v3003_v33 = vsel %vm549_vm4, %v2999_v19, %v3001_v25  ;;  %v3012_v35 = vsel %vm549_vm4, %v3001_v25, %v2999_v19  ;;  %v3065_v36 = vpop.permute.xlu1 %3064 }
 0x5bb   : > { %v3055_v53 = vmul.bf16 %v3012_v35, %v5570_v45  ;;  %3360 = vmatpush1.bf16.msra.mxu1 %v3052_v40  ;;  %v3054_v42 = vmul.bf16 %v3003_v33, %v5580_v4 }
 0x5bd   : > { %3361 = vmatprep.subr.bf16.mxu1 %v3055_v53  ;;  %v3195_v52 = vpop.permute.xlu0 %3194 }
 0x5be   : > { %v3127_v46 = vpop.permute.xlu1 %3126 }
 0x5bf   : > { %3362 = vmatpush1.bf16.msra.mxu1 %v3054_v42  ;;  %v3140_v10 = vsel %vm687_vm7, %v3129_v41, %v3127_v46  ;;  %v3134_v57 = vsel %vm687_vm7, %v3127_v46, %v3129_v41 }
 0x5c0   : > { %3363 = vmatprep.subr.bf16.mxu1 %v3119_v62  ;;  %v3185_v38 = vmul.bf16 %v3140_v10, %v5610_v32  ;;  %v3184_v61 = vmul.bf16 %v3134_v57, %v5616_v28 }
 0x5c1   : > { %v3067_v49 = vpop.permute.xlu0 %3066 }
 0x5c2   : > { %v3069_v26 = vsel %vm618_vm5, %v3065_v36, %v3067_v49  ;;  %v3078_v27 = vsel %vm618_vm5, %v3067_v49, %v3065_v36  ;;  %v3193_v45 = vpop.permute.xlu1 %3192 }
 0x5c3   : > { %v3121_v4 = vmul.bf16 %v3078_v27, %v5591_v47  ;;  %v3200_v3 = vsel %vm756_vm6, %v3193_v45, %v3195_v52  ;;  %v3206_v55 = vsel %vm756_vm6, %v3195_v52, %v3193_v45  ;;  %3364 = vmatpush1.bf16.msra.mxu1 %v3118_v48  ;;  %v3120_v21 = vmul.bf16 %v3069_v26, %v5600_v1 }
 0x5c4   : > { %v3250_v56 = vmul.bf16 %v3200_v3, %v5631_v60  ;;  %v3251_v39 = vmul.bf16 %v3206_v55, %v5626_v6 }
 0x5c5   : > { %3365 = vmatprep.subr.bf16.mxu1 %v3121_v4  ;;  %v3133_v22 = vpop.permute.xlu0 %3132 }
 0x5c6   : > { %v3131_v59 = vpop.permute.xlu1 %3130  ;;  %3392 = vmatprep.subr.bf16.mxu0 %v3251_v39 }
 0x5c7   : > { %v3144_v47 = vsel %vm687_vm7, %v3133_v22, %v3131_v59  ;;  %3366 = vmatpush1.bf16.msra.mxu1 %v3120_v21  ;;  %3393 = vmatpush1.bf16.msra.mxu0 %v3250_v56  ;;  %v3135_v5 = vsel %vm687_vm7, %v3131_v59, %v3133_v22 }
 0x5c8   : > { %3367 = vmatprep.subr.bf16.mxu1 %v3185_v38  ;;  %v3187_v1 = vmul.bf16 %v3144_v47, %v5610_v32  ;;  %v3186_v31 = vmul.bf16 %v3135_v5, %v5616_v28  ;;  %v4651_v32 = vld [vmem:[%s6096_s1 + $0x98] ss:$12 sps:$4 sm:$0xff]   ;;  %v4654_v28 = vld [vmem:[%s6096_s1 + $0xa8] ss:$12 sps:$4 sm:$0xff]  }
 0x5c9   : > { %v3199_v0 = vpop.permute.xlu0 %3198 }
 0x5ca   : > { %v3197_v43 = vpop.permute.xlu1 %3196 }
 0x5cb   : > { %v3201_v15 = vsel %vm756_vm6, %v3197_v43, %v3199_v0  ;;  %v3210_v7 = vsel %vm756_vm6, %v3199_v0, %v3197_v43  ;;  %3368 = vmatpush1.bf16.msra.mxu1 %v3184_v61 }
 0x5cc   : > { %v3252_v18 = vmul.bf16 %v3201_v15, %v5631_v60  ;;  %v3253_v30 = vmul.bf16 %v3210_v7, %v5626_v6  ;;  %3369 = vmatprep.subr.bf16.mxu1 %v3187_v1  ;;  %v4652_v60 = vld [vmem:[%s6096_s1 + $0xac] ss:$12 sps:$4 sm:$0xff]   ;;  %v4655_v6 = vld [vmem:[%s6096_s1 + $0xb0] ss:$12 sps:$4 sm:$0xff]  }
 0x5ce   : > { %3394 = vmatprep.subr.bf16.mxu0 %v3253_v30 }
 0x5cf   : > { %3370 = vmatpush1.bf16.msra.mxu1 %v3186_v31  ;;  %3395 = vmatpush1.bf16.msra.mxu0 %v3252_v18 }
 0x5d2   : > { %3372 = vmatmul.mubr.bf16.vlgmr.msra.gmra.mrb[16].mxu1 %v4648_v14  ;;  %4488 = vmatmul.mubr.msk.bf16.vlgmr.msra.gmra.mrb[24].mxu0 %vm891_vm8, %v4651_v32 }
 0x5d3   : > { %3381 = vmatprep.mubr.bf16.mxu1 %v4652_v60  ;;  %3434 = vmatprep.mubr.bf16.mxu0 %v4741_v12 }
 0x5da   : > { %3382 = vmatmul.mubr.bf16.gmra.mrb[20].mxu1 %v4654_v28  ;;  %4489 = vmatmul.mubr.msk.bf16.gmra.mrb[28].mxu0 %vm891_vm8, %v4655_v6  ;;  %v3458_v44 = vpop.permute.xlu0 %3457 }
 0x5db   : > { %v3453_v37 = vpop.permute.xlu1 %3452 }
 0x5de   : > { %v3491_v11 = vpop.permute.xlu0 %3490 }
 0x5df   : > { %v3486_v19 = vpop.permute.xlu1 %3485 }
 0x5e2   : > { %v3468_v26 = vpop.permute.xlu0 %3467 }
 0x5e3   : > { %v3463_v46 = vpop.permute.xlu1 %3462 }
 0x5e7   : > { %v3496_v18 = vpop.permute.xlu1 %3495 }
 0x6a5   : > { %v3373_v23 = vpop.f32.mrb[16].mxu1  ;;  %v3426_v41 = vpop.f32.mrb[24].mxu0 }
 0x6a6   : > { %v3427_v16 = vadd.f32 %v3426_v41, %v3373_v23  ;;  %v3375_v63 = vpop.f32.mrb[17].mxu1  ;;  %v3428_v17 = vpop.f32.mrb[25].mxu0 }
 0x6a7   : > { %v3429_v40 = vadd.f32 %v3428_v17, %v3375_v63  ;;  %v3377_v25 = vpop.f32.mrb[18].mxu1  ;;  %v3430_v33 = vpop.f32.mrb[26].mxu0 }
 0x6a8   : > { %v3470_v35 = vmul.f32 %v3453_v37, %v3427_v16  ;;  %v3431_v36 = vadd.f32 %v3430_v33, %v3377_v25  ;;  %v3379_v58 = vpop.f32.mrb[19].mxu1  ;;  %v3432_v53 = vpop.f32.mrb[27].mxu0 }
 0x6a9   : > { %v3471_v42 = vmul.f32 %v3453_v37, %v3429_v40  ;;  %v3433_v52 = vadd.f32 %v3432_v53, %v3379_v58 }
 0x6aa   : > { %v3503_v54 = vadd.f32 %v3486_v19, %v3470_v35  ;;  %v3472_v62 = vmul.f32 %v3458_v44, %v3431_v36 }
 0x6ab   : > { %v3504_v48 = vadd.f32 %v3486_v19, %v3471_v42  ;;  %v3473_v49 = vmul.f32 %v3458_v44, %v3433_v52  ;;  %v3501_v19 = vpop.permute.xlu0 %3500 }
 0x6ac   : > { %vm3511_vm11 = vcmp.ge.f32.partialorder %v3503_v54, 0.0  ;;  %v3519_v27 = vmul.f32 0.01, %v3503_v54  ;;  %v3505_v45 = vadd.f32 %v3491_v11, %v3472_v62 }
 0x6ad   : > { %vm3512_vm12 = vcmp.ge.f32.partialorder %v3504_v48, 0.0  ;;  %v3520_v10 = vmul.f32 0.01, %v3504_v48  ;;  %v3506_v4 = vadd.f32 %v3491_v11, %v3473_v49  ;;  %v3383_v3 = vpop.f32.mrb[20].mxu1  ;;  %v3436_v55 = vpop.f32.mrb[28].mxu0 }
 0x6ae   : > { %v3527_v56 = vsel %vm3511_vm11, %v3503_v54, %v3519_v27  ;;  %vm3513_vm13 = vcmp.ge.f32.partialorder %v3505_v45, 0.0  ;;  %v3521_v39 = vmul.f32 0.01, %v3505_v45  ;;  %v3437_v21 = vadd.f32 %v3436_v55, %v3383_v3  ;;  %v3385_v22 = vpop.f32.mrb[21].mxu1  ;;  %v3438_v57 = vpop.f32.mrb[29].mxu0 }
 0x6af   : > { %v3528_v38 = vsel %vm3512_vm12, %v3504_v48, %v3520_v10  ;;  %vm3514_vm14 = vcmp.ge.f32.partialorder %v3506_v4, 0.0  ;;  %v3522_v59 = vmul.f32 0.01, %v3506_v4  ;;  %v3387_v47 = vpop.f32.mrb[22].mxu1  ;;  %v3440_v61 = vpop.f32.mrb[30].mxu0  ;;  %v3535_v0 = vadd.f32 %v3527_v56, %v5661_v2 }
 0x6b0   : > { %v3529_v5 = vsel %vm3513_vm13, %v3505_v45, %v3521_v39  ;;  %v3474_v1 = vmul.f32 %v3463_v46, %v3437_v21  ;;  %v3439_v43 = vadd.f32 %v3438_v57, %v3385_v22  ;;  %v3389_v15 = vpop.f32.mrb[23].mxu1  ;;  %v3442_v7 = vpop.f32.mrb[31].mxu0  ;;  %v3441_v14 = vadd.f32 %v3440_v61, %v3387_v47  ;;  %v4500_v27 = vld.sshfl [vmem:[%s6099_s4 + $0x2] sm:$0x11 pattern:$0x75316420] }
 0x6b1   : > { %v3537_v30 = vadd.f32 %v3529_v5, %v5664_v8  ;;  %v3530_v31 = vsel %vm3514_vm14, %v3506_v4, %v3522_v59  ;;  %v3443_v32 = vadd.f32 %v3442_v7, %v3389_v15  ;;  %v3536_v60 = vadd.f32 %v3528_v38, %v5667_v9  ;;  %v4502_v59 = vld.sshfl [vmem:[%s6099_s4 + $0x4] sm:$0x11 pattern:$0x75316420] }
 0x6b2   : > { %v3538_v28 = vadd.f32 %v3530_v31, %v5670_v24  ;;  %v3507_v6 = vadd.f32 %v3496_v18, %v3474_v1  ;;  %v3475_v44 = vmul.f32 %v3463_v46, %v3439_v43  ;;  %v3476_v2 = vmul.f32 %v3468_v26, %v3441_v14 }
 0x6b3   : > { %v5881_v37 = vpack.c.bf16 %v3537_v30, %v3535_v0  ;;  %v3477_v11 = vmul.f32 %v3468_v26, %v3443_v32  ;;  %v3646_v3 = vcombine.high %v4500_v27, %v4500_v27  ;;  %v3653_v57 = vrot.slane %v4500_v27, %v4968_v29 }
 0x6b4   : > { %v5883_v23 = vpack.c.bf16 %v3538_v28, %v3536_v60  ;;  %vm3515_vm15 = vcmp.ge.f32.partialorder %v3507_v6, 0.0  ;;  %v3523_v41 = vmul.f32 0.01, %v3507_v6  ;;  %v3508_v16 = vadd.f32 %v3496_v18, %v3475_v44 }
 0x6b5   : > { %v3509_v8 = vadd.f32 %v3501_v19, %v3476_v2  ;;  %v3510_v63 = vadd.f32 %v3501_v19, %v3477_v11  ;;  %3555 = vrot.lane.b32.xlu0 %v5881_v37, %s4733_s21  ;;  %v3660_v38 = vrot.slane %v3646_v3, %v4968_v29  ;;  %v3712_v47 = vcombine.high %v4502_v59, %v4502_v59  ;;  %v4504_v28 = vld.sshfl [vmem:[%s6099_s4 + $0x6] sm:$0x11 pattern:$0x75316420] }
 0x6b6   : > { %vm3516_vm9 = vcmp.ge.f32.partialorder %v3508_v16, 0.0  ;;  %v3524_v9 = vmul.f32 0.01, %v3508_v16  ;;  %3549 = vrot.lane.b32.xlu1 %v5883_v23, %s4733_s21  ;;  %v3531_v24 = vsel %vm3515_vm15, %v3507_v6, %v3523_v41  ;;  %v3662_v61 = vpack.i.b16 %v3653_v57, %v3653_v57 }
 0x6b7   : > { %vm3517_vm10 = vcmp.ge.f32.partialorder %v3509_v8, 0.0  ;;  %v3525_v17 = vmul.f32 0.01, %v3509_v8  ;;  %vm3518_vm11 = vcmp.ge.f32.partialorder %v3510_v63, 0.0  ;;  %v3526_v25 = vmul.f32 0.01, %v3510_v63 }
 0x6b8   : > { %v3532_v40 = vsel %vm3516_vm9, %v3508_v16, %v3524_v9  ;;  %v3539_v35 = vadd.f32 %v3531_v24, %v5685_v13  ;;  %v4658_v13 = vld [vmem:[%s6096_s1 + $0xc4] ss:$12 sps:$4 sm:$0xff]   ;;  %v3669_v0 = vpack.i.b16 %v3660_v38, %v3660_v38  ;;  %v3719_v7 = vrot.slane %v4502_v59, %v4968_v29 }
 0x6b9   : > { %v3533_v33 = vsel %vm3517_vm10, %v3509_v8, %v3525_v17  ;;  %v3534_v58 = vsel %vm3518_vm11, %v3510_v63, %v3526_v25  ;;  %v3540_v53 = vadd.f32 %v3532_v40, %v5691_v50  ;;  %4196 = vmatprep.mubr.bf16.mxu0 %v4658_v13  ;;  %v4529_v50 = vld [vmem:[%s6097_s2 + $0x80] sm:$0xff]  ;;  %v3726_v18 = vrot.slane %v3712_v47, %v4968_v29 }
 0x6ba   : > { %v3541_v36 = vadd.f32 %v3533_v33, %v5688_v20  ;;  %v3542_v42 = vadd.f32 %v3534_v58, %v5694_v51  ;;  %v4530_v20 = vld [vmem:[%s6098_s3 + $0x80] sm:$0xff]  ;;  %v3667_v14 = vrot.slane %v3662_v61, %v4975_v34  ;;  %v3674_v32 = vrot.slane %v3669_v0, %v4975_v34 }
 0x6bb   : > { %v4498_v51 = vld.sshfl [vmem:[%s6099_s4] sm:$0x11 pattern:$0x75316420]  ;;  %v3728_v11 = vpack.i.b16 %v3719_v7, %v3719_v7  ;;  %v3735_v19 = vpack.i.b16 %v3726_v18, %v3726_v18  ;;  %v3778_v8 = vcombine.high %v4504_v28, %v4504_v28 }
 0x6bc   : > { %v5893_v52 = vpack.c.bf16 %v3541_v36, %v3539_v35  ;;  %v5895_v54 = vpack.c.bf16 %v3542_v42, %v3540_v53  ;;  %v3580_v62 = vcombine.high %v4498_v51, %v4498_v51  ;;  %v3587_v46 = vrot.slane %v4498_v51, %v4968_v29 }
 0x6bd   : > { %v3733_v40 = vrot.slane %v3728_v11, %v4975_v34  ;;  %v3740_v25 = vrot.slane %v3735_v19, %v4975_v34  ;;  %v3785_v36 = vrot.slane %v4504_v28, %v4968_v29  ;;  %v3792_v58 = vrot.slane %v3778_v8, %v4968_v29  ;;  %v4510_v19 = vld.sshfl [vmem:[%s6099_s4 + $0xe] sm:$0x11 pattern:$0x75316420] }
 0x6be   : > { %3557 = vrot.lane.b32.xlu0 %v5893_v52, %s4733_s21  ;;  %3551 = vrot.lane.b32.xlu1 %v5895_v54, %s4733_s21  ;;  %v3594_v48 = vrot.slane %v3580_v62, %v4968_v29  ;;  %v3596_v49 = vpack.i.b16 %v3587_v46, %v3587_v46 }
 0x6bf   : > { %v3794_v62 = vpack.i.b16 %v3785_v36, %v3785_v36  ;;  %v3801_v46 = vpack.i.b16 %v3792_v58, %v3792_v58 }
 0x6c0   : > { %v3603_v26 = vpack.i.b16 %v3594_v48, %v3594_v48  ;;  %v3601_v45 = vrot.slane %v3596_v49, %v4975_v34 }
 0x6c1   : > { %v3799_v3 = vrot.slane %v3794_v62, %v4975_v34 }
 0x6c2   : > { %3621 = vrot.lane.b32.xlu0 %v5881_v37, %s4734_s27  ;;  %3617 = vrot.lane.b32.xlu1 %v5883_v23, %s4734_s27  ;;  %v3608_v10 = vrot.slane %v3603_v26, %v4975_v34 }
 0x6c6   : > { %3623 = vrot.lane.b32.xlu0 %v5893_v52, %s4734_s27  ;;  %3619 = vrot.lane.b32.xlu1 %v5895_v54, %s4734_s27 }
 0x6ca   : > { %3687 = vrot.lane.b32.xlu0 %v5881_v37, %s4735_s8  ;;  %3683 = vrot.lane.b32.xlu1 %v5883_v23, %s4735_s8 }
 0x6ce   : > { %3689 = vrot.lane.b32.xlu0 %v5893_v52, %s4735_s8  ;;  %3685 = vrot.lane.b32.xlu1 %v5895_v54, %s4735_s8 }
 0x6d2   : > { %3753 = vrot.lane.b32.xlu0 %v5881_v37, %s4736_s10  ;;  %3749 = vrot.lane.b32.xlu1 %v5883_v23, %s4736_s10 }
 0x6d6   : > { %3755 = vrot.lane.b32.xlu0 %v5893_v52, %s4736_s10  ;;  %3751 = vrot.lane.b32.xlu1 %v5895_v54, %s4736_s10 }
 0x6da   : > { %3821 = vrot.lane.b32.xlu0 %v5883_v23, %s4737_s11  ;;  %3819 = vrot.lane.b32.xlu1 %v5881_v37, %s4737_s11 }
 0x6de   : > { %3825 = vrot.lane.b32.xlu0 %v5895_v54, %s4737_s11  ;;  %3823 = vrot.lane.b32.xlu1 %v5893_v52, %s4737_s11 }
 0x6e2   : > { %3887 = vrot.lane.b32.xlu0 %v5883_v23, %s4738_s12  ;;  %3885 = vrot.lane.b32.xlu1 %v5881_v37, %s4738_s12 }
 0x6e6   : > { %3891 = vrot.lane.b32.xlu0 %v5895_v54, %s4738_s12  ;;  %3889 = vrot.lane.b32.xlu1 %v5893_v52, %s4738_s12 }
 0x6ea   : > { %3953 = vrot.lane.b32.xlu0 %v5883_v23, %s4739_s15  ;;  %3951 = vrot.lane.b32.xlu1 %v5881_v37, %s4739_s15 }
 0x6ee   : > { %3957 = vrot.lane.b32.xlu0 %v5895_v54, %s4739_s15  ;;  %3955 = vrot.lane.b32.xlu1 %v5893_v52, %s4739_s15 }
 0x6f2   : > { %4019 = vrot.lane.b32.xlu0 %v5883_v23, %s4740_s16  ;;  %4017 = vrot.lane.b32.xlu1 %v5881_v37, %s4740_s16 }
 0x6f6   : > { %4023 = vrot.lane.b32.xlu0 %v5895_v54, %s4740_s16  ;;  %4021 = vrot.lane.b32.xlu1 %v5893_v52, %s4740_s16 }
 0x6fa   : > { %4271 = vperm.xlu0 %4622, %v4530_v20   ;;  %4262 = vperm.xlu1 %4623, %v4529_v50  }
 0x727   : > { %v3556_v4 = vpop.permute.xlu0 %3555 }
 0x728   : > { %v3550_v55 = vpop.permute.xlu1 %3549 }
 0x729   : > { %v3559_v56 = vsel %vm270_vm0, %v3556_v4, %v3550_v55  ;;  %v3565_v39 = vsel %vm270_vm0, %v3550_v55, %v3556_v4  ;;  %v3806_v55 = vrot.slane %v3801_v46, %v4975_v34 }
 0x72a   : > { %v3609_v21 = vmul.bf16 %v3601_v45, %v3565_v39  ;;  %v3610_v22 = vmul.bf16 %v3608_v10, %v3559_v56 }
 0x72c   : > { %4164 = vmatprep.subr.bf16.mxu0 %v3610_v22 }
 0x72d   : > { %4165 = vmatpush1.bf16.msra.mxu0 %v3609_v21 }
 0x730   : > { %v3558_v5 = vpop.permute.xlu0 %3557  ;;  %v3552_v1 = vpop.permute.xlu1 %3551 }
 0x731   : > { %v3560_v43 = vsel %vm270_vm0, %v3558_v5, %v3552_v1  ;;  %v3569_v15 = vsel %vm270_vm0, %v3552_v1, %v3558_v5 }
 0x732   : > { %v3611_v30 = vmul.bf16 %v3601_v45, %v3569_v15  ;;  %v3612_v31 = vmul.bf16 %v3608_v10, %v3560_v43  ;;  %v4506_v45 = vld.sshfl [vmem:[%s6099_s4 + $0xa] sm:$0x11 pattern:$0x75316420] }
 0x733   : > { %v3848_v21 = vcombine.high %v4506_v45, %v4506_v45  ;;  %v4508_v43 = vld.sshfl [vmem:[%s6099_s4 + $0xc] sm:$0x11 pattern:$0x75316420] }
 0x734   : > { %v3622_v60 = vpop.permute.xlu0 %3621  ;;  %v3618_v6 = vpop.permute.xlu1 %3617  ;;  %4166 = vmatprep.subr.bf16.mxu0 %v3612_v31 }
 0x735   : > { %v3625_v44 = vsel %vm338_vm1, %v3622_v60, %v3618_v6  ;;  %v3631_v2 = vsel %vm338_vm1, %v3618_v6, %v3622_v60  ;;  %4167 = vmatpush1.bf16.msra.mxu0 %v3611_v30  ;;  %v3862_v0 = vrot.slane %v3848_v21, %v4968_v29  ;;  %v3855_v30 = vrot.slane %v4506_v45, %v4968_v29 }
 0x736   : > { %v3675_v41 = vmul.bf16 %v3667_v14, %v3631_v2  ;;  %v3676_v16 = vmul.bf16 %v3674_v32, %v3625_v44 }
 0x737   : > { %v3871_v31 = vpack.i.b16 %v3862_v0, %v3862_v0  ;;  %v3864_v60 = vpack.i.b16 %v3855_v30, %v3855_v30 }
 0x738   : > { %v3624_v63 = vpop.permute.xlu0 %3623  ;;  %v3620_v9 = vpop.permute.xlu1 %3619  ;;  %4168 = vmatprep.subr.bf16.mxu0 %v3676_v16  ;;  %v3921_v16 = vrot.slane %v4508_v43, %v4968_v29 }
 0x739   : > { %v3626_v24 = vsel %vm338_vm1, %v3624_v63, %v3620_v9  ;;  %v3635_v17 = vsel %vm338_vm1, %v3620_v9, %v3624_v63  ;;  %4169 = vmatpush1.bf16.msra.mxu0 %v3675_v41  ;;  %v3876_v6 = vrot.slane %v3871_v31, %v4975_v34  ;;  %v3869_v41 = vrot.slane %v3864_v60, %v4975_v34 }
 0x73a   : > { %v3677_v33 = vmul.bf16 %v3667_v14, %v3635_v17  ;;  %v3678_v35 = vmul.bf16 %v3674_v32, %v3626_v24  ;;  %v3914_v32 = vcombine.high %v4508_v43, %v4508_v43  ;;  %v3980_v17 = vcombine.high %v4510_v19, %v4510_v19 }
 0x73c   : > { %v3688_v53 = vpop.permute.xlu0 %3687  ;;  %v3684_v42 = vpop.permute.xlu1 %3683  ;;  %4170 = vmatprep.subr.bf16.mxu0 %v3678_v35  ;;  %v3928_v2 = vrot.slane %v3914_v32, %v4968_v29 }
 0x73d   : > { %v3691_v13 = vsel %vm407_vm2, %v3688_v53, %v3684_v42  ;;  %v3697_v20 = vsel %vm407_vm2, %v3684_v42, %v3688_v53  ;;  %4171 = vmatpush1.bf16.msra.mxu0 %v3677_v33  ;;  %v3994_v53 = vrot.slane %v3980_v17, %v4968_v29 }
 0x73e   : > { %v3741_v50 = vmul.bf16 %v3733_v40, %v3697_v20  ;;  %v3742_v51 = vmul.bf16 %v3740_v25, %v3691_v13  ;;  %v3937_v9 = vpack.i.b16 %v3928_v2, %v3928_v2  ;;  %v4512_v13 = vld.sshfl [vmem:[%s6099_s4 + $0x10] sm:$0x11 pattern:$0x75316420]  ;;  %v4656_v2 = vld [vmem:[%s6096_s1 + $0xc0] ss:$12 sps:$4 sm:$0xff]  }
 0x740   : > { %v3690_v48 = vpop.permute.xlu0 %3689  ;;  %v3686_v49 = vpop.permute.xlu1 %3685  ;;  %4172 = vmatprep.subr.bf16.mxu0 %v3742_v51  ;;  %v3942_v36 = vrot.slane %v3937_v9, %v4975_v34  ;;  %v3987_v51 = vrot.slane %v4510_v19, %v4968_v29  ;;  %v4659_v19 = vld [vmem:[%s6096_s1 + $0xdc] ss:$12 sps:$4 sm:$0xff]   ;;  %v4663_v9 = vld [vmem:[%s6096_s1 + $0xe0] ss:$12 sps:$4 sm:$0xff]  }
 0x741   : > { %v3692_v26 = vsel %vm407_vm2, %v3690_v48, %v3686_v49  ;;  %v3701_v27 = vsel %vm407_vm2, %v3686_v49, %v3690_v48  ;;  %4173 = vmatpush1.bf16.msra.mxu0 %v3741_v50  ;;  %v4003_v48 = vpack.i.b16 %v3994_v53, %v3994_v53 }
 0x742   : > { %v3743_v10 = vmul.bf16 %v3733_v40, %v3701_v27  ;;  %v3744_v4 = vmul.bf16 %v3740_v25, %v3692_v26  ;;  %v3930_v25 = vpack.i.b16 %v3921_v16, %v3921_v16  ;;  %v4046_v26 = vcombine.high %v4512_v13, %v4512_v13 }
 0x744   : > { %v3754_v56 = vpop.permute.xlu0 %3753  ;;  %v3750_v39 = vpop.permute.xlu1 %3749  ;;  %4174 = vmatprep.subr.bf16.mxu0 %v3744_v4  ;;  %v3935_v20 = vrot.slane %v3930_v25, %v4975_v34  ;;  %v4060_v21 = vrot.slane %v4046_v26, %v4968_v29 }
 0x745   : > { %v3757_v22 = vsel %vm476_vm3, %v3754_v56, %v3750_v39  ;;  %v3763_v57 = vsel %vm476_vm3, %v3750_v39, %v3754_v56  ;;  %4175 = vmatpush1.bf16.msra.mxu0 %v3743_v10  ;;  %v3996_v10 = vpack.i.b16 %v3987_v51, %v3987_v51  ;;  %v4008_v56 = vrot.slane %v4003_v48, %v4975_v34 }
 0x746   : > { %v3807_v38 = vmul.bf16 %v3799_v3, %v3763_v57  ;;  %v3808_v59 = vmul.bf16 %v3806_v55, %v3757_v22 }
 0x748   : > { %v3756_v47 = vpop.permute.xlu0 %3755  ;;  %v3752_v61 = vpop.permute.xlu1 %3751  ;;  %4176 = vmatprep.subr.bf16.mxu0 %v3808_v59  ;;  %v4053_v59 = vrot.slane %v4512_v13, %v4968_v29 }
 0x749   : > { %v3758_v5 = vsel %vm476_vm3, %v3756_v47, %v3752_v61  ;;  %v3767_v1 = vsel %vm476_vm3, %v3752_v61, %v3756_v47  ;;  %4177 = vmatpush1.bf16.msra.mxu0 %v3807_v38  ;;  %v4001_v38 = vrot.slane %v3996_v10, %v4975_v34 }
 0x74a   : > { %v3809_v15 = vmul.bf16 %v3799_v3, %v3767_v1  ;;  %v3810_v7 = vmul.bf16 %v3806_v55, %v3758_v5  ;;  %v4069_v5 = vpack.i.b16 %v4060_v21, %v4060_v21 }
 0x74c   : > { %v3822_v18 = vpop.permute.xlu0 %3821  ;;  %v3820_v14 = vpop.permute.xlu1 %3819  ;;  %4178 = vmatprep.subr.bf16.mxu0 %v3810_v7  ;;  %v4062_v7 = vpack.i.b16 %v4053_v59, %v4053_v59  ;;  %v4074_v31 = vrot.slane %v4069_v5, %v4975_v34 }
 0x74d   : > { %4179 = vmatpush1.bf16.msra.mxu0 %v3809_v15  ;;  %v3833_v11 = vsel %vm549_vm4, %v3822_v18, %v3820_v14  ;;  %v3827_v8 = vsel %vm549_vm4, %v3820_v14, %v3822_v18 }
 0x74e   : > { %4180 = vmatprep.subr.bf16.mxu0 %v5883_v23  ;;  %v3878_v63 = vmul.bf16 %v3876_v6, %v3833_v11 }
 0x750   : > { %v3826_v28 = vpop.permute.xlu0 %3825  ;;  %v3824_v44 = vpop.permute.xlu1 %3823 }
 0x751   : > { %4181 = vmatpush1.bf16.msra.mxu0 %v5881_v37  ;;  %v3837_v40 = vsel %vm549_vm4, %v3826_v28, %v3824_v44  ;;  %v3877_v37 = vmul.bf16 %v3869_v41, %v3827_v8  ;;  %v4661_v8 = vld [vmem:[%s6096_s1 + $0xd8] ss:$12 sps:$4 sm:$0xff]  }
 0x752   : > { %4182 = vmatprep.subr.bf16.mxu0 %v5895_v54  ;;  %v3828_v54 = vsel %vm549_vm4, %v3824_v44, %v3826_v28  ;;  %v3880_v35 = vmul.bf16 %v3876_v6, %v3837_v40  ;;  %v4067_v28 = vrot.slane %v4062_v7, %v4975_v34 }
 0x754   : > { %v3888_v23 = vpop.permute.xlu0 %3887  ;;  %v3886_v24 = vpop.permute.xlu1 %3885 }
 0x755   : > { %4183 = vmatpush1.bf16.msra.mxu0 %v5893_v52  ;;  %v3899_v42 = vsel %vm618_vm5, %v3888_v23, %v3886_v24  ;;  %v3879_v52 = vmul.bf16 %v3869_v41, %v3828_v54  ;;  %v3893_v62 = vsel %vm618_vm5, %v3886_v24, %v3888_v23 }
 0x756   : > { %4184 = vmatprep.subr.bf16.mxu0 %v3878_v63  ;;  %v3944_v46 = vmul.bf16 %v3942_v36, %v3899_v42  ;;  %v3943_v45 = vmul.bf16 %v3935_v20, %v3893_v62  ;;  %v4662_v63 = vld [vmem:[%s6096_s1 + $0xc8] ss:$12 sps:$4 sm:$0xff]  }
 0x758   : > { %v3892_v33 = vpop.permute.xlu0 %3891  ;;  %v3890_v58 = vpop.permute.xlu1 %3889 }
 0x759   : > { %4185 = vmatpush1.bf16.msra.mxu0 %v3877_v37  ;;  %v3903_v27 = vsel %vm618_vm5, %v3892_v33, %v3890_v58  ;;  %v3894_v3 = vsel %vm618_vm5, %v3890_v58, %v3892_v33 }
 0x75a   : > { %4186 = vmatprep.subr.bf16.mxu0 %v3880_v35  ;;  %v3946_v55 = vmul.bf16 %v3942_v36, %v3903_v27  ;;  %v3945_v57 = vmul.bf16 %v3935_v20, %v3894_v3 }
 0x75c   : > { %v3954_v50 = vpop.permute.xlu0 %3953  ;;  %v3952_v49 = vpop.permute.xlu1 %3951 }
 0x75d   : > { %4187 = vmatpush1.bf16.msra.mxu0 %v3879_v52  ;;  %v3965_v22 = vsel %vm687_vm7, %v3954_v50, %v3952_v49  ;;  %v3959_v47 = vsel %vm687_vm7, %v3952_v49, %v3954_v50 }
 0x75e   : > { %4188 = vmatprep.subr.bf16.mxu0 %v3944_v46  ;;  %v4010_v61 = vmul.bf16 %v4008_v56, %v3965_v22  ;;  %v4009_v15 = vmul.bf16 %v4001_v38, %v3959_v47 }
 0x760   : > { %v3958_v4 = vpop.permute.xlu0 %3957  ;;  %v3956_v39 = vpop.permute.xlu1 %3955 }
 0x761   : > { %4189 = vmatpush1.bf16.msra.mxu0 %v3943_v45  ;;  %v3969_v43 = vsel %vm687_vm7, %v3958_v4, %v3956_v39  ;;  %v3960_v18 = vsel %vm687_vm7, %v3956_v39, %v3958_v4 }
 0x762   : > { %4190 = vmatprep.subr.bf16.mxu0 %v3946_v55  ;;  %v4012_v30 = vmul.bf16 %v4008_v56, %v3969_v43  ;;  %v4011_v60 = vmul.bf16 %v4001_v38, %v3960_v18 }
 0x764   : > { %v4020_v0 = vpop.permute.xlu0 %4019  ;;  %v4018_v1 = vpop.permute.xlu1 %4017 }
 0x765   : > { %4191 = vmatpush1.bf16.msra.mxu0 %v3945_v57  ;;  %v4031_v14 = vsel %vm756_vm6, %v4020_v0, %v4018_v1  ;;  %v4025_v6 = vsel %vm756_vm6, %v4018_v1, %v4020_v0 }
 0x766   : > { %4192 = vmatprep.subr.bf16.mxu0 %v4010_v61  ;;  %v4076_v44 = vmul.bf16 %v4074_v31, %v4031_v14  ;;  %v4075_v41 = vmul.bf16 %v4067_v28, %v4025_v6 }
 0x768   : > { %v4024_v29 = vpop.permute.xlu0 %4023  ;;  %v4022_v32 = vpop.permute.xlu1 %4021 }
 0x769   : > { %4193 = vmatpush1.bf16.msra.mxu0 %v4009_v15  ;;  %v4035_v11 = vsel %vm756_vm6, %v4024_v29, %v4022_v32  ;;  %v4026_v23 = vsel %vm756_vm6, %v4022_v32, %v4024_v29 }
 0x76a   : > { %4194 = vmatprep.subr.bf16.mxu0 %v4012_v30  ;;  %v4078_v16 = vmul.bf16 %v4074_v31, %v4035_v11  ;;  %v4077_v34 = vmul.bf16 %v4067_v28, %v4026_v23 }
 0x76d   : > { %4195 = vmatpush1.bf16.msra.mxu0 %v4011_v60 }
 0x76e   : > { %4211 = vmatprep.subr.bf16.mxu0 %v4076_v44 }
 0x770   : > { %4197 = vmatmul.mubr.bf16.vlgmr.msra.gmra.mrb[32].mxu0 %v4656_v2 }
 0x771   : > { %4212 = vmatpush1.bf16.msra.mxu0 %v4075_v41  ;;  %4204 = vmatprep.mubr.bf16.mxu0 %v4659_v19 }
 0x772   : > { %4213 = vmatprep.subr.bf16.mxu0 %v4078_v16 }
 0x775   : > { %4214 = vmatpush1.bf16.msra.mxu0 %v4077_v34 }
 0x778   : > { %4205 = vmatmul.mubr.bf16.gmra.mrb[36].mxu0 %v4661_v8 }
 0x779   : > { %4243 = vmatprep.mubr.bf16.mxu0 %v4741_v12  ;;  %v4263_v25 = vpop.permute.xlu1 %4262  ;;  %v4272_v36 = vpop.permute.xlu0 %4271 }
 0x780   : > { %4527 = vmatmul.mubr.msk.bf16.vlgmr.msra.gmra.mrb[32].mxu0 %vm891_vm8, %v4662_v63 }
 0x781   : > { %4251 = vmatprep.mubr.bf16.mxu0 %v4741_v12 }
 0x788   : > { %4528 = vmatmul.mubr.msk.bf16.gmra.mrb[40].mxu0 %vm891_vm8, %v4663_v9 }
 0x84b   : > { %v4206_v24 = vpop.f32.mrb[36].mxu0 }
 0x84c   : > { %v4207_v17 = vpop.f32.mrb[37].mxu0 }
 0x84d   : > { %v4208_v40 = vpop.f32.mrb[38].mxu0 }
 0x84e   : > { %v4209_v37 = vpop.f32.mrb[39].mxu0 }
 0x853   : > { %v4245_v33 = vpop.f32.mrb[32].mxu0 }
 0x854   : > { %v4265_v54 = vmul.f32 %v4263_v25, %v4245_v33  ;;  %v4247_v35 = vpop.f32.mrb[33].mxu0 }
 0x855   : > { %v4266_v58 = vmul.f32 %v4263_v25, %v4247_v35  ;;  %v4249_v12 = vpop.f32.mrb[34].mxu0 }
 0x856   : > { %v4274_v53 = vadd.f32 %v4272_v36, %v4265_v54  ;;  %v4250_v42 = vpop.f32.mrb[35].mxu0 }
 0x857   : > { %v4275_v13 = vadd.f32 %v4272_v36, %v4266_v58 }
 0x859   : > { %v4278_v52 = vcombine.low %v4274_v53, %v4275_v13 }
 0x85b   : > { %4280 = vst [vmem:[%s244_s6] sm:$0x77] %v4278_v52  ;;  %v4253_v20 = vpop.f32.mrb[40].mxu0 }
 0x85c   : > { %v4254_v50 = vpop.f32.mrb[41].mxu0 }
 0x85d   : > { %v4255_v51 = vpop.f32.mrb[42].mxu0 }
 0x85e   : > { %v4256_v62 = vpop.f32.mrb[43].mxu0 }
 0x85f PF: > { %p15_p8 = scmp.ge.s32.totalorder %s4795_s23, 4   ;;  %s6104_s18 = smov %s4720_s19 }
 0x860   : > { %s6105_s19 = smov %s4724_s20  ;;  %s6106_s20 = smov %s4805_s26 }
 0x861   : > { %s6107_s21 = smov %s4795_s23  ;;  %17 = sbr.rel (!%p15_p8) target bundleno = 3 (0x3), region = 99 }
 0x868   :  { %4302 = vsyncpa [#allocation4], 1 }
 0x869   :  { %4304 = vsyncpa [#allocation4 + $0x1], 1 }

</bundles_post_ra>
